<compile_context>
chip_gen: v5e
topology: v5e:2x2
jax: 0.10.0
libtpu: 0.0.40
codegen_flags: <defaults>
</compile_context>

<pallas_src>
import functools

import jax
import jax.numpy as jnp
from jax.experimental import pallas as pl
from jax.experimental.pallas import tpu as pltpu


# ----------------------------------------------------------------------------
# Fused per-stage kernel (NB batch elements per grid step)
# ----------------------------------------------------------------------------
def _stage_kernel(x_ref, ef_ref, wup_ref, bup_ref, wc1_ref, b1_ref,
                  wc2_ref, b2_ref, out_ref, cat_ref, c1_ref, *, H, W, C, NB):
    """One decoder stage, space-to-depth coordinates, everything in VMEM.

    x_ref   : (NB, H*W, Cin)     bf16  stage input (spatial flattened, NHWC)
    ef_ref  : (NB, H*W, 4C)      bf16  cropped encoder feature, s2d layout
    wup_ref : (Cin, 4C)          bf16  ConvT weight, columns ordered (kh,kw,co)
    wc1_ref : (4, 8C, 4C)        bf16  conv1 combined weights [shift] x classes
    wc2_ref : (4, 4C, OUTW)      bf16  conv2 combined weights, OUTW lane-padded
    cat_ref : ((H+1)*W, 8C)      f32   scratch: [upsampled | encoder] + pad rows
    c1_ref  : (H*W, 4C)          f32   scratch: relu(conv1) in s2d + pad rows
    out_ref : (NB, (H-2)*W, OUTW) bf16 conv2 output, s2d layout, lane-dense

    The pad rows + the "flattened shifted slice" trick keep every access a
    static 2D slice (no reshapes/transposes/gathers in-kernel); the extra
    garbage columns they create per row are dropped by the wrapper.
    """
    HW = H * W
    M1 = (H - 1) * W            # conv1 rows (one garbage column per row)
    M2 = (H - 2) * W            # conv2 rows (two garbage columns per row)
    C4, C8 = 4 * C, 8 * C
    OUTW = out_ref.shape[-1]

    # Zero pad rows once per grid step (rows [0:HW)/[0:M1) are fully rewritten
    # per batch element below, so the pads stay valid across the NB loop).
    cat_ref[HW:HW + W, :] = jnp.zeros((W, C8), jnp.float32)
    c1_ref[M1:HW, :] = jnp.zeros((HW - M1, C4), jnp.float32)

    for bi in range(NB):
        # ConvTranspose2d(k=2, s=2): one MXU matmul; raw output is already the
        # s2d image u2[(h, w), (kh, kw, co)] -> no interleave needed.
        u2 = jnp.dot(x_ref[bi], wup_ref[...], preferred_element_type=jnp.float32)
        cat_ref[0:HW, 0:C4] = u2 + bup_ref[...]
        # Channel concat with the skip feature lives only in VMEM.
        cat_ref[0:HW, C4:C8] = ef_ref[bi].astype(jnp.float32)

        # conv1 (3x3 valid) + ReLU: all 4 output-parity classes fused into one
        # 4C-wide output per shifted-slice matmul (K = 8C: upsampled + skip).
        acc1 = jnp.zeros((M1, C4), jnp.float32)
        for shift in range(4):
            off = (shift // 2) * W + (shift % 2)
            acc1 += jnp.dot(cat_ref[off:off + M1, :].astype(jnp.bfloat16),
                            wc1_ref[shift], preferred_element_type=jnp.float32)
        c1_ref[0:M1, :] = jnp.maximum(acc1 + b1_ref[...], 0.0)

        # conv2 (3x3 valid): same scheme, K = 4C.  Output columns are padded
        # host-side (zero weight columns) to a multiple of 128 lanes so the
        # HBM writeback is an unmasked lane-dense store.
        acc2 = jnp.zeros((M2, OUTW), jnp.float32)
        for shift in range(4):
            off = (shift // 2) * W + (shift % 2)
            acc2 += jnp.dot(c1_ref[off:off + M2, :].astype(jnp.bfloat16),
                            wc2_ref[shift], preferred_element_type=jnp.float32)
        out_ref[bi] = (acc2 + b2_ref[...]).astype(out_ref.dtype)

    # TODO(synk): switch cat/c1 scratch to bf16 (halves scratch + drops the 4
    # fp32->bf16 LHS casts per conv) once the off=1 / off=W+1 sub-pack sublane
    # offsets on packed dtypes are confirmed to lower without relayout blowups
    # on the target Mosaic version; fp32 odd-offset slices are known-good.


# ----------------------------------------------------------------------------
# Host-side (one-time) weight packing into the s2d combined-weight form
# ----------------------------------------------------------------------------
def _s2d_tap_weight(wconv, r, s, alpha, beta):
    """(Cout, Cin_p, 3, 3) torch conv weight -> (4*Cin_p, Cout) block for
    output parity class (r, s) and spatial shift (alpha, beta)."""
    cout, cin_p = wconv.shape[0], wconv.shape[1]
    blocks = []
    for a in (0, 1):
        for b in (0, 1):
            dh, dw = 2 * alpha + a - r, 2 * beta + b - s
            if 0 <= dh <= 2 and 0 <= dw <= 2:
                blocks.append(jnp.transpose(wconv[:, :, dh, dw]))
            else:
                blocks.append(jnp.zeros((cin_p, cout), wconv.dtype))
    return jnp.concatenate(blocks, axis=0)


def pack_params(params):
    """Convert torch-layout params into kernel-ready tensors (done once).

    Combined conv weights are indexed by spatial shift only; the 4 output
    parity classes (r, s) are concatenated along the output axis so the kernel
    does one wide matmul per shift.  conv2's output axis is zero-padded to a
    multiple of 128 for lane-dense HBM stores.
    """
    packed = []
    for p in params:
        cin, c = p["up_w"].shape[0], p["up_w"].shape[1]
        c4 = 4 * c
        outw = ((c4 + 127) // 128) * 128            # lane-dense conv2 output
        # ConvT weight (Cin, Cout, 2, 2) -> (Cin, 4C) with columns (kh, kw, co)
        wup = jnp.transpose(p["up_w"], (0, 2, 3, 1)).reshape(cin, c4)
        w1u, w1e, w2 = p["c1_w"][:, :c], p["c1_w"][:, c:], p["c2_w"]
        wc1, wc2 = [], []
        for alpha in (0, 1):
            for beta in (0, 1):
                blk1, blk2 = [], []
                for r in (0, 1):
                    for s in (0, 1):
                        blk1.append(jnp.concatenate(
                            [_s2d_tap_weight(w1u, r, s, alpha, beta),
                             _s2d_tap_weight(w1e, r, s, alpha, beta)], axis=0))
                        blk2.append(_s2d_tap_weight(w2, r, s, alpha, beta))
                wc1.append(jnp.concatenate(blk1, axis=1))           # (8C, 4C)
                w2s = jnp.concatenate(blk2, axis=1)                 # (4C, 4C)
                if outw > c4:
                    w2s = jnp.pad(w2s, ((0, 0), (0, outw - c4)))
                wc2.append(w2s)                                     # (4C, OUTW)
        packed.append(dict(
            wup=wup.astype(jnp.bfloat16),
            bup=jnp.tile(p["up_b"], 4).reshape(1, c4).astype(jnp.float32),
            wc1=jnp.stack(wc1).astype(jnp.bfloat16),
            b1=jnp.tile(p["c1_b"], 4).reshape(1, c4).astype(jnp.float32),
            wc2=jnp.stack(wc2).astype(jnp.bfloat16),
            b2=jnp.pad(jnp.tile(p["c2_b"], 4),
                       (0, outw - c4)).reshape(1, outw).astype(jnp.float32),
        ))
    return packed


# ----------------------------------------------------------------------------
# Stage wrapper + decoder forward
# ----------------------------------------------------------------------------
def _pick_block_batch(n, max_nb=8):
    """Batch elements per grid step: amortize the ~0.35us per-step overhead
    while keeping >= 2 grid steps so both of v7x's TensorCores get work."""
    if n <= 2:
        return 1
    nb = min(n // 2, max_nb)
    while nb > 1 and n % nb:
        nb -= 1
    return nb


def _decoder_stage(sp, x_nhwc, ef_nchw, nb):
    N, H, W, Cin = x_nhwc.shape
    C = sp["b1"].shape[1] // 4
    outw = sp["b2"].shape[1]
    HW, M2 = H * W, (H - 2) * W

    # Center crop (torch: features[:, :, h:-h, w:-w]; requires h, w >= 1) and
    # space-to-depth so the kernel never interleaves.  Done in bf16 so this
    # memory-bound layout op moves half the bytes.
    ef = jnp.transpose(ef_nchw.astype(jnp.bfloat16), (0, 2, 3, 1))
    ch = (ef.shape[1] - 2 * H) // 2
    cw = (ef.shape[2] - 2 * W) // 2
    ef = ef[:, ch:ef.shape[1] - ch, cw:ef.shape[2] - cw, :]
    ef2 = ef.reshape(N, H, 2, W, 2, C).transpose(0, 1, 3, 2, 4, 5)
    ef2 = ef2.reshape(N, HW, 4 * C)

    x2 = x_nhwc.reshape(N, HW, Cin).astype(jnp.bfloat16)  # no-op after stage 0

    # TODO(synk): add spatial (halo) strip tiling of the H*W axis (as a second
    # "parallel" grid axis) for real UNet resolutions; re-derive the strip size
    # for v7x's 64 MiB VMEM and set vmem_limit_bytes explicitly then.  At these
    # sizes one batch block per grid step uses < 0.2 MiB of VMEM scratch.
    out2 = pl.pallas_call(
        functools.partial(_stage_kernel, H=H, W=W, C=C, NB=nb),
        out_shape=jax.ShapeDtypeStruct((N, M2, outw), jnp.bfloat16),
        grid=(N // nb,),
        in_specs=[
            pl.BlockSpec((nb, HW, Cin), lambda n: (n, 0, 0)),
            pl.BlockSpec((nb, HW, 4 * C), lambda n: (n, 0, 0)),
            pl.BlockSpec((Cin, 4 * C), lambda n: (0, 0)),
            pl.BlockSpec((1, 4 * C), lambda n: (0, 0)),
            pl.BlockSpec((4, 8 * C, 4 * C), lambda n: (0, 0, 0)),
            pl.BlockSpec((1, 4 * C), lambda n: (0, 0)),
            pl.BlockSpec((4, 4 * C, outw), lambda n: (0, 0, 0)),
            pl.BlockSpec((1, outw), lambda n: (0, 0)),
        ],
        out_specs=pl.BlockSpec((nb, M2, outw), lambda n: (n, 0, 0)),
        scratch_shapes=[
            pltpu.VMEM(((H + 1) * W, 8 * C), jnp.float32),
            pltpu.VMEM((H * W, 4 * C), jnp.float32),
        ],
        compiler_params=pltpu.CompilerParams(
            dimension_semantics=("parallel",)),   # batch blocks over v7x's 2 TCs
    )(x2, ef2, sp["wup"], sp["bup"], sp["wc1"], sp["b1"], sp["wc2"], sp["b2"])

    # depth-to-space + drop the lane padding and the garbage columns from the
    # flattened-slice trick (pure layout plumbing, stays in bf16).
    out = out2[..., :4 * C].reshape(N, H - 2, W, 2, 2, C)[:, :, :W - 2]
    return out.transpose(0, 1, 3, 2, 4, 5).reshape(N, 2 * H - 4, 2 * W - 4, C)


def decoder_forward(packed_params, x_nchw, encoder_features_nchw):
    N = x_nchw.shape[0]
    nb = _pick_block_batch(N)
    x = jnp.transpose(x_nchw, (0, 2, 3, 1))                     # NCHW -> NHWC
    for i, sp in enumerate(packed_params):
        x = _decoder_stage(sp, x, encoder_features_nchw[i], nb)
    return jnp.transpose(x, (0, 3, 1, 2)).astype(jnp.float32)   # back to NCHW


# ----------------------------------------------------------------------------
# Pure-JAX reference (fp32) for a numerics sanity check
# ----------------------------------------------------------------------------
def _reference_forward(params, x_nchw, encoder_features_nchw):
    def conv_t(x, w, b):
        n, h, wd, _ = x.shape
        cout = w.shape[1]
        y = jnp.einsum("nhwi,iokl->nhwokl", x, w) + b[None, None, None, :, None, None]
        return jnp.transpose(y, (0, 1, 4, 2, 5, 3)).reshape(n, 2 * h, 2 * wd, cout)

    def conv3(x, w, b):
        n, h, wd, _ = x.shape
        ho, wo = h - 2, wd - 2
        y = jnp.zeros((n, ho, wo, w.shape[0]), jnp.float32) + b
        for dh in range(3):
            for dw in range(3):
                y = y + jnp.einsum("nhwc,oc->nhwo",
                                   x[:, dh:dh + ho, dw:dw + wo, :], w[:, :, dh, dw])
        return y

    x = jnp.transpose(x_nchw, (0, 2, 3, 1))
    for i, p in enumerate(params):
        x = conv_t(x, p["up_w"], p["up_b"])
        ef = jnp.transpose(encoder_features_nchw[i], (0, 2, 3, 1))
        ch = (ef.shape[1] - x.shape[1]) // 2
        cw = (ef.shape[2] - x.shape[2]) // 2
        ef = ef[:, ch:ef.shape[1] - ch, cw:ef.shape[2] - cw, :]
        x = jnp.concatenate([x, ef], axis=-1)
        x = jnp.maximum(conv3(x, p["c1_w"], p["c1_b"]), 0.0)
        x = conv3(x, p["c2_w"], p["c2_b"])
    return jnp.transpose(x, (0, 3, 1, 2))


# ----------------------------------------------------------------------------
# Synthetic parameters matching the PyTorch module layouts
# ----------------------------------------------------------------------------
def init_params(key, channels=(64, 32, 16)):
    params = []
    for i in range(len(channels) - 1):
        cin, cout = channels[i], channels[i + 1]
        key, k0, k1, k2, k3, k4, k5 = jax.random.split(key, 7)
        params.append(dict(
            up_w=0.1 * jax.random.normal(k0, (cin, cout, 2, 2), jnp.float32),
            up_b=0.1 * jax.random.normal(k1, (cout,), jnp.float32),
            c1_w=0.1 * jax.random.normal(k2, (cout, cin, 3, 3), jnp.float32),
            c1_b=0.1 * jax.random.normal(k3, (cout,), jnp.float32),
            c2_w=0.1 * jax.random.normal(k4, (cout, cout, 3, 3), jnp.float32),
            c2_b=0.1 * jax.random.normal(k5, (cout,), jnp.float32),
        ))
    return params


if __name__ == "__main__":
    channels = (64, 32, 16)
    key = jax.random.PRNGKey(0)
    kp, kx, ke0, ke1 = jax.random.split(key, 4)
    params = init_params(kp, channels)
    packed = pack_params(params)          # one-time, kernel-ready weights

    N = 2
    x = jax.random.normal(kx, (N, 64, 8, 8), jnp.float32)        # bottleneck
    enc0 = jax.random.normal(ke0, (N, 32, 20, 20), jnp.float32)  # crop -> 16x16
    enc1 = jax.random.normal(ke1, (N, 16, 28, 28), jnp.float32)  # crop -> 24x24
    encs = (enc0, enc1)

    fwd = jax.jit(decoder_forward)
    out = jax.block_until_ready(fwd(packed, x, encs))
    assert out.shape == (N, 16, 20, 20), out.shape
    assert jnp.all(jnp.isfinite(out))

    ref = _reference_forward(params, x, list(encs))
    rel = jnp.max(jnp.abs(out - ref)) / (jnp.max(jnp.abs(ref)) + 1e-6)
    assert rel < 5e-2, f"mismatch vs fp32 reference: rel-max-err={rel}"
    print("KERNEL_OK")
</pallas_src>

<mosaic_0001>
module attributes {stable_mosaic.version = 11 : i64} {
  func.func @_stage_kernel(%arg0: i32, %arg1: memref<1x64x64xbf16, #tpu.memory_space<vmem>>, %arg2: memref<1x64x128xbf16, #tpu.memory_space<vmem>>, %arg3: memref<64x128xbf16, #tpu.memory_space<vmem>>, %arg4: memref<1x128xf32, #tpu.memory_space<vmem>>, %arg5: memref<4x256x128xbf16, #tpu.memory_space<vmem>>, %arg6: memref<1x128xf32, #tpu.memory_space<vmem>>, %arg7: memref<4x128x128xbf16, #tpu.memory_space<vmem>>, %arg8: memref<1x128xf32, #tpu.memory_space<vmem>>, %arg9: memref<1x48x128xbf16, #tpu.memory_space<vmem>>, %arg10: memref<72x256xf32, #tpu.memory_space<vmem>>, %arg11: memref<64x128xf32, #tpu.memory_space<vmem>>) attributes {dimension_semantics = [#tpu.dimension_semantics<parallel>], iteration_bounds = array<i64: 2>, scalar_prefetch = 0 : i64, scratch_operands = 2 : i64, tpu.core_type = #tpu.core_type<tc>, window_params = [{transform_indices = @transform_0, window_bounds = array<i64: 1, 64, 64>}, {transform_indices = @transform_1, window_bounds = array<i64: 1, 64, 128>}, {pipeline_mode = #tpu.pipeline_mode<synchronous>, transform_indices = @transform_2, window_bounds = array<i64: 64, 128>}, {pipeline_mode = #tpu.pipeline_mode<synchronous>, transform_indices = @transform_3, window_bounds = array<i64: 1, 128>}, {pipeline_mode = #tpu.pipeline_mode<synchronous>, transform_indices = @transform_4, window_bounds = array<i64: 4, 256, 128>}, {pipeline_mode = #tpu.pipeline_mode<synchronous>, transform_indices = @transform_5, window_bounds = array<i64: 1, 128>}, {pipeline_mode = #tpu.pipeline_mode<synchronous>, transform_indices = @transform_6, window_bounds = array<i64: 4, 128, 128>}, {pipeline_mode = #tpu.pipeline_mode<synchronous>, transform_indices = @transform_7, window_bounds = array<i64: 1, 128>}, {transform_indices = @transform_8, window_bounds = array<i64: 1, 48, 128>}]} {
    %cst = arith.constant 0.000000e+00 : f32
    %0 = vector.broadcast %cst : f32 to vector<8x256xf32>
    %c64 = arith.constant 64 : index
    %c0 = arith.constant 0 : index
    %1 = vector.load %arg10[%c64, %c0] : memref<72x256xf32, #tpu.memory_space<vmem>>, vector<8x256xf32>
    tpu.vector_store %arg10[%c64, %c0], %0 {strides = array<i32>} : memref<72x256xf32, #tpu.memory_space<vmem>>, vector<8x256xf32>,
    %cst_0 = arith.constant 0.000000e+00 : f32
    %2 = vector.broadcast %cst_0 : f32 to vector<8x128xf32>
    %c56 = arith.constant 56 : index
    %c0_1 = arith.constant 0 : index
    %3 = vector.load %arg11[%c56, %c0_1] : memref<64x128xf32, #tpu.memory_space<vmem>>, vector<8x128xf32>
    tpu.vector_store %arg11[%c56, %c0_1], %2 {strides = array<i32>} : memref<64x128xf32, #tpu.memory_space<vmem>>, vector<8x128xf32>,
    %c0_2 = arith.constant 0 : index
    %c0_3 = arith.constant 0 : index
    %c0_4 = arith.constant 0 : index
    %4 = vector.load %arg1[%c0_2, %c0_3, %c0_4] : memref<1x64x64xbf16, #tpu.memory_space<vmem>>, vector<1x64x64xbf16>
    %5 = vector.shape_cast %4 : vector<1x64x64xbf16> to vector<64x64xbf16>
    %c0_5 = arith.constant 0 : index
    %c0_6 = arith.constant 0 : index
    %6 = vector.load %arg3[%c0_5, %c0_6] : memref<64x128xbf16, #tpu.memory_space<vmem>>, vector<64x128xbf16>
    %cst_7 = arith.constant dense<0.000000e+00> : vector<64x128xf32>
    %7 = tpu.matmul %5, %6, %cst_7 {dimension_numbers = #tpu.dot_dimension_numbers<[1], [0], [0], [1], [0, 0, 1, 1], [], []>} : vector<64x64xbf16>, vector<64x128xbf16>, vector<64x128xf32> -> vector<64x128xf32>
    %c0_8 = arith.constant 0 : index
    %c0_9 = arith.constant 0 : index
    %8 = vector.load %arg4[%c0_8, %c0_9] : memref<1x128xf32, #tpu.memory_space<vmem>>, vector<1x128xf32>
    %9 = vector.broadcast %8 : vector<1x128xf32> to vector<64x128xf32>
    %10 = arith.addf %7, %9 : vector<64x128xf32>
    %c0_10 = arith.constant 0 : index
    %c0_11 = arith.constant 0 : index
    %11 = vector.load %arg10[%c0_10, %c0_11] : memref<72x256xf32, #tpu.memory_space<vmem>>, vector<64x128xf32>
    tpu.vector_store %arg10[%c0_10, %c0_11], %10 {strides = array<i32>} : memref<72x256xf32, #tpu.memory_space<vmem>>, vector<64x128xf32>,
    %c0_12 = arith.constant 0 : index
    %c0_13 = arith.constant 0 : index
    %c0_14 = arith.constant 0 : index
    %12 = vector.load %arg2[%c0_12, %c0_13, %c0_14] : memref<1x64x128xbf16, #tpu.memory_space<vmem>>, vector<1x64x128xbf16>
    %13 = vector.shape_cast %12 : vector<1x64x128xbf16> to vector<64x128xbf16>
    %14 = arith.extf %13 : vector<64x128xbf16> to vector<64x128xf32>
    %c0_15 = arith.constant 0 : index
    %c128 = arith.constant 128 : index
    %15 = vector.load %arg10[%c0_15, %c128] : memref<72x256xf32, #tpu.memory_space<vmem>>, vector<64x128xf32>
    tpu.vector_store %arg10[%c0_15, %c128], %14 {strides = array<i32>} : memref<72x256xf32, #tpu.memory_space<vmem>>, vector<64x128xf32>,
    %cst_16 = arith.constant 0.000000e+00 : f32
    %16 = vector.broadcast %cst_16 : f32 to vector<56x128xf32>
    %c0_17 = arith.constant 0 : index
    %c0_18 = arith.constant 0 : index
    %17 = vector.load %arg10[%c0_17, %c0_18] : memref<72x256xf32, #tpu.memory_space<vmem>>, vector<56x256xf32>
    %18 = arith.truncf %17 : vector<56x256xf32> to vector<56x256xbf16>
    %c0_19 = arith.constant 0 : index
    %c0_20 = arith.constant 0 : index
    %c0_21 = arith.constant 0 : index
    %19 = vector.load %arg5[%c0_19, %c0_20, %c0_21] : memref<4x256x128xbf16, #tpu.memory_space<vmem>>, vector<1x256x128xbf16>
    %20 = vector.shape_cast %19 : vector<1x256x128xbf16> to vector<256x128xbf16>
    %cst_22 = arith.constant dense<0.000000e+00> : vector<56x128xf32>
    %21 = tpu.matmul %18, %20, %cst_22 {dimension_numbers = #tpu.dot_dimension_numbers<[1], [0], [0], [1], [0, 0, 1, 1], [], []>} : vector<56x256xbf16>, vector<256x128xbf16>, vector<56x128xf32> -> vector<56x128xf32>
    %22 = arith.addf %16, %21 : vector<56x128xf32>
    %c1 = arith.constant 1 : index
    %c0_23 = arith.constant 0 : index
    %23 = vector.load %arg10[%c1, %c0_23] : memref<72x256xf32, #tpu.memory_space<vmem>>, vector<56x256xf32>
    %24 = arith.truncf %23 : vector<56x256xf32> to vector<56x256xbf16>
    %c1_24 = arith.constant 1 : index
    %c0_25 = arith.constant 0 : index
    %c0_26 = arith.constant 0 : index
    %25 = vector.load %arg5[%c1_24, %c0_25, %c0_26] : memref<4x256x128xbf16, #tpu.memory_space<vmem>>, vector<1x256x128xbf16>
    %26 = vector.shape_cast %25 : vector<1x256x128xbf16> to vector<256x128xbf16>
    %cst_27 = arith.constant dense<0.000000e+00> : vector<56x128xf32>
    %27 = tpu.matmul %24, %26, %cst_27 {dimension_numbers = #tpu.dot_dimension_numbers<[1], [0], [0], [1], [0, 0, 1, 1], [], []>} : vector<56x256xbf16>, vector<256x128xbf16>, vector<56x128xf32> -> vector<56x128xf32>
    %28 = arith.addf %22, %27 : vector<56x128xf32>
    %c8 = arith.constant 8 : index
    %c0_28 = arith.constant 0 : index
    %29 = vector.load %arg10[%c8, %c0_28] : memref<72x256xf32, #tpu.memory_space<vmem>>, vector<56x256xf32>
    %30 = arith.truncf %29 : vector<56x256xf32> to vector<56x256xbf16>
    %c2 = arith.constant 2 : index
    %c0_29 = arith.constant 0 : index
    %c0_30 = arith.constant 0 : index
    %31 = vector.load %arg5[%c2, %c0_29, %c0_30] : memref<4x256x128xbf16, #tpu.memory_space<vmem>>, vector<1x256x128xbf16>
    %32 = vector.shape_cast %31 : vector<1x256x128xbf16> to vector<256x128xbf16>
    %cst_31 = arith.constant dense<0.000000e+00> : vector<56x128xf32>
    %33 = tpu.matmul %30, %32, %cst_31 {dimension_numbers = #tpu.dot_dimension_numbers<[1], [0], [0], [1], [0, 0, 1, 1], [], []>} : vector<56x256xbf16>, vector<256x128xbf16>, vector<56x128xf32> -> vector<56x128xf32>
    %34 = arith.addf %28, %33 : vector<56x128xf32>
    %c9 = arith.constant 9 : index
    %c0_32 = arith.constant 0 : index
    %35 = vector.load %arg10[%c9, %c0_32] : memref<72x256xf32, #tpu.memory_space<vmem>>, vector<56x256xf32>
    %36 = arith.truncf %35 : vector<56x256xf32> to vector<56x256xbf16>
    %c3 = arith.constant 3 : index
    %c0_33 = arith.constant 0 : index
    %c0_34 = arith.constant 0 : index
    %37 = vector.load %arg5[%c3, %c0_33, %c0_34] : memref<4x256x128xbf16, #tpu.memory_space<vmem>>, vector<1x256x128xbf16>
    %38 = vector.shape_cast %37 : vector<1x256x128xbf16> to vector<256x128xbf16>
    %cst_35 = arith.constant dense<0.000000e+00> : vector<56x128xf32>
    %39 = tpu.matmul %36, %38, %cst_35 {dimension_numbers = #tpu.dot_dimension_numbers<[1], [0], [0], [1], [0, 0, 1, 1], [], []>} : vector<56x256xbf16>, vector<256x128xbf16>, vector<56x128xf32> -> vector<56x128xf32>
    %40 = arith.addf %34, %39 : vector<56x128xf32>
    %c0_36 = arith.constant 0 : index
    %c0_37 = arith.constant 0 : index
    %41 = vector.load %arg6[%c0_36, %c0_37] : memref<1x128xf32, #tpu.memory_space<vmem>>, vector<1x128xf32>
    %42 = vector.broadcast %41 : vector<1x128xf32> to vector<56x128xf32>
    %43 = arith.addf %40, %42 : vector<56x128xf32>
    %cst_38 = arith.constant 0.000000e+00 : f32
    %44 = vector.broadcast %cst_38 : f32 to vector<56x128xf32>
    %45 = arith.maximumf %43, %44 : vector<56x128xf32>
    %c0_39 = arith.constant 0 : index
    %c0_40 = arith.constant 0 : index
    %46 = vector.load %arg11[%c0_39, %c0_40] : memref<64x128xf32, #tpu.memory_space<vmem>>, vector<56x128xf32>
    tpu.vector_store %arg11[%c0_39, %c0_40], %45 {strides = array<i32>} : memref<64x128xf32, #tpu.memory_space<vmem>>, vector<56x128xf32>,
    %cst_41 = arith.constant 0.000000e+00 : f32
    %47 = vector.broadcast %cst_41 : f32 to vector<48x128xf32>
    %c0_42 = arith.constant 0 : index
    %c0_43 = arith.constant 0 : index
    %48 = vector.load %arg11[%c0_42, %c0_43] : memref<64x128xf32, #tpu.memory_space<vmem>>, vector<48x128xf32>
    %49 = arith.truncf %48 : vector<48x128xf32> to vector<48x128xbf16>
    %c0_44 = arith.constant 0 : index
    %c0_45 = arith.constant 0 : index
    %c0_46 = arith.constant 0 : index
    %50 = vector.load %arg7[%c0_44, %c0_45, %c0_46] : memref<4x128x128xbf16, #tpu.memory_space<vmem>>, vector<1x128x128xbf16>
    %51 = vector.shape_cast %50 : vector<1x128x128xbf16> to vector<128x128xbf16>
    %cst_47 = arith.constant dense<0.000000e+00> : vector<48x128xf32>
    %52 = tpu.matmul %49, %51, %cst_47 {dimension_numbers = #tpu.dot_dimension_numbers<[1], [0], [0], [1], [0, 0, 1, 1], [], []>} : vector<48x128xbf16>, vector<128x128xbf16>, vector<48x128xf32> -> vector<48x128xf32>
    %53 = arith.addf %47, %52 : vector<48x128xf32>
    %c1_48 = arith.constant 1 : index
    %c0_49 = arith.constant 0 : index
    %54 = vector.load %arg11[%c1_48, %c0_49] : memref<64x128xf32, #tpu.memory_space<vmem>>, vector<48x128xf32>
    %55 = arith.truncf %54 : vector<48x128xf32> to vector<48x128xbf16>
    %c1_50 = arith.constant 1 : index
    %c0_51 = arith.constant 0 : index
    %c0_52 = arith.constant 0 : index
    %56 = vector.load %arg7[%c1_50, %c0_51, %c0_52] : memref<4x128x128xbf16, #tpu.memory_space<vmem>>, vector<1x128x128xbf16>
    %57 = vector.shape_cast %56 : vector<1x128x128xbf16> to vector<128x128xbf16>
    %cst_53 = arith.constant dense<0.000000e+00> : vector<48x128xf32>
    %58 = tpu.matmul %55, %57, %cst_53 {dimension_numbers = #tpu.dot_dimension_numbers<[1], [0], [0], [1], [0, 0, 1, 1], [], []>} : vector<48x128xbf16>, vector<128x128xbf16>, vector<48x128xf32> -> vector<48x128xf32>
    %59 = arith.addf %53, %58 : vector<48x128xf32>
    %c8_54 = arith.constant 8 : index
    %c0_55 = arith.constant 0 : index
    %60 = vector.load %arg11[%c8_54, %c0_55] : memref<64x128xf32, #tpu.memory_space<vmem>>, vector<48x128xf32>
    %61 = arith.truncf %60 : vector<48x128xf32> to vector<48x128xbf16>
    %c2_56 = arith.constant 2 : index
    %c0_57 = arith.constant 0 : index
    %c0_58 = arith.constant 0 : index
    %62 = vector.load %arg7[%c2_56, %c0_57, %c0_58] : memref<4x128x128xbf16, #tpu.memory_space<vmem>>, vector<1x128x128xbf16>
    %63 = vector.shape_cast %62 : vector<1x128x128xbf16> to vector<128x128xbf16>
    %cst_59 = arith.constant dense<0.000000e+00> : vector<48x128xf32>
    %64 = tpu.matmul %61, %63, %cst_59 {dimension_numbers = #tpu.dot_dimension_numbers<[1], [0], [0], [1], [0, 0, 1, 1], [], []>} : vector<48x128xbf16>, vector<128x128xbf16>, vector<48x128xf32> -> vector<48x128xf32>
    %65 = arith.addf %59, %64 : vector<48x128xf32>
    %c9_60 = arith.constant 9 : index
    %c0_61 = arith.constant 0 : index
    %66 = vector.load %arg11[%c9_60, %c0_61] : memref<64x128xf32, #tpu.memory_space<vmem>>, vector<48x128xf32>
    %67 = arith.truncf %66 : vector<48x128xf32> to vector<48x128xbf16>
    %c3_62 = arith.constant 3 : index
    %c0_63 = arith.constant 0 : index
    %c0_64 = arith.constant 0 : index
    %68 = vector.load %arg7[%c3_62, %c0_63, %c0_64] : memref<4x128x128xbf16, #tpu.memory_space<vmem>>, vector<1x128x128xbf16>
    %69 = vector.shape_cast %68 : vector<1x128x128xbf16> to vector<128x128xbf16>
    %cst_65 = arith.constant dense<0.000000e+00> : vector<48x128xf32>
    %70 = tpu.matmul %67, %69, %cst_65 {dimension_numbers = #tpu.dot_dimension_numbers<[1], [0], [0], [1], [0, 0, 1, 1], [], []>} : vector<48x128xbf16>, vector<128x128xbf16>, vector<48x128xf32> -> vector<48x128xf32>
    %71 = arith.addf %65, %70 : vector<48x128xf32>
    %c0_66 = arith.constant 0 : index
    %c0_67 = arith.constant 0 : index
    %72 = vector.load %arg8[%c0_66, %c0_67] : memref<1x128xf32, #tpu.memory_space<vmem>>, vector<1x128xf32>
    %73 = vector.broadcast %72 : vector<1x128xf32> to vector<48x128xf32>
    %74 = arith.addf %71, %73 : vector<48x128xf32>
    %75 = arith.truncf %74 : vector<48x128xf32> to vector<48x128xbf16>
    %c0_68 = arith.constant 0 : index
    %c0_69 = arith.constant 0 : index
    %c0_70 = arith.constant 0 : index
    %76 = vector.load %arg9[%c0_68, %c0_69, %c0_70] : memref<1x48x128xbf16, #tpu.memory_space<vmem>>, vector<1x48x128xbf16>
    %77 = vector.shape_cast %76 : vector<1x48x128xbf16> to vector<48x128xbf16>
    %78 = vector.shape_cast %75 : vector<48x128xbf16> to vector<1x48x128xbf16>
    tpu.vector_store %arg9[%c0_68, %c0_69, %c0_70], %78 {strides = array<i32>} : memref<1x48x128xbf16, #tpu.memory_space<vmem>>, vector<1x48x128xbf16>,
    return
  }
  func.func @transform_0(%arg0: i32) -> (i32, i32, i32) {
    %c0_i32 = arith.constant 0 : i32
    %c0_i32_0 = arith.constant 0 : i32
    %c0_i32_1 = arith.constant 0 : i32
    return %arg0, %c0_i32, %c0_i32_0 : i32, i32, i32
  }
  func.func @transform_1(%arg0: i32) -> (i32, i32, i32) {
    %c0_i32 = arith.constant 0 : i32
    %c0_i32_0 = arith.constant 0 : i32
    %c0_i32_1 = arith.constant 0 : i32
    return %arg0, %c0_i32, %c0_i32_0 : i32, i32, i32
  }
  func.func @transform_2(%arg0: i32) -> (i32, i32) {
    %c0_i32 = arith.constant 0 : i32
    %c0_i32_0 = arith.constant 0 : i32
    %c0_i32_1 = arith.constant 0 : i32
    return %c0_i32, %c0_i32_0 : i32, i32
  }
  func.func @transform_3(%arg0: i32) -> (i32, i32) {
    %c0_i32 = arith.constant 0 : i32
    %c0_i32_0 = arith.constant 0 : i32
    %c0_i32_1 = arith.constant 0 : i32
    return %c0_i32, %c0_i32_0 : i32, i32
  }
  func.func @transform_4(%arg0: i32) -> (i32, i32, i32) {
    %c0_i32 = arith.constant 0 : i32
    %c0_i32_0 = arith.constant 0 : i32
    %c0_i32_1 = arith.constant 0 : i32
    %c0_i32_2 = arith.constant 0 : i32
    return %c0_i32, %c0_i32_0, %c0_i32_1 : i32, i32, i32
  }
  func.func @transform_5(%arg0: i32) -> (i32, i32) {
    %c0_i32 = arith.constant 0 : i32
    %c0_i32_0 = arith.constant 0 : i32
    %c0_i32_1 = arith.constant 0 : i32
    return %c0_i32, %c0_i32_0 : i32, i32
  }
  func.func @transform_6(%arg0: i32) -> (i32, i32, i32) {
    %c0_i32 = arith.constant 0 : i32
    %c0_i32_0 = arith.constant 0 : i32
    %c0_i32_1 = arith.constant 0 : i32
    %c0_i32_2 = arith.constant 0 : i32
    return %c0_i32, %c0_i32_0, %c0_i32_1 : i32, i32, i32
  }
  func.func @transform_7(%arg0: i32) -> (i32, i32) {
    %c0_i32 = arith.constant 0 : i32
    %c0_i32_0 = arith.constant 0 : i32
    %c0_i32_1 = arith.constant 0 : i32
    return %c0_i32, %c0_i32_0 : i32, i32
  }
  func.func @transform_8(%arg0: i32) -> (i32, i32, i32) {
    %c0_i32 = arith.constant 0 : i32
    %c0_i32_0 = arith.constant 0 : i32
    %c0_i32_1 = arith.constant 0 : i32
    return %arg0, %c0_i32, %c0_i32_0 : i32, i32, i32
  }
}

module attributes {stable_mosaic.version = 11 : i64} {
  func.func @_stage_kernel(%arg0: i32, %arg1: memref<1x144x32xbf16, #tpu.memory_space<vmem>>, %arg2: memref<1x144x64xbf16, #tpu.memory_space<vmem>>, %arg3: memref<32x64xbf16, #tpu.memory_space<vmem>>, %arg4: memref<1x64xf32, #tpu.memory_space<vmem>>, %arg5: memref<4x128x64xbf16, #tpu.memory_space<vmem>>, %arg6: memref<1x64xf32, #tpu.memory_space<vmem>>, %arg7: memref<4x64x128xbf16, #tpu.memory_space<vmem>>, %arg8: memref<1x128xf32, #tpu.memory_space<vmem>>, %arg9: memref<1x120x128xbf16, #tpu.memory_space<vmem>>, %arg10: memref<156x128xf32, #tpu.memory_space<vmem>>, %arg11: memref<144x64xf32, #tpu.memory_space<vmem>>) attributes {dimension_semantics = [#tpu.dimension_semantics<parallel>], iteration_bounds = array<i64: 2>, scalar_prefetch = 0 : i64, scratch_operands = 2 : i64, tpu.core_type = #tpu.core_type<tc>, window_params = [{transform_indices = @transform_0, window_bounds = array<i64: 1, 144, 32>}, {transform_indices = @transform_1, window_bounds = array<i64: 1, 144, 64>}, {pipeline_mode = #tpu.pipeline_mode<synchronous>, transform_indices = @transform_2, window_bounds = array<i64: 32, 64>}, {pipeline_mode = #tpu.pipeline_mode<synchronous>, transform_indices = @transform_3, window_bounds = array<i64: 1, 64>}, {pipeline_mode = #tpu.pipeline_mode<synchronous>, transform_indices = @transform_4, window_bounds = array<i64: 4, 128, 64>}, {pipeline_mode = #tpu.pipeline_mode<synchronous>, transform_indices = @transform_5, window_bounds = array<i64: 1, 64>}, {pipeline_mode = #tpu.pipeline_mode<synchronous>, transform_indices = @transform_6, window_bounds = array<i64: 4, 64, 128>}, {pipeline_mode = #tpu.pipeline_mode<synchronous>, transform_indices = @transform_7, window_bounds = array<i64: 1, 128>}, {transform_indices = @transform_8, window_bounds = array<i64: 1, 120, 128>}]} {
    %cst = arith.constant 0.000000e+00 : f32
    %0 = vector.broadcast %cst : f32 to vector<12x128xf32>
    %c144 = arith.constant 144 : index
    %c0 = arith.constant 0 : index
    %1 = vector.load %arg10[%c144, %c0] : memref<156x128xf32, #tpu.memory_space<vmem>>, vector<12x128xf32>
    tpu.vector_store %arg10[%c144, %c0], %0 {strides = array<i32>} : memref<156x128xf32, #tpu.memory_space<vmem>>, vector<12x128xf32>,
    %cst_0 = arith.constant 0.000000e+00 : f32
    %2 = vector.broadcast %cst_0 : f32 to vector<12x64xf32>
    %c132 = arith.constant 132 : index
    %c0_1 = arith.constant 0 : index
    %3 = vector.load %arg11[%c132, %c0_1] : memref<144x64xf32, #tpu.memory_space<vmem>>, vector<12x64xf32>
    tpu.vector_store %arg11[%c132, %c0_1], %2 {strides = array<i32>} : memref<144x64xf32, #tpu.memory_space<vmem>>, vector<12x64xf32>,
    %c0_2 = arith.constant 0 : index
    %c0_3 = arith.constant 0 : index
    %c0_4 = arith.constant 0 : index
    %4 = vector.load %arg1[%c0_2, %c0_3, %c0_4] : memref<1x144x32xbf16, #tpu.memory_space<vmem>>, vector<1x144x32xbf16>
    %5 = vector.shape_cast %4 : vector<1x144x32xbf16> to vector<144x32xbf16>
    %c0_5 = arith.constant 0 : index
    %c0_6 = arith.constant 0 : index
    %6 = vector.load %arg3[%c0_5, %c0_6] : memref<32x64xbf16, #tpu.memory_space<vmem>>, vector<32x64xbf16>
    %cst_7 = arith.constant dense<0.000000e+00> : vector<144x64xf32>
    %7 = tpu.matmul %5, %6, %cst_7 {dimension_numbers = #tpu.dot_dimension_numbers<[1], [0], [0], [1], [0, 0, 1, 1], [], []>} : vector<144x32xbf16>, vector<32x64xbf16>, vector<144x64xf32> -> vector<144x64xf32>
    %c0_8 = arith.constant 0 : index
    %c0_9 = arith.constant 0 : index
    %8 = vector.load %arg4[%c0_8, %c0_9] : memref<1x64xf32, #tpu.memory_space<vmem>>, vector<1x64xf32>
    %9 = vector.broadcast %8 : vector<1x64xf32> to vector<144x64xf32>
    %10 = arith.addf %7, %9 : vector<144x64xf32>
    %c0_10 = arith.constant 0 : index
    %c0_11 = arith.constant 0 : index
    %11 = vector.load %arg10[%c0_10, %c0_11] : memref<156x128xf32, #tpu.memory_space<vmem>>, vector<144x64xf32>
    tpu.vector_store %arg10[%c0_10, %c0_11], %10 {strides = array<i32>} : memref<156x128xf32, #tpu.memory_space<vmem>>, vector<144x64xf32>,
    %c0_12 = arith.constant 0 : index
    %c0_13 = arith.constant 0 : index
    %c0_14 = arith.constant 0 : index
    %12 = vector.load %arg2[%c0_12, %c0_13, %c0_14] : memref<1x144x64xbf16, #tpu.memory_space<vmem>>, vector<1x144x64xbf16>
    %13 = vector.shape_cast %12 : vector<1x144x64xbf16> to vector<144x64xbf16>
    %14 = arith.extf %13 : vector<144x64xbf16> to vector<144x64xf32>
    %c0_15 = arith.constant 0 : index
    %c64 = arith.constant 64 : index
    %15 = vector.load %arg10[%c0_15, %c64] : memref<156x128xf32, #tpu.memory_space<vmem>>, vector<144x64xf32>
    tpu.vector_store %arg10[%c0_15, %c64], %14 {strides = array<i32>} : memref<156x128xf32, #tpu.memory_space<vmem>>, vector<144x64xf32>,
    %cst_16 = arith.constant 0.000000e+00 : f32
    %16 = vector.broadcast %cst_16 : f32 to vector<132x64xf32>
    %c0_17 = arith.constant 0 : index
    %c0_18 = arith.constant 0 : index
    %17 = vector.load %arg10[%c0_17, %c0_18] : memref<156x128xf32, #tpu.memory_space<vmem>>, vector<132x128xf32>
    %18 = arith.truncf %17 : vector<132x128xf32> to vector<132x128xbf16>
    %c0_19 = arith.constant 0 : index
    %c0_20 = arith.constant 0 : index
    %c0_21 = arith.constant 0 : index
    %19 = vector.load %arg5[%c0_19, %c0_20, %c0_21] : memref<4x128x64xbf16, #tpu.memory_space<vmem>>, vector<1x128x64xbf16>
    %20 = vector.shape_cast %19 : vector<1x128x64xbf16> to vector<128x64xbf16>
    %cst_22 = arith.constant dense<0.000000e+00> : vector<132x64xf32>
    %21 = tpu.matmul %18, %20, %cst_22 {dimension_numbers = #tpu.dot_dimension_numbers<[1], [0], [0], [1], [0, 0, 1, 1], [], []>} : vector<132x128xbf16>, vector<128x64xbf16>, vector<132x64xf32> -> vector<132x64xf32>
    %22 = arith.addf %16, %21 : vector<132x64xf32>
    %c1 = arith.constant 1 : index
    %c0_23 = arith.constant 0 : index
    %23 = vector.load %arg10[%c1, %c0_23] : memref<156x128xf32, #tpu.memory_space<vmem>>, vector<132x128xf32>
    %24 = arith.truncf %23 : vector<132x128xf32> to vector<132x128xbf16>
    %c1_24 = arith.constant 1 : index
    %c0_25 = arith.constant 0 : index
    %c0_26 = arith.constant 0 : index
    %25 = vector.load %arg5[%c1_24, %c0_25, %c0_26] : memref<4x128x64xbf16, #tpu.memory_space<vmem>>, vector<1x128x64xbf16>
    %26 = vector.shape_cast %25 : vector<1x128x64xbf16> to vector<128x64xbf16>
    %cst_27 = arith.constant dense<0.000000e+00> : vector<132x64xf32>
    %27 = tpu.matmul %24, %26, %cst_27 {dimension_numbers = #tpu.dot_dimension_numbers<[1], [0], [0], [1], [0, 0, 1, 1], [], []>} : vector<132x128xbf16>, vector<128x64xbf16>, vector<132x64xf32> -> vector<132x64xf32>
    %28 = arith.addf %22, %27 : vector<132x64xf32>
    %c12 = arith.constant 12 : index
    %c0_28 = arith.constant 0 : index
    %29 = vector.load %arg10[%c12, %c0_28] : memref<156x128xf32, #tpu.memory_space<vmem>>, vector<132x128xf32>
    %30 = arith.truncf %29 : vector<132x128xf32> to vector<132x128xbf16>
    %c2 = arith.constant 2 : index
    %c0_29 = arith.constant 0 : index
    %c0_30 = arith.constant 0 : index
    %31 = vector.load %arg5[%c2, %c0_29, %c0_30] : memref<4x128x64xbf16, #tpu.memory_space<vmem>>, vector<1x128x64xbf16>
    %32 = vector.shape_cast %31 : vector<1x128x64xbf16> to vector<128x64xbf16>
    %cst_31 = arith.constant dense<0.000000e+00> : vector<132x64xf32>
    %33 = tpu.matmul %30, %32, %cst_31 {dimension_numbers = #tpu.dot_dimension_numbers<[1], [0], [0], [1], [0, 0, 1, 1], [], []>} : vector<132x128xbf16>, vector<128x64xbf16>, vector<132x64xf32> -> vector<132x64xf32>
    %34 = arith.addf %28, %33 : vector<132x64xf32>
    %c13 = arith.constant 13 : index
    %c0_32 = arith.constant 0 : index
    %35 = vector.load %arg10[%c13, %c0_32] : memref<156x128xf32, #tpu.memory_space<vmem>>, vector<132x128xf32>
    %36 = arith.truncf %35 : vector<132x128xf32> to vector<132x128xbf16>
    %c3 = arith.constant 3 : index
    %c0_33 = arith.constant 0 : index
    %c0_34 = arith.constant 0 : index
    %37 = vector.load %arg5[%c3, %c0_33, %c0_34] : memref<4x128x64xbf16, #tpu.memory_space<vmem>>, vector<1x128x64xbf16>
    %38 = vector.shape_cast %37 : vector<1x128x64xbf16> to vector<128x64xbf16>
    %cst_35 = arith.constant dense<0.000000e+00> : vector<132x64xf32>
    %39 = tpu.matmul %36, %38, %cst_35 {dimension_numbers = #tpu.dot_dimension_numbers<[1], [0], [0], [1], [0, 0, 1, 1], [], []>} : vector<132x128xbf16>, vector<128x64xbf16>, vector<132x64xf32> -> vector<132x64xf32>
    %40 = arith.addf %34, %39 : vector<132x64xf32>
    %c0_36 = arith.constant 0 : index
    %c0_37 = arith.constant 0 : index
    %41 = vector.load %arg6[%c0_36, %c0_37] : memref<1x64xf32, #tpu.memory_space<vmem>>, vector<1x64xf32>
    %42 = vector.broadcast %41 : vector<1x64xf32> to vector<132x64xf32>
    %43 = arith.addf %40, %42 : vector<132x64xf32>
    %cst_38 = arith.constant 0.000000e+00 : f32
    %44 = vector.broadcast %cst_38 : f32 to vector<132x64xf32>
    %45 = arith.maximumf %43, %44 : vector<132x64xf32>
    %c0_39 = arith.constant 0 : index
    %c0_40 = arith.constant 0 : index
    %46 = vector.load %arg11[%c0_39, %c0_40] : memref<144x64xf32, #tpu.memory_space<vmem>>, vector<132x64xf32>
    tpu.vector_store %arg11[%c0_39, %c0_40], %45 {strides = array<i32>} : memref<144x64xf32, #tpu.memory_space<vmem>>, vector<132x64xf32>,
    %cst_41 = arith.constant 0.000000e+00 : f32
    %47 = vector.broadcast %cst_41 : f32 to vector<120x128xf32>
    %c0_42 = arith.constant 0 : index
    %c0_43 = arith.constant 0 : index
    %48 = vector.load %arg11[%c0_42, %c0_43] : memref<144x64xf32, #tpu.memory_space<vmem>>, vector<120x64xf32>
    %49 = arith.truncf %48 : vector<120x64xf32> to vector<120x64xbf16>
    %c0_44 = arith.constant 0 : index
    %c0_45 = arith.constant 0 : index
    %c0_46 = arith.constant 0 : index
    %50 = vector.load %arg7[%c0_44, %c0_45, %c0_46] : memref<4x64x128xbf16, #tpu.memory_space<vmem>>, vector<1x64x128xbf16>
    %51 = vector.shape_cast %50 : vector<1x64x128xbf16> to vector<64x128xbf16>
    %cst_47 = arith.constant dense<0.000000e+00> : vector<120x128xf32>
    %52 = tpu.matmul %49, %51, %cst_47 {dimension_numbers = #tpu.dot_dimension_numbers<[1], [0], [0], [1], [0, 0, 1, 1], [], []>} : vector<120x64xbf16>, vector<64x128xbf16>, vector<120x128xf32> -> vector<120x128xf32>
    %53 = arith.addf %47, %52 : vector<120x128xf32>
    %c1_48 = arith.constant 1 : index
    %c0_49 = arith.constant 0 : index
    %54 = vector.load %arg11[%c1_48, %c0_49] : memref<144x64xf32, #tpu.memory_space<vmem>>, vector<120x64xf32>
    %55 = arith.truncf %54 : vector<120x64xf32> to vector<120x64xbf16>
    %c1_50 = arith.constant 1 : index
    %c0_51 = arith.constant 0 : index
    %c0_52 = arith.constant 0 : index
    %56 = vector.load %arg7[%c1_50, %c0_51, %c0_52] : memref<4x64x128xbf16, #tpu.memory_space<vmem>>, vector<1x64x128xbf16>
    %57 = vector.shape_cast %56 : vector<1x64x128xbf16> to vector<64x128xbf16>
    %cst_53 = arith.constant dense<0.000000e+00> : vector<120x128xf32>
    %58 = tpu.matmul %55, %57, %cst_53 {dimension_numbers = #tpu.dot_dimension_numbers<[1], [0], [0], [1], [0, 0, 1, 1], [], []>} : vector<120x64xbf16>, vector<64x128xbf16>, vector<120x128xf32> -> vector<120x128xf32>
    %59 = arith.addf %53, %58 : vector<120x128xf32>
    %c12_54 = arith.constant 12 : index
    %c0_55 = arith.constant 0 : index
    %60 = vector.load %arg11[%c12_54, %c0_55] : memref<144x64xf32, #tpu.memory_space<vmem>>, vector<120x64xf32>
    %61 = arith.truncf %60 : vector<120x64xf32> to vector<120x64xbf16>
    %c2_56 = arith.constant 2 : index
    %c0_57 = arith.constant 0 : index
    %c0_58 = arith.constant 0 : index
    %62 = vector.load %arg7[%c2_56, %c0_57, %c0_58] : memref<4x64x128xbf16, #tpu.memory_space<vmem>>, vector<1x64x128xbf16>
    %63 = vector.shape_cast %62 : vector<1x64x128xbf16> to vector<64x128xbf16>
    %cst_59 = arith.constant dense<0.000000e+00> : vector<120x128xf32>
    %64 = tpu.matmul %61, %63, %cst_59 {dimension_numbers = #tpu.dot_dimension_numbers<[1], [0], [0], [1], [0, 0, 1, 1], [], []>} : vector<120x64xbf16>, vector<64x128xbf16>, vector<120x128xf32> -> vector<120x128xf32>
    %65 = arith.addf %59, %64 : vector<120x128xf32>
    %c13_60 = arith.constant 13 : index
    %c0_61 = arith.constant 0 : index
    %66 = vector.load %arg11[%c13_60, %c0_61] : memref<144x64xf32, #tpu.memory_space<vmem>>, vector<120x64xf32>
    %67 = arith.truncf %66 : vector<120x64xf32> to vector<120x64xbf16>
    %c3_62 = arith.constant 3 : index
    %c0_63 = arith.constant 0 : index
    %c0_64 = arith.constant 0 : index
    %68 = vector.load %arg7[%c3_62, %c0_63, %c0_64] : memref<4x64x128xbf16, #tpu.memory_space<vmem>>, vector<1x64x128xbf16>
    %69 = vector.shape_cast %68 : vector<1x64x128xbf16> to vector<64x128xbf16>
    %cst_65 = arith.constant dense<0.000000e+00> : vector<120x128xf32>
    %70 = tpu.matmul %67, %69, %cst_65 {dimension_numbers = #tpu.dot_dimension_numbers<[1], [0], [0], [1], [0, 0, 1, 1], [], []>} : vector<120x64xbf16>, vector<64x128xbf16>, vector<120x128xf32> -> vector<120x128xf32>
    %71 = arith.addf %65, %70 : vector<120x128xf32>
    %c0_66 = arith.constant 0 : index
    %c0_67 = arith.constant 0 : index
    %72 = vector.load %arg8[%c0_66, %c0_67] : memref<1x128xf32, #tpu.memory_space<vmem>>, vector<1x128xf32>
    %73 = vector.broadcast %72 : vector<1x128xf32> to vector<120x128xf32>
    %74 = arith.addf %71, %73 : vector<120x128xf32>
    %75 = arith.truncf %74 : vector<120x128xf32> to vector<120x128xbf16>
    %c0_68 = arith.constant 0 : index
    %c0_69 = arith.constant 0 : index
    %c0_70 = arith.constant 0 : index
    %76 = vector.load %arg9[%c0_68, %c0_69, %c0_70] : memref<1x120x128xbf16, #tpu.memory_space<vmem>>, vector<1x120x128xbf16>
    %77 = vector.shape_cast %76 : vector<1x120x128xbf16> to vector<120x128xbf16>
    %78 = vector.shape_cast %75 : vector<120x128xbf16> to vector<1x120x128xbf16>
    tpu.vector_store %arg9[%c0_68, %c0_69, %c0_70], %78 {strides = array<i32>} : memref<1x120x128xbf16, #tpu.memory_space<vmem>>, vector<1x120x128xbf16>,
    return
  }
  func.func @transform_0(%arg0: i32) -> (i32, i32, i32) {
    %c0_i32 = arith.constant 0 : i32
    %c0_i32_0 = arith.constant 0 : i32
    %c0_i32_1 = arith.constant 0 : i32
    return %arg0, %c0_i32, %c0_i32_0 : i32, i32, i32
  }
  func.func @transform_1(%arg0: i32) -> (i32, i32, i32) {
    %c0_i32 = arith.constant 0 : i32
    %c0_i32_0 = arith.constant 0 : i32
    %c0_i32_1 = arith.constant 0 : i32
    return %arg0, %c0_i32, %c0_i32_0 : i32, i32, i32
  }
  func.func @transform_2(%arg0: i32) -> (i32, i32) {
    %c0_i32 = arith.constant 0 : i32
    %c0_i32_0 = arith.constant 0 : i32
    %c0_i32_1 = arith.constant 0 : i32
    return %c0_i32, %c0_i32_0 : i32, i32
  }
  func.func @transform_3(%arg0: i32) -> (i32, i32) {
    %c0_i32 = arith.constant 0 : i32
    %c0_i32_0 = arith.constant 0 : i32
    %c0_i32_1 = arith.constant 0 : i32
    return %c0_i32, %c0_i32_0 : i32, i32
  }
  func.func @transform_4(%arg0: i32) -> (i32, i32, i32) {
    %c0_i32 = arith.constant 0 : i32
    %c0_i32_0 = arith.constant 0 : i32
    %c0_i32_1 = arith.constant 0 : i32
    %c0_i32_2 = arith.constant 0 : i32
    return %c0_i32, %c0_i32_0, %c0_i32_1 : i32, i32, i32
  }
  func.func @transform_5(%arg0: i32) -> (i32, i32) {
    %c0_i32 = arith.constant 0 : i32
    %c0_i32_0 = arith.constant 0 : i32
    %c0_i32_1 = arith.constant 0 : i32
    return %c0_i32, %c0_i32_0 : i32, i32
  }
  func.func @transform_6(%arg0: i32) -> (i32, i32, i32) {
    %c0_i32 = arith.constant 0 : i32
    %c0_i32_0 = arith.constant 0 : i32
    %c0_i32_1 = arith.constant 0 : i32
    %c0_i32_2 = arith.constant 0 : i32
    return %c0_i32, %c0_i32_0, %c0_i32_1 : i32, i32, i32
  }
  func.func @transform_7(%arg0: i32) -> (i32, i32) {
    %c0_i32 = arith.constant 0 : i32
    %c0_i32_0 = arith.constant 0 : i32
    %c0_i32_1 = arith.constant 0 : i32
    return %c0_i32, %c0_i32_0 : i32, i32
  }
  func.func @transform_8(%arg0: i32) -> (i32, i32, i32) {
    %c0_i32 = arith.constant 0 : i32
    %c0_i32_0 = arith.constant 0 : i32
    %c0_i32_1 = arith.constant 0 : i32
    return %arg0, %c0_i32, %c0_i32_0 : i32, i32, i32
  }
}

</mosaic_0001>

<bundles_post_ra>
// kernel: decoder_forward.2
= control target key start
LH: loop header
LB: loop body
LE: loop exit
PB: predicated region body
PF: predicated region fallthrough
CT: control target
= control target key end

     0   :  { %s2735_s27 = smov 0   ;;  %s3286_s0 = inlined_call_operand.vmem [shape: bf16[2,64,64], index: 0, kind: input, shape index: {}]   ;;  %s3287_s1 = inlined_call_operand.vmem [shape: bf16[2,64,128], index: 1, kind: input, shape index: {}]   ;;  %s3288_s2 = inlined_call_operand.vmem [shape: bf16[64,128], index: 2, kind: input, shape index: {}]   ;;  %s3289_s3 = inlined_call_operand.vmem [shape: f32[1,128], index: 3, kind: input, shape index: {}]   ;;  %s3290_s4 = inlined_call_operand.vmem [shape: bf16[4,256,128], index: 4, kind: input, shape index: {}]   ;;  %s3291_s5 = inlined_call_operand.vmem [shape: f32[1,128], index: 5, kind: input, shape index: {}]   ;;  %s3292_s6 = inlined_call_operand.vmem [shape: bf16[4,128,128], index: 6, kind: input, shape index: {}]   ;;  %s3293_s7 = inlined_call_operand.vmem [shape: f32[1,128], index: 7, kind: input, shape index: {}]   ;;  %s3294_s8 = inlined_call_operand.vmem [shape: bf16[2,48,128], index: 8, kind: output, shape index: {}]  }
   0x1 LB: > { %s1943_s28 = sadd.s32 4294967295, %s2687_s27   ;;  %p1947_p0 = scmp.ge.s32.totalorder %s2687_s27, 1  ;;  %s2687_s27 = sphi %s2735_s27, %s18_s27  }
   0x2   : > { %p272_p1 = scmp.lt.s32.totalorder %s2687_s27, 3 }
   0x4   : > { %p273_p2 = pnand %p1947_p0, %p272_p1 }
   0x5   : > { %p311_p3 = scmp.lt.s32.totalorder (!%p273_p2), %s1943_s28, 1 }
   0x6   : > { %276 = sbr.rel (%p273_p2) target bundleno = 593 (0x251), region = 52 }
   0xb   : > { %v2528_v0 = vld [vmem:[%s3288_s2 + $0x18] sm:$0xff]  ;;  %v2527_v2 = vld [vmem:[%s3288_s2 + $0x10] sm:$0xff]  ;;  %s3296_s28 = smov (!%p311_p3, %s1943_s28), 1  ;;  %v2526_v5 = vld [vmem:[%s3288_s2 + $0x8] sm:$0xff]  ;;  %vm394_vm0 = vcmask 523264   ;;  %v2689_v61 = vmov 0.0  }
   0xc   : > { %v2536_v1 = vld [vmem:[%s3290_s4 + $0x38] sm:$0xff]  ;;  %411 = vmatpush.bf16.msra.mxu0 %v2528_v0  ;;  %2661 = vmatpush.bf16.msra.mxu1 %v2528_v0  ;;  %v2535_v4 = vld [vmem:[%s3290_s4 + $0x30] sm:$0xff]  ;;  %s2519_s17 = sshll.u32 %s3296_s28, 5  ;;  %v2534_v9 = vld [vmem:[%s3290_s4 + $0x28] sm:$0xff]  ;;  %vm563_vm1 = vsmask.f32 7424 }
   0xd   : > { %v2560_v3 = vld [vmem:[%s3290_s4 + $0xf8] sm:$0xff]  ;;  %882 = vmatpush.bf16.msra.mxu3 %v2536_v1  ;;  %s2764_s20 = scalar_lea.vmem %s3287_s1, %s2519_s17  ;;  %v2525_v14 = vld [vmem:[%s3288_s2] sm:$0xff]  ;;  %s315_s9 = scalar_lea.vmem %s3286_s0, %s2519_s17  ;;  %v2543_v25 = vld [vmem:[%s3290_s4 + $0x70] sm:$0xff]  ;;  %327 = vst [vmem:[#allocation2 + $0x80] sm:$0xff] %v2689_v61 }
   0xe   : > { %758 = vmatpush.bf16.msra.mxu2 %v2560_v3  ;;  %v2626_v6 = vld [vmem:[%s2764_s20] sm:$0xff]   ;;  %v2771_v7 = vld [vmem:[%s2764_s20 + $0x8] sm:$0xff]   ;;  %v2779_v11 = vld [vmem:[%s2764_s20 + $0x10] sm:$0xff]   ;;  %328 = vst [vmem:[#allocation2 + $0x50] sm:$0xff] %v2689_v61  ;;  %s2665_s23 = smul.u32 24, %s3296_s28 }
   0xf   : > { %v2627_v8 = vunpack.c.l.bf16 %v2626_v6  ;;  %v2776_v10 = vunpack.c.h.bf16 %v2626_v6  ;;  %v2631_v12 = vunpack.c.l.bf16 %v2771_v7  ;;  %v2658_v13 = vld [vmem:[%s2764_s20 + $0x18] sm:$0xff]   ;;  %v2632_v15 = vunpack.c.h.bf16 %v2771_v7  ;;  %v2521_v20 = vld [vmem:[%s315_s9] sm:$0xff]  ;;  %v2523_v22 = vld [vmem:[%s315_s9 + $0x10] sm:$0xff]  ;;  %329 = vst [vmem:[#allocation3 + $0x38] sm:$0xff] %v2689_v61 }
  0x10   : > { %412 = vmatpush.bf16.msra.mxu0 %v2527_v2  ;;  %2662 = vmatpush.bf16.msra.mxu1 %v2527_v2  ;;  %v2635_v16 = vunpack.c.l.bf16 %v2779_v11  ;;  %v2544_v17 = vld [vmem:[%s3290_s4 + $0x78] sm:$0xff]  ;;  %v2636_v18 = vunpack.c.h.bf16 %v2779_v11  ;;  %v2796_v19 = vunpack.c.h.bf16 %v2658_v13  ;;  %v2798_v21 = vunpack.c.l.bf16 %v2658_v13  ;;  %v2522_v23 = vld [vmem:[%s315_s9 + $0x8] sm:$0xff]  ;;  %v2559_v26 = vld [vmem:[%s3290_s4 + $0xf0] sm:$0xff]  ;;  %s3278_s26 = scalar_lea.vmem %s3294_s8, %s2665_s23 }
  0x11   : > { %883 = vmatpush.bf16.msra.mxu3 %v2535_v4  ;;  %460 = vst [vmem:[#allocation2 + $0x8] sm:$0xff] %v2627_v8  ;;  %v2524_v24 = vld [vmem:[%s315_s9 + $0x18] sm:$0xff]  ;;  %v2533_v27 = vld [vmem:[%s3290_s4 + $0x20] sm:$0xff]  ;;  %v2542_v28 = vld [vmem:[%s3290_s4 + $0x68] sm:$0xff] }
  0x12   : > { %461 = vst [vmem:[#allocation2 + $0x30] sm:$0xff] %v2776_v10  ;;  %759 = vmatpush.bf16.msra.mxu2 %v2559_v26  ;;  %v2558_v29 = vld [vmem:[%s3290_s4 + $0xe8] sm:$0xff]  ;;  %v2532_v30 = vld [vmem:[%s3290_s4 + $0x18] sm:$0xff]  ;;  %v2541_v31 = vld [vmem:[%s3290_s4 + $0x60] sm:$0xff] }
  0x13   : > { %467 = vst [vmem:[#allocation2 + $0x28] sm:$0xff] %v2796_v19  ;;  %v2557_v32 = vld [vmem:[%s3290_s4 + $0xe0] sm:$0xff]  ;;  %v2531_v33 = vld [vmem:[%s3290_s4 + $0x10] sm:$0xff]  ;;  %v2552_v34 = vld [vmem:[%s3290_s4 + $0xb8] sm:$0xff] }
  0x14   : > { %413 = vmatpush.bf16.msra.mxu0 %v2526_v5  ;;  %2663 = vmatpush.bf16.msra.mxu1 %v2526_v5  ;;  %v2540_v35 = vld [vmem:[%s3290_s4 + $0x58] sm:$0xff]  ;;  %v2530_v37 = vld [vmem:[%s3290_s4 + $0x8] sm:$0xff]  ;;  %v2551_v38 = vld [vmem:[%s3290_s4 + $0xb0] sm:$0xff] }
  0x15   : > { %884 = vmatpush.bf16.msra.mxu3 %v2534_v9  ;;  %v2556_v36 = vld [vmem:[%s3290_s4 + $0xd8] sm:$0xff]  ;;  %v2539_v39 = vld [vmem:[%s3290_s4 + $0x50] sm:$0xff]  ;;  %v2529_v41 = vld [vmem:[%s3290_s4] sm:$0xff] }
  0x16   : > { %760 = vmatpush.bf16.msra.mxu2 %v2558_v29  ;;  %v2555_v40 = vld [vmem:[%s3290_s4 + $0xd0] sm:$0xff]  ;;  %v2550_v42 = vld [vmem:[%s3290_s4 + $0xa8] sm:$0xff]  ;;  %v2549_v47 = vld [vmem:[%s3290_s4 + $0xa0] sm:$0xff] }
  0x17   : > { %v2538_v43 = vld [vmem:[%s3290_s4 + $0x48] sm:$0xff]  ;;  %v2537_v50 = vld [vmem:[%s3290_s4 + $0x40] sm:$0xff]  ;;  %v2548_v55 = vld [vmem:[%s3290_s4 + $0x98] sm:$0xff] }
  0x18   : > { %414 = vmatpush.bf16.msra.mxu0 %v2525_v14  ;;  %2664 = vmatpush.bf16.msra.mxu1 %v2525_v14  ;;  %v523_v44 = vld [vmem:[#allocation2 + $0x8] sm:$0xfe]  ;;  %v2553_v51 = vld [vmem:[%s3290_s4 + $0xc0] sm:$0xff]  ;;  %v2547_v60 = vld [vmem:[%s3290_s4 + $0x90] sm:$0xff] }
  0x19   : > { %885 = vmatpush.bf16.msra.mxu3 %v2533_v27  ;;  %v2554_v45 = vld [vmem:[%s3290_s4 + $0xc8] sm:$0xff]  ;;  %v527_v46 = vpack.c.bf16 %v2776_v10, %v523_v44  ;;  %v2676_v56 = vld [vmem:[%s2764_s20] sm:$0xff]  ;;  %v2576_v63 = vld [vmem:[%s3290_s4 + $0x178] sm:$0xff] }
  0x1a   : > { %761 = vmatpush.bf16.msra.mxu2 %v2557_v32  ;;  %v2677_v48 = vld [vmem:[%s2764_s20 + $0x8] sm:$0xff]  ;;  %v2889_v0 = vld [vmem:[%s3289_s3] ss:$0 sm:$0xff]  ;;  %v2584_v2 = vld [vmem:[%s3290_s4 + $0x1b8] sm:$0xff] }
  0x1b   : > { %1985 = vmatmul.msk.bf16.vlgmr.msra.gmra.mxu0 %vm394_vm0, %v2521_v20  ;;  %1987 = vmatmul.msk.bf16.vlgmr.msra.gmra.mxu1 %vm394_vm0, %v2523_v22  ;;  %v579_v49 = vshll.u32 %v527_v46, 16  ;;  %v577_v52 = vshrl.u32 %v527_v46, 16  ;;  %v584_v54 = vshll.u32 %v2677_v48, 16  ;;  %v2546_v62 = vld [vmem:[%s3290_s4 + $0x88] sm:$0xff]  ;;  %v2545_v1 = vld [vmem:[%s3290_s4 + $0x80] sm:$0xff]  ;;  %v2678_v3 = vld [vmem:[%s2764_s20 + $0x10] sm:$0xff] }
  0x1c   : > { %910 = vmatpush.bf16.msrb.mxu0 %v2544_v17  ;;  %730 = vmatpush.bf16.msrb.mxu1 %v2552_v34  ;;  %v596_v6 = vshrl.u32 %v2677_v48, 16  ;;  %v600_v8 = vshll.u32 %v2678_v3, 16  ;;  %v2568_v14 = vld [vmem:[%s3290_s4 + $0x138] sm:$0xff]  ;;  %v2575_v22 = vld [vmem:[%s3290_s4 + $0x170] sm:$0xff]  ;;  %v2574_v27 = vld [vmem:[%s3290_s4 + $0x168] sm:$0xff] }
  0x1d   : > { %886 = vmatpush.bf16.msra.mxu3 %v2532_v30  ;;  %v581_v53 = vrot.slane %v579_v49, 1  ;;  %v586_v58 = vrot.slane %v584_v54, 1  ;;  %v2567_v26 = vld [vmem:[%s3290_s4 + $0x130] sm:$0xff]  ;;  %v2582_v34 = vld [vmem:[%s3290_s4 + $0x1a8] sm:$0xff]  ;;  %v2565_v54 = vld [vmem:[%s3290_s4 + $0x120] sm:$0xff] }
  0x1e   : > { %762 = vmatpush.bf16.msra.mxu2 %v2556_v36  ;;  %v602_v20 = vrot.slane %v600_v8, 1  ;;  %v2566_v44 = vld [vmem:[%s3290_s4 + $0x128] sm:$0xff]  ;;  %v1154_v61 = vld [vmem:[#allocation2 + $0x80] sm:$0x1] }
  0x1f   : > { %v582_v57 = vor.u32 %v581_v53, %v577_v52  ;;  %v598_v17 = vor.u32 %v596_v6, %v586_v58 }
  0x20   : > { %911 = vmatpush.bf16.msrb.mxu0 %v2543_v25  ;;  %731 = vmatpush.bf16.msrb.mxu1 %v2551_v38 }
  0x21   : > { %887 = vmatpush.bf16.msra.mxu3 %v2531_v33  ;;  %v587_v59 = vsel %vm563_vm1, %v582_v57, %v586_v58  ;;  %v603_v25 = vsel %vm563_vm1, %v598_v17, %v602_v20 }
  0x22   : > { %763 = vmatpush.bf16.msra.mxu2 %v2555_v40  ;;  %v612_v40 = vshrl.u32 %v2678_v3, 16 }
  0x24   : > { %912 = vmatpush.bf16.msrb.mxu0 %v2542_v28  ;;  %732 = vmatpush.bf16.msrb.mxu1 %v2550_v42  ;;  %v2591_v28 = vld [vmem:[%s3290_s4 + $0x1f0] sm:$0xff] }
  0x25   : > { %888 = vmatpush.bf16.msra.mxu3 %v2530_v37 }
  0x26   : > { %764 = vmatpush.bf16.msra.mxu2 %v2554_v45  ;;  %v614_v45 = vor.u32 %v612_v40, %v602_v20  ;;  %v2563_v40 = vld [vmem:[%s3290_s4 + $0x110] sm:$0xff] }
  0x28   : > { %913 = vmatpush.bf16.msrb.mxu0 %v2541_v31  ;;  %733 = vmatpush.bf16.msrb.mxu1 %v2549_v47  ;;  %v2573_v47 = vld [vmem:[%s3290_s4 + $0x160] sm:$0xff] }
  0x29   : > { %889 = vmatpush.bf16.msra.mxu3 %v2529_v41 }
  0x2a   : > { %765 = vmatpush.bf16.msra.mxu2 %v2553_v51  ;;  %v2581_v51 = vld [vmem:[%s3290_s4 + $0x1a0] sm:$0xff] }
  0x2b   : > { %1986 = vmatmul.msk.bf16.gmra.mxu0 %vm394_vm0, %v2522_v23  ;;  %1988 = vmatmul.msk.bf16.gmra.mxu1 %vm394_vm0, %v2524_v24  ;;  %v2592_v23 = vld [vmem:[%s3290_s4 + $0x1f8] sm:$0xff]  ;;  %v2583_v24 = vld [vmem:[%s3290_s4 + $0x1b0] sm:$0xff] }
  0x2c   : > { %914 = vmatpush.bf16.msrb.mxu0 %v2540_v35  ;;  %734 = vmatpush.bf16.msrb.mxu1 %v2548_v55  ;;  %v525_v35 = vld [vmem:[#allocation2 + $0x28] sm:$0x1]  ;;  %v2572_v55 = vld [vmem:[%s3290_s4 + $0x158] sm:$0xff] }
  0x2d   : > { %766 = vmatmul.bf16.vlgmr.msra.gmra.mxu2 %v587_v59  ;;  %1363 = vmatpush.bf16.msrb.mxu3 %v2584_v2  ;;  %v2936_v36 = vpack.c.bf16 %v525_v35, %v2798_v21  ;;  %v2588_v35 = vld [vmem:[%s3290_s4 + $0x1d8] sm:$0xff] }
  0x2e   : > { %1105 = vmatpush.bf16.msrb.mxu2 %v2576_v63 }
  0x2f   : > { %v616_v41 = vshll.u32 %v2936_v36, 16 }
  0x30   : > { %915 = vmatpush.bf16.msrb.mxu0 %v2539_v39  ;;  %735 = vmatpush.bf16.msrb.mxu1 %v2547_v60 }
  0x31   : > { %1364 = vmatpush.bf16.msrb.mxu3 %v2583_v24  ;;  %v618_v46 = vrot.slane %v616_v41, 1 }
  0x32   : > { %1106 = vmatpush.bf16.msrb.mxu2 %v2575_v22 }
  0x33   : > { %v619_v53 = vsel %vm563_vm1, %v614_v45, %v618_v46  ;;  %v2570_v45 = vld [vmem:[%s3290_s4 + $0x148] sm:$0xff] }
  0x34   : > { %916 = vmatpush.bf16.msrb.mxu0 %v2538_v43  ;;  %736 = vmatpush.bf16.msrb.mxu1 %v2546_v62 }
  0x35   : > { %1365 = vmatpush.bf16.msrb.mxu3 %v2582_v34  ;;  %v2571_v34 = vld [vmem:[%s3290_s4 + $0x150] sm:$0xff] }
  0x36   : > { %1107 = vmatpush.bf16.msrb.mxu2 %v2574_v27 }
  0x38   : > { %917 = vmatpush.bf16.msrb.mxu0 %v2537_v50  ;;  %737 = vmatpush.bf16.msrb.mxu1 %v2545_v1 }
  0x39   : > { %1366 = vmatpush.bf16.msrb.mxu3 %v2581_v51 }
  0x3a   : > { %1108 = vmatpush.bf16.msrb.mxu2 %v2573_v47  ;;  %v2577_v47 = vld [vmem:[%s3290_s4 + $0x180] sm:$0xff] }
  0x3b   : > { %918 = vmatmul.bf16.vlgmr.msrb.gmra.mxu0 %v2676_v56  ;;  %v2589_v56 = vld [vmem:[%s3290_s4 + $0x1e0] sm:$0xff] }
  0x3c   : > { %1077 = vmatpush.bf16.msra.mxu1 %v2568_v14  ;;  %1391 = vmatpush.bf16.msra.mxu0 %v2592_v23 }
  0x3d   : > { %771 = vmatmul.bf16.gmra.mxu2 %v603_v25 }
  0x3e   : > { %1109 = vmatpush.bf16.msrb.mxu2 %v2572_v55  ;;  %v2569_v55 = vld [vmem:[%s3290_s4 + $0x140] sm:$0xff] }
  0x40   : > { %1078 = vmatpush.bf16.msra.mxu1 %v2567_v26  ;;  %1392 = vmatpush.bf16.msra.mxu0 %v2591_v28  ;;  %v2579_v28 = vld [vmem:[%s3290_s4 + $0x190] sm:$0xff] }
  0x42   : > { %1110 = vmatpush.bf16.msrb.mxu2 %v2571_v34 }
  0x44   : > { %1079 = vmatpush.bf16.msra.mxu1 %v2566_v44  ;;  %v2587_v44 = vld [vmem:[%s3290_s4 + $0x1d0] sm:$0xff] }
  0x46   : > { %1111 = vmatpush.bf16.msrb.mxu2 %v2570_v45 }
  0x48   : > { %1080 = vmatpush.bf16.msra.mxu1 %v2565_v54 }
  0x4a   : > { %1112 = vmatpush.bf16.msrb.mxu2 %v2569_v55 }
  0x4b   : > { %923 = vmatmul.bf16.gmra.mxu0 %v2677_v48  ;;  %v2590_v48 = vld [vmem:[%s3290_s4 + $0x1e8] sm:$0xff] }
  0x4c   : > { %1393 = vmatpush.bf16.msra.mxu0 %v2590_v48  ;;  %v2586_v48 = vld [vmem:[%s3290_s4 + $0x1c8] sm:$0xff] }
  0x4d   : > { %776 = vmatmul.bf16.gmra.mxu2 %v619_v53  ;;  %v1141_v53 = vld [vmem:[#allocation2 + $0x30] sm:$0xfe] }
  0x4e   : > { %v1157_v54 = vpack.c.bf16 %v2631_v12, %v1141_v53 }
  0x50   : > { %1394 = vmatpush.bf16.msra.mxu0 %v2589_v56  ;;  %v1159_v56 = vpack.c.bf16 %v2635_v16, %v2632_v15  ;;  %v941_v15 = vpack.c.bf16 %v2631_v12, %v2776_v10  ;;  %v1161_v12 = vpack.c.bf16 %v2798_v21, %v2636_v18 }
  0x54   : > { %1395 = vmatpush.bf16.msra.mxu0 %v2588_v35 }
  0x58   : > { %1396 = vmatpush.bf16.msra.mxu0 %v2587_v44 }
  0x5b   : > { %928 = vmatmul.bf16.gmra.mxu0 %v2678_v3 }
  0x5c   : > { %1397 = vmatpush.bf16.msra.mxu0 %v2586_v48 }
  0x98   : > { %v416_v4 = vpop.f32.mrf.mxu0  ;;  %v426_v5 = vpop.f32.mrf.mxu1 }
  0x99   : > { %v417_v9 = vadd.f32 %v2889_v0, %v416_v4  ;;  %v2900_v13 = vadd.f32 %v2889_v0, %v426_v5 }
  0x9b   : > { %436 = vst [vmem:[#allocation2 + $0x58] sm:$0xff] %v417_v9 }
  0xa0   : > { %v418_v29 = vpop.f32.mrf.mxu0  ;;  %v428_v30 = vpop.f32.mrf.mxu1 }
  0xa1   : > { %v2925_v31 = vadd.f32 %v2889_v0, %v418_v29  ;;  %v2928_v32 = vadd.f32 %v2889_v0, %v428_v30  ;;  %v623_v29 = vshrl.u32 %v2936_v36, 16  ;;  %v2564_v30 = vld [vmem:[%s3290_s4 + $0x118] sm:$0xff] }
  0xa2   : > { %v522_v38 = vld [vmem:[#allocation2 + $0x58] sm:$0xfe]  ;;  %1081 = vmatpush.bf16.msra.mxu1 %v2564_v30 }
  0xa3   : > { %437 = vst [vmem:[#allocation2 + $0x18] sm:$0xff] %v2925_v31  ;;  %v482_v33 = vpack.c.bf16 %v2925_v31, %v417_v9  ;;  %v526_v49 = vpack.c.bf16 %v2925_v31, %v522_v38  ;;  %v625_v38 = vor.u32 %v623_v29, %v618_v46  ;;  %v486_v46 = vpack.c.bf16 %v2928_v32, %v2900_v13 }
  0xa5   : > { %890 = vmatmul.bf16.vlgmr.msra.gmra.mxu3 %v482_v33  ;;  %v567_v58 = vshll.u32 %v526_v49, 16  ;;  %v565_v8 = vshrl.u32 %v526_v49, 16  ;;  %v489_v33 = vpack.c.bf16 %v2798_v21, %v2798_v21  ;;  %781 = vmatmul.bf16.gmra.mxu2 %v625_v38  ;;  %v592_v51 = vshll.u32 %v486_v46, 16  ;;  %v1155_v21 = vld [vmem:[#allocation2 + $0x50] sm:$0x1] }
  0xa6   : > { %1082 = vmatpush.bf16.msra.mxu1 %v2563_v40 }
  0xa7   : > { %v569_v4 = vrot.slane %v567_v58, 1  ;;  %933 = vmatmul.bf16.gmra.mxu0 %v489_v33  ;;  %v594_v58 = vrot.slane %v592_v51, 1 }
  0xa8   : > { %v421_v37 = vpop.f32.mrf.mxu0  ;;  %v431_v39 = vpop.f32.mrf.mxu1 }
  0xa9   : > { %v2940_v42 = vadd.f32 %v2889_v0, %v421_v37  ;;  %v2943_v43 = vadd.f32 %v2889_v0, %v431_v39  ;;  %v570_v22 = vor.u32 %v569_v4, %v565_v8  ;;  %v2578_v39 = vld [vmem:[%s3290_s4 + $0x188] sm:$0xff]  ;;  %v2561_v8 = vld [vmem:[%s3290_s4 + $0x100] sm:$0xff] }
  0xab   : > { %v940_v50 = vpack.c.bf16 %v2940_v42, %v2925_v31  ;;  %v2962_v52 = vpack.c.bf16 %v2943_v43, %v2928_v32  ;;  %v2585_v32 = vld [vmem:[%s3290_s4 + $0x1c0] sm:$0xff] }
  0xac   : > { %1398 = vmatpush.bf16.msra.mxu0 %v2585_v32 }
  0xad   : > { %v1225_v57 = vshll.u32 %v2962_v52, 16  ;;  %v1237_v2 = vshrl.u32 %v2962_v52, 16 }
  0xaf   : > { %v1227_v1 = vrot.slane %v1225_v57, 1  ;;  %v1212_v57 = vshll.u32 %v1157_v54, 16 }
  0xb0   : > { %v423_v59 = vpop.f32.mrf.mxu0  ;;  %v433_v60 = vpop.f32.mrf.mxu1 }
  0xb1   : > { %v424_v62 = vadd.f32 %v2889_v0, %v423_v59  ;;  %v2977_v63 = vadd.f32 %v2889_v0, %v433_v60  ;;  %v2580_v0 = vld [vmem:[%s3290_s4 + $0x198] sm:$0xff]  ;;  %v1239_v17 = vor.u32 %v1237_v2, %v1227_v1  ;;  %v1210_v59 = vshrl.u32 %v1157_v54, 16  ;;  %v2562_v2 = vld [vmem:[%s3290_s4 + $0x108] sm:$0xff]  ;;  %v767_v53 = vpop.f32.mrf.mxu2 }
  0xb2   : > { %1367 = vmatpush.bf16.msrb.mxu3 %v2580_v0  ;;  %v1214_v60 = vrot.slane %v1212_v57, 1  ;;  %1083 = vmatpush.bf16.msra.mxu1 %v2562_v2 }
  0xb3   : > { %v484_v3 = vpack.c.bf16 %v424_v62, %v2940_v42  ;;  %v2982_v5 = vpack.c.bf16 %v2900_v13, %v424_v62  ;;  %v2985_v6 = vpack.c.bf16 %v1154_v61, %v2977_v63  ;;  %443 = vst [vmem:[#allocation2 + $0x60] sm:$0xff] %v2977_v63  ;;  %v1217_v61 = vshll.u32 %v1159_v56, 16 }
  0xb5   : > { %895 = vmatmul.bf16.gmra.mxu3 %v484_v3  ;;  %v572_v9 = vshll.u32 %v484_v3, 16  ;;  %v1205_v14 = vshll.u32 %v2982_v5, 16  ;;  %v1241_v20 = vshll.u32 %v2985_v6, 16  ;;  %v1221_v25 = vshrl.u32 %v2982_v5, 16  ;;  %1113 = vmatmul.bf16.vlgmr.msrb.gmra.mxu2 %v941_v15 }
  0xb6   : > { %1368 = vmatpush.bf16.msrb.mxu3 %v2579_v28  ;;  %v588_v49 = vshrl.u32 %v484_v3, 16  ;;  %v1215_v3 = vor.u32 %v1214_v60, %v1210_v59  ;;  %v1219_v4 = vrot.slane %v1217_v61, 1  ;;  %1084 = vmatpush.bf16.msra.mxu1 %v2561_v8  ;;  %v1253_v51 = vshrl.u32 %v2985_v6, 16  ;;  %v2616_v61 = vld [vmem:[%s3292_s6 + $0xb8] sm:$0xff] }
  0xb7   : > { %v574_v23 = vrot.slane %v572_v9, 1  ;;  %v2993_v24 = vrot.slane %v1205_v14, 1  ;;  %v2996_v26 = vrot.slane %v1241_v20, 1  ;;  %v488_v14 = vpack.c.bf16 %v2943_v43, %v2943_v43  ;;  %v1140_v20 = vld [vmem:[#allocation2 + $0x18] sm:$0xfe] }
  0xb8   : > { %v1220_v16 = vsel %vm563_vm1, %v1215_v3, %v1219_v4  ;;  %v1156_v10 = vpack.c.bf16 %v2940_v42, %v1140_v20  ;;  %v2608_v8 = vld [vmem:[%s3292_s6 + $0x78] sm:$0xff] }
  0xb9   : > { %v575_v27 = vsel %vm563_vm1, %v570_v22, %v574_v23  ;;  %v1223_v37 = vor.u32 %v1221_v25, %v2993_v24  ;;  %v3017_v36 = vsel %vm563_vm1, %v1239_v17, %v2996_v26  ;;  %v590_v13 = vor.u32 %v588_v49, %v574_v23  ;;  %1399 = vmatmul.bf16.vlgmr.msra.gmra.mxu0 %v1220_v16  ;;  %v919_v49 = vpop.f32.mrf.mxu0  ;;  %v769_v31 = vpop.f32.mrf.mxu2 }
  0xba   : > { %738 = vmatmul.bf16.vlgmr.msrb.gmra.mxu1 %v575_v27  ;;  %1369 = vmatpush.bf16.msrb.mxu3 %v2578_v39  ;;  %v604_v17 = vshrl.u32 %v486_v46, 16  ;;  %v1229_v23 = vshrl.u32 %v1159_v56, 16  ;;  %v1233_v25 = vshll.u32 %v1161_v12, 16  ;;  %v1200_v28 = vshll.u32 %v1156_v10, 16 }
  0xbb   : > { %v3026_v41 = vsel %vm563_vm1, %v1223_v37, %v1227_v1  ;;  %v595_v62 = vsel %vm563_vm1, %v590_v13, %v594_v58  ;;  %v524_v1 = vld [vmem:[#allocation2 + $0x60] sm:$0x1]  ;;  %v1198_v34 = vshrl.u32 %v1156_v10, 16  ;;  %v1163_v37 = vpack.c.bf16 %v1155_v21, %v2796_v19  ;;  %1550 = vmatpush.bf16.msrb.mxu1 %v2608_v8 }
  0xbc   : > { %v528_v9 = vpack.c.bf16 %v524_v1, %v2943_v43  ;;  %v606_v22 = vor.u32 %v604_v17, %v594_v58  ;;  %v1231_v29 = vor.u32 %v1229_v23, %v1219_v4  ;;  %v1235_v30 = vrot.slane %v1233_v25, 1  ;;  %v2607_v25 = vld [vmem:[%s3292_s6 + $0x70] sm:$0xff]  ;;  %v2613_v21 = vld [vmem:[%s3292_s6 + $0xa0] sm:$0xff] }
  0xbd   : > { %v1202_v33 = vrot.slane %v1200_v28, 1  ;;  %v1245_v39 = vshrl.u32 %v1161_v12, 16  ;;  %v1249_v40 = vshll.u32 %v1163_v37, 16  ;;  %v1255_v54 = vor.u32 %v1253_v51, %v2996_v26  ;;  %v2614_v28 = vld [vmem:[%s3292_s6 + $0xa8] sm:$0xff]  ;;  %v2596_v51 = vld [vmem:[%s3292_s6 + $0x18] sm:$0xff]  ;;  %v2609_v8 = vld [vmem:[%s3292_s6 + $0x80] sm:$0xff] }
  0xbe   : > { %1370 = vmatpush.bf16.msrb.mxu3 %v2577_v47  ;;  %v608_v0 = vshll.u32 %v528_v9, 16  ;;  %v1236_v43 = vsel %vm563_vm1, %v1231_v29, %v1235_v30  ;;  %v620_v18 = vshrl.u32 %v528_v9, 16  ;;  %v1256_v47 = vshrl.u32 %v1163_v37, 16  ;;  %v2599_v9 = vld [vmem:[%s3292_s6 + $0x30] sm:$0xff] }
  0xbf   : > { %v1203_v35 = vor.u32 %v1202_v33, %v1198_v34  ;;  %v1247_v44 = vor.u32 %v1245_v39, %v1235_v30  ;;  %v1251_v45 = vrot.slane %v1249_v40, 1  ;;  %v2623_v29 = vld [vmem:[%s3292_s6 + $0xf0] sm:$0xff]  ;;  %1551 = vmatpush.bf16.msrb.mxu1 %v2607_v25  ;;  %v2622_v39 = vld [vmem:[%s3292_s6 + $0xe8] sm:$0xff] }
  0xc0   : > { %v610_v7 = vrot.slane %v608_v0, 1  ;;  %v2615_v0 = vld [vmem:[%s3292_s6 + $0xb0] sm:$0xff] }
  0xc1   : > { %v1208_v11 = vsel %vm563_vm1, %v1203_v35, %v2993_v24  ;;  %v947_v24 = vpack.c.bf16 %v2796_v19, %v2796_v19  ;;  %v1258_v48 = vor.u32 %v1256_v47, %v1251_v45  ;;  %v772_v19 = vpop.f32.mrf.mxu2 }
  0xc2   : > { %v611_v27 = vsel %vm563_vm1, %v606_v22, %v610_v7  ;;  %v622_v38 = vor.u32 %v620_v18, %v610_v7  ;;  %1720 = vmatpush.bf16.msra.mxu3 %v2616_v61  ;;  %v2597_v18 = vld [vmem:[%s3292_s6 + $0x20] sm:$0xff]  ;;  %v2620_v61 = vld [vmem:[%s3292_s6 + $0xd8] sm:$0xff] }
  0xc5   : > { %900 = vmatmul.bf16.gmra.mxu3 %v486_v46  ;;  %1118 = vmatmul.bf16.gmra.mxu2 %v1159_v56  ;;  %v1252_v46 = vsel %vm563_vm1, %v1247_v44, %v1251_v45 }
  0xc6   : > { %1721 = vmatpush.bf16.msra.mxu3 %v2615_v0 }
  0xc9   : > { %1404 = vmatmul.bf16.gmra.mxu0 %v1236_v43  ;;  %v774_v32 = vpop.f32.mrf.mxu2 }
  0xca   : > { %743 = vmatmul.bf16.gmra.mxu1 %v595_v62  ;;  %1722 = vmatpush.bf16.msra.mxu3 %v2614_v28  ;;  %v2618_v28 = vld [vmem:[%s3292_s6 + $0xc8] sm:$0xff] }
  0xce   : > { %1723 = vmatpush.bf16.msra.mxu3 %v2613_v21 }
  0xd1   : > { %v777_v55 = vpop.f32.mrf.mxu2 }
  0xd5   : > { %905 = vmatmul.bf16.gmra.mxu3 %v488_v14  ;;  %1123 = vmatmul.bf16.gmra.mxu2 %v1161_v12  ;;  %v2624_v14 = vld [vmem:[%s3292_s6 + $0xf8] sm:$0xff] }
  0xd6   : > { %1824 = vmatpush.bf16.msrb.mxu0 %v2624_v14  ;;  %v2602_v14 = vld [vmem:[%s3292_s6 + $0x48] sm:$0xff] }
  0xd9   : > { %1409 = vmatmul.bf16.gmra.mxu0 %v1252_v46 }
  0xda   : > { %748 = vmatmul.bf16.gmra.mxu1 %v611_v27  ;;  %v2598_v27 = vld [vmem:[%s3292_s6 + $0x28] sm:$0xff]  ;;  %1825 = vmatpush.bf16.msrb.mxu0 %v2623_v29 }
  0xde   : > { %1826 = vmatpush.bf16.msrb.mxu0 %v2622_v39 }
  0xe5   : > { %1371 = vmatmul.bf16.vlgmr.msrb.gmra.mxu3 %v1208_v11  ;;  %1128 = vmatmul.bf16.gmra.mxu2 %v947_v24  ;;  %v2606_v11 = vld [vmem:[%s3292_s6 + $0x68] sm:$0xff] }
  0xe6   : > { %1552 = vmatpush.bf16.msrb.mxu1 %v2606_v11 }
  0xe9   : > { %1414 = vmatmul.bf16.gmra.mxu0 %v1258_v48 }
  0xea   : > { %753 = vmatmul.bf16.gmra.mxu1 %v622_v38 }
  0xf5   : > { %1376 = vmatmul.bf16.gmra.mxu3 %v3026_v41  ;;  %v921_v41 = vpop.f32.mrf.mxu0 }
  0xfa   : > { %1085 = vmatmul.bf16.vlgmr.msra.gmra.mxu1 %v940_v50 }
  0xfd   : > { %v924_v42 = vpop.f32.mrf.mxu0 }
 0x105   : > { %1381 = vmatmul.bf16.gmra.mxu3 %v3017_v36  ;;  %v3089_v50 = vpop.f32.mrf.mxu0  ;;  %v946_v36 = vpack.c.bf16 %v2977_v63, %v2977_v63  ;;  %v2600_v63 = vld [vmem:[%s3292_s6 + $0x38] sm:$0xff] }
 0x106   : > { %1622 = vmatpush.bf16.msra.mxu2 %v2600_v63  ;;  %v2604_v63 = vld [vmem:[%s3292_s6 + $0x58] sm:$0xff] }
 0x10a   : > { %1090 = vmatmul.bf16.gmra.mxu1 %v2982_v5  ;;  %1623 = vmatpush.bf16.msra.mxu2 %v2599_v9 }
 0x10d   : > { %v3093_v5 = vpop.f32.mrf.mxu0 }
 0x10e   : > { %1624 = vmatpush.bf16.msra.mxu2 %v2598_v27  ;;  %v3239_v27 = vld [vmem:[%s3291_s5] ss:$0 sm:$0xff] }
 0x112   : > { %1625 = vmatpush.bf16.msra.mxu2 %v2597_v18  ;;  %v2617_v18 = vld [vmem:[%s3292_s6 + $0xc0] sm:$0xff] }
 0x115   : > { %1386 = vmatmul.bf16.gmra.mxu3 %v1255_v54  ;;  %v3095_v56 = vpop.f32.mrf.mxu0 }
 0x116   : > { %1626 = vmatpush.bf16.msra.mxu2 %v2596_v51 }
 0x11a   : > { %1095 = vmatmul.bf16.gmra.mxu1 %v2962_v52  ;;  %v3097_v52 = vpop.f32.mrf.mxu2 }
 0x124   : > { %v3099_v60 = vpop.f32.mrf.mxu0 }
 0x128   : > { %v891_v13 = vpop.f32.mrf.mxu3  ;;  %v3109_v4 = vpop.f32.mrf.mxu2 }
 0x12a   : > { %1100 = vmatmul.bf16.gmra.mxu1 %v946_v36  ;;  %v2621_v36 = vld [vmem:[%s3292_s6 + $0xe0] sm:$0xff] }
 0x12b   : > { %1827 = vmatpush.bf16.msrb.mxu0 %v2621_v36 }
 0x12c   : > { %v936_v16 = vpop.f32.mrf.mxu0 }
 0x12d   : > { %v2603_v16 = vld [vmem:[%s3292_s6 + $0x50] sm:$0xff] }
 0x12f   : > { %1828 = vmatpush.bf16.msrb.mxu0 %v2620_v61 }
 0x130   : > { %v893_v6 = vpop.f32.mrf.mxu3  ;;  %v784_v12 = vpop.f32.mrf.mxu2 }
 0x131   : > { %v2601_v12 = vld [vmem:[%s3292_s6 + $0x40] sm:$0xff] }
 0x136   : > { %v3125_v23 = vpop.f32.mrf.mxu0 }
 0x137   : > { %v739_v26 = vpop.f32.mrf.mxu1 }
 0x138   : > { %v768_v57 = vadd.f32 %v767_v53, %v739_v26  ;;  %v896_v58 = vpop.f32.mrf.mxu3  ;;  %v3141_v35 = vpop.f32.mrf.mxu2 }
 0x13a   : > { %v892_v59 = vadd.f32 %v891_v13, %v768_v57  ;;  %v2612_v13 = vld [vmem:[%s3292_s6 + $0x98] sm:$0xff] }
 0x13b   : > { %1724 = vmatpush.bf16.msra.mxu3 %v2612_v13 }
 0x13c   : > { %v3107_v62 = vadd.f32 %v919_v49, %v892_v59 }
 0x13e   : > { %v3152_v38 = vpop.f32.mrf.mxu0 }
 0x13f   : > { %v741_v1 = vpop.f32.mrf.mxu1 }
 0x140   : > { %v770_v2 = vadd.f32 %v769_v31, %v741_v1  ;;  %v898_v3 = vpop.f32.mrf.mxu3  ;;  %v3160_v47 = vpop.f32.mrf.mxu2 }
 0x142   : > { %v894_v15 = vadd.f32 %v893_v6, %v770_v2  ;;  %v2594_v6 = vld [vmem:[%s3292_s6 + $0x8] sm:$0xff] }
 0x144   : > { %v3123_v17 = vadd.f32 %v921_v41, %v894_v15 }
 0x146   : > { %v3162_v48 = vpop.f32.mrf.mxu0 }
 0x147   : > { %v744_v20 = vpop.f32.mrf.mxu1 }
 0x148   : > { %v773_v7 = vadd.f32 %v772_v19, %v744_v20  ;;  %v901_v10 = vpop.f32.mrf.mxu3  ;;  %v3171_v31 = vpop.f32.mrf.mxu2 }
 0x14a   : > { %v897_v22 = vadd.f32 %v896_v58, %v773_v7  ;;  %v2611_v58 = vld [vmem:[%s3292_s6 + $0x90] sm:$0xff] }
 0x14b   : > { %1725 = vmatpush.bf16.msra.mxu3 %v2611_v58 }
 0x14c   : > { %v3139_v30 = vadd.f32 %v924_v42, %v897_v22  ;;  %v2595_v42 = vld [vmem:[%s3292_s6 + $0x10] sm:$0xff] }
 0x14d   : > { %1627 = vmatpush.bf16.msra.mxu2 %v2595_v42 }
 0x14f   : > { %v746_v43 = vpop.f32.mrf.mxu1 }
 0x150   : > { %v775_v33 = vadd.f32 %v774_v32, %v746_v43  ;;  %v903_v34 = vpop.f32.mrf.mxu3  ;;  %v3185_v32 = vpop.f32.mrf.mxu0 }
 0x151   : > { %1628 = vmatpush.bf16.msra.mxu2 %v2594_v6 }
 0x152   : > { %v899_v37 = vadd.f32 %v898_v3, %v775_v33  ;;  %v2610_v3 = vld [vmem:[%s3292_s6 + $0x88] sm:$0xff] }
 0x153   : > { %1726 = vmatpush.bf16.msra.mxu3 %v2610_v3 }
 0x154   : > { %v3158_v40 = vadd.f32 %v3089_v50, %v899_v37  ;;  %v2605_v50 = vld [vmem:[%s3292_s6 + $0x60] sm:$0xff] }
 0x155   : > { %1553 = vmatpush.bf16.msrb.mxu1 %v2605_v50 }
 0x157   : > { %v749_v44 = vpop.f32.mrf.mxu1  ;;  %1727 = vmatpush.bf16.msra.mxu3 %v2609_v8 }
 0x158   : > { %v778_v45 = vadd.f32 %v777_v55, %v749_v44  ;;  %v906_v46 = vpop.f32.mrf.mxu3  ;;  %v3208_v1 = vpop.f32.mrf.mxu0 }
 0x159   : > { %1554 = vmatpush.bf16.msrb.mxu1 %v2604_v63 }
 0x15a   : > { %v902_v24 = vadd.f32 %v901_v10, %v778_v45 }
 0x15c   : > { %v3165_v49 = vadd.f32 %v3093_v5, %v902_v24 }
 0x15d   : > { %1555 = vmatpush.bf16.msrb.mxu1 %v2603_v16 }
 0x15f   : > { %v751_v53 = vpop.f32.mrf.mxu1 }
 0x160   : > { %v780_v41 = vadd.f32 %v3097_v52, %v751_v53  ;;  %v908_v54 = vpop.f32.mrf.mxu3  ;;  %v3197_v52 = vpop.f32.mrf.mxu2 }
 0x161   : > { %v3225_v9 = vpop.f32.mrf.mxu0  ;;  %1556 = vmatpush.bf16.msrb.mxu1 %v2602_v14 }
 0x162   : > { %v904_v19 = vadd.f32 %v903_v34, %v780_v41 }
 0x164   : > { %v3188_v5 = vadd.f32 %v3095_v56, %v904_v19  ;;  %v2593_v56 = vld [vmem:[%s3292_s6] sm:$0xff] }
 0x165   : > { %1629 = vmatpush.bf16.msra.mxu2 %v2593_v56  ;;  %1557 = vmatpush.bf16.msrb.mxu1 %v2601_v12 }
 0x167   : > { %v754_v55 = vpop.f32.mrf.mxu1 }
 0x168   : > { %v783_v26 = vadd.f32 %v3109_v4, %v754_v55  ;;  %v1372_v57 = vpop.f32.mrf.mxu3  ;;  %v1124_v0 = vpop.f32.mrf.mxu2 }
 0x169   : > { %v1401_v22 = vadd.f32 %v3125_v23, %v1372_v57  ;;  %v3244_v29 = vpop.f32.mrf.mxu0 }
 0x16a   : > { %v907_v59 = vadd.f32 %v906_v46, %v783_v26 }
 0x16c   : > { %v3211_v2 = vadd.f32 %v3099_v60, %v907_v59  ;;  %v2619_v60 = vld [vmem:[%s3292_s6 + $0xd0] sm:$0xff] }
 0x16d   : > { %1829 = vmatpush.bf16.msrb.mxu0 %v2619_v60 }
 0x16f   : > { %v756_v4 = vpop.f32.mrf.mxu1 }
 0x170   : > { %v1374_v15 = vpop.f32.mrf.mxu3  ;;  %v1126_v33 = vpop.f32.mrf.mxu2 }
 0x171   : > { %1830 = vmatpush.bf16.msrb.mxu0 %v2618_v28  ;;  %v1403_v21 = vadd.f32 %v3152_v38, %v1374_v15  ;;  %v1417_v39 = vpop.f32.mrf.mxu0 }
 0x175   : > { %1831 = vmatpush.bf16.msrb.mxu0 %v2617_v18 }
 0x177   : > { %v1086_v20 = vpop.f32.mrf.mxu1 }
 0x178   : > { %v1115_v7 = vadd.f32 %v3141_v35, %v1086_v20  ;;  %v1377_v10 = vpop.f32.mrf.mxu3  ;;  %v1129_v45 = vpop.f32.mrf.mxu2 }
 0x179   : > { %v1406_v41 = vadd.f32 %v3162_v48, %v1377_v10 }
 0x17a   : > { %v1133_v25 = vadd.f32 %v1115_v7, %v3107_v62 }
 0x17c   : > { %v1419_v43 = vadd.f32 %v1401_v22, %v1133_v25 }
 0x17e   : > { %v1430_v34 = vadd.f32 %v3239_v27, %v1419_v43 }
 0x17f   : > { %v1088_v23 = vpop.f32.mrf.mxu1 }
 0x180   : > { %v1437_v35 = vmax.f32 %v1430_v34, 0.0  ;;  %v1117_v62 = vadd.f32 %v3160_v47, %v1088_v23  ;;  %v1379_v11 = vpop.f32.mrf.mxu3 }
 0x181   : > { %v1408_v55 = vadd.f32 %v3185_v32, %v1379_v11 }
 0x182   : > { %1444 = vst [vmem:[#allocation3] sm:$0xff] %v1437_v35  ;;  %v1134_v37 = vadd.f32 %v1117_v62, %v3123_v17  ;;  %v1131_v17 = vpop.f32.mrf.mxu2 }
 0x184   : > { %v1420_v44 = vadd.f32 %v1403_v21, %v1134_v37 }
 0x186   : > { %v1431_v46 = vadd.f32 %v3239_v27, %v1420_v44 }
 0x187   : > { %v1091_v24 = vpop.f32.mrf.mxu1 }
 0x188   : > { %v1438_v51 = vmax.f32 %v1431_v46, 0.0  ;;  %v1120_v47 = vadd.f32 %v3171_v31, %v1091_v24  ;;  %v1382_v53 = vpop.f32.mrf.mxu3 }
 0x189   : > { %v1411_v3 = vadd.f32 %v3208_v1, %v1382_v53 }
 0x18a   : > { %1445 = vst [vmem:[#allocation3 + $0x8] sm:$0xff] %v1438_v51  ;;  %v1135_v54 = vadd.f32 %v1120_v47, %v3139_v30  ;;  %v1457_v38 = vpack.c.bf16 %v1438_v51, %v1437_v35 }
 0x18c   : > { %v1421_v42 = vadd.f32 %v1406_v41, %v1135_v54  ;;  %1630 = vmatmul.bf16.vlgmr.msra.gmra.mxu2 %v1457_v38 }
 0x18e   : > { %v1432_v19 = vadd.f32 %v3239_v27, %v1421_v42 }
 0x18f   : > { %v1093_v50 = vpop.f32.mrf.mxu1 }
 0x190   : > { %v1439_v13 = vmax.f32 %v1432_v19, 0.0  ;;  %v1122_v36 = vadd.f32 %v3197_v52, %v1093_v50  ;;  %v1384_v6 = vpop.f32.mrf.mxu3  ;;  %v2680_v19 = vld [vmem:[%s3293_s7] ss:$0 sm:$0xff] }
 0x191   : > { %v1476_v63 = vld [vmem:[#allocation3 + $0x1] sm:$0xff]  ;;  %v1413_v20 = vadd.f32 %v3225_v9, %v1384_v6 }
 0x192   : > { %1446 = vst [vmem:[#allocation3 + $0x10] sm:$0xff] %v1439_v13  ;;  %v1136_v31 = vadd.f32 %v1122_v36, %v3158_v40  ;;  %v1652_v48 = vpack.c.bf16 %v1439_v13, %v1438_v51 }
 0x194   : > { %v1422_v26 = vadd.f32 %v1408_v55, %v1136_v31  ;;  %1728 = vmatmul.bf16.vlgmr.msra.gmra.mxu3 %v1652_v48 }
 0x196   : > { %v1433_v30 = vadd.f32 %v3239_v27, %v1422_v26 }
 0x197   : > { %v1096_v57 = vpop.f32.mrf.mxu1 }
 0x198   : > { %v1440_v58 = vmax.f32 %v1433_v30, 0.0  ;;  %v1125_v56 = vadd.f32 %v1124_v0, %v1096_v57  ;;  %v1387_v59 = vpop.f32.mrf.mxu3 }
 0x199   : > { %v1477_v61 = vld [vmem:[#allocation3 + $0x9] sm:$0xff] }
 0x19a   : > { %1447 = vst [vmem:[#allocation3 + $0x18] sm:$0xff] %v1440_v58  ;;  %v1137_v52 = vadd.f32 %v1125_v56, %v3165_v49  ;;  %v1482_v32 = vpack.c.bf16 %v1477_v61, %v1476_v63  ;;  %v1458_v4 = vpack.c.bf16 %v1440_v58, %v1439_v13 }
 0x19c   : > { %v1423_v15 = vadd.f32 %v1411_v3, %v1137_v52  ;;  %1558 = vmatmul.bf16.vlgmr.msrb.gmra.mxu1 %v1482_v32  ;;  %1635 = vmatmul.bf16.gmra.mxu2 %v1458_v4 }
 0x19e   : > { %v1434_v40 = vadd.f32 %v3239_v27, %v1423_v15 }
 0x19f   : > { %v1098_v16 = vpop.f32.mrf.mxu1 }
 0x1a0   : > { %v1441_v8 = vmax.f32 %v1434_v40, 0.0  ;;  %v1127_v60 = vadd.f32 %v1126_v33, %v1098_v16  ;;  %v1389_v14 = vpop.f32.mrf.mxu3  ;;  %v1416_v33 = vadd.f32 %v3244_v29, %v1387_v59 }
 0x1a1   : > { %v1751_v0 = vld [vmem:[#allocation3 + $0x11] sm:$0xff] }
 0x1a2   : > { %1448 = vst [vmem:[#allocation3 + $0x20] sm:$0xff] %v1441_v8  ;;  %v1138_v1 = vadd.f32 %v1127_v60, %v3188_v5  ;;  %v1756_v7 = vpack.c.bf16 %v1751_v0, %v1477_v61  ;;  %v1653_v10 = vpack.c.bf16 %v1441_v8, %v1440_v58 }
 0x1a4   : > { %v1424_v49 = vadd.f32 %v1413_v20, %v1138_v1  ;;  %1832 = vmatmul.bf16.vlgmr.msrb.gmra.mxu0 %v1756_v7  ;;  %1733 = vmatmul.bf16.gmra.mxu3 %v1653_v10 }
 0x1a6   : > { %v1435_v12 = vadd.f32 %v3239_v27, %v1424_v49 }
 0x1a7   : > { %v1101_v22 = vpop.f32.mrf.mxu1 }
 0x1a8   : > { %v1442_v25 = vmax.f32 %v1435_v12, 0.0  ;;  %v1130_v28 = vadd.f32 %v1129_v45, %v1101_v22 }
 0x1a9   : > { %v1479_v43 = vld [vmem:[#allocation3 + $0x19] sm:$0xff] }
 0x1aa   : > { %1449 = vst [vmem:[#allocation3 + $0x28] sm:$0xff] %v1442_v25  ;;  %v1139_v34 = vadd.f32 %v1130_v28, %v3211_v2  ;;  %v1483_v9 = vpack.c.bf16 %v1479_v43, %v1751_v0  ;;  %v1459_v23 = vpack.c.bf16 %v1442_v25, %v1441_v8 }
 0x1ac   : > { %v1425_v35 = vadd.f32 %v1416_v33, %v1139_v34  ;;  %1563 = vmatmul.bf16.gmra.mxu1 %v1483_v9  ;;  %1640 = vmatmul.bf16.gmra.mxu2 %v1459_v23 }
 0x1ae   : > { %v1436_v5 = vadd.f32 %v3239_v27, %v1425_v35 }
 0x1af   : > { %v1103_v62 = vpop.f32.mrf.mxu1 }
 0x1b0   : > { %v1443_v11 = vmax.f32 %v1436_v5, 0.0 }
 0x1b1   : > { %v1753_v18 = vld [vmem:[#allocation3 + $0x21] sm:$0xff] }
 0x1b2   : > { %1450 = vst [vmem:[#allocation3 + $0x30] sm:$0xff] %v1443_v11  ;;  %v1757_v21 = vpack.c.bf16 %v1753_v18, %v1479_v43  ;;  %v1654_v37 = vpack.c.bf16 %v1443_v11, %v1442_v25 }
 0x1b4   : > { %1837 = vmatmul.bf16.gmra.mxu0 %v1757_v21  ;;  %1738 = vmatmul.bf16.gmra.mxu3 %v1654_v37 }
 0x1b9   : > { %v1481_v39 = vld [vmem:[#allocation3 + $0x29] sm:$0xff]  ;;  %v1755_v44 = vld [vmem:[#allocation3 + $0x31] sm:$0xff] }
 0x1ba   : > { %v1484_v29 = vpack.c.bf16 %v1481_v39, %v1753_v18  ;;  %v1758_v2 = vpack.c.bf16 %v1755_v44, %v1481_v39 }
 0x1bc   : > { %1568 = vmatmul.bf16.gmra.mxu1 %v1484_v29 }
 0x1c4   : > { %1842 = vmatmul.bf16.gmra.mxu0 %v1758_v2 }
 0x20f   : > { %v1631_v45 = vpop.f32.mrf.mxu2 }
 0x217   : > { %v1729_v46 = vpop.f32.mrf.mxu3  ;;  %v1633_v51 = vpop.f32.mrf.mxu2 }
 0x219   : > { %v1559_v24 = vpop.f32.mrf.mxu1 }
 0x21a   : > { %v1632_v41 = vadd.f32 %v1631_v45, %v1559_v24 }
 0x21c   : > { %v1744_v42 = vadd.f32 %v1729_v46, %v1632_v41 }
 0x21f   : > { %v1731_v27 = vpop.f32.mrf.mxu3  ;;  %v1636_v38 = vpop.f32.mrf.mxu2 }
 0x221   : > { %v1561_v47 = vpop.f32.mrf.mxu1  ;;  %v1833_v53 = vpop.f32.mrf.mxu0 }
 0x222   : > { %v1634_v54 = vadd.f32 %v1633_v51, %v1561_v47  ;;  %v1848_v17 = vadd.f32 %v1833_v53, %v1744_v42 }
 0x224   : > { %v1745_v50 = vadd.f32 %v1731_v27, %v1634_v54  ;;  %v1858_v31 = vadd.f32 %v2680_v19, %v1848_v17 }
 0x227   : > { %v1734_v13 = vpop.f32.mrf.mxu3  ;;  %v1638_v30 = vpop.f32.mrf.mxu2 }
 0x229   : > { %v1564_v36 = vpop.f32.mrf.mxu1  ;;  %v1835_v6 = vpop.f32.mrf.mxu0 }
 0x22a   : > { %v1849_v55 = vadd.f32 %v1835_v6, %v1745_v50  ;;  %v1637_v56 = vadd.f32 %v1636_v38, %v1564_v36 }
 0x22c   : > { %v1859_v48 = vadd.f32 %v2680_v19, %v1849_v55  ;;  %v1746_v61 = vadd.f32 %v1734_v13, %v1637_v56 }
 0x22e   : > { %v2644_v26 = vpack.c.bf16 %v1859_v48, %v1858_v31 }
 0x22f   : > { %v1736_v59 = vpop.f32.mrf.mxu3  ;;  %v1641_v52 = vpop.f32.mrf.mxu2 }
 0x230   : > { %2645 = vst [vmem:[%s3278_s26] sm:$0xff] %v2644_v26  }
 0x231   : > { %v1566_v57 = vpop.f32.mrf.mxu1  ;;  %v1838_v58 = vpop.f32.mrf.mxu0 }
 0x232   : > { %v1639_v63 = vadd.f32 %v1638_v30, %v1566_v57  ;;  %v1850_v3 = vadd.f32 %v1838_v58, %v1746_v61 }
 0x234   : > { %v1747_v32 = vadd.f32 %v1736_v59, %v1639_v63  ;;  %v1860_v16 = vadd.f32 %v2680_v19, %v1850_v3 }
 0x237   : > { %v1739_v60 = vpop.f32.mrf.mxu3  ;;  %v1643_v7 = vpop.f32.mrf.mxu2 }
 0x239   : > { %v1569_v4 = vpop.f32.mrf.mxu1  ;;  %v1840_v15 = vpop.f32.mrf.mxu0 }
 0x23a   : > { %v1851_v40 = vadd.f32 %v1840_v15, %v1747_v32  ;;  %v1642_v1 = vadd.f32 %v1641_v52, %v1569_v4 }
 0x23c   : > { %v1861_v8 = vadd.f32 %v2680_v19, %v1851_v40  ;;  %v1748_v49 = vadd.f32 %v1739_v60, %v1642_v1 }
 0x23e   : > { %v2649_v14 = vpack.c.bf16 %v1861_v8, %v1860_v16 }
 0x23f   : > { %v1741_v12 = vpop.f32.mrf.mxu3 }
 0x240   : > { %2659 = vst [vmem:[%s3278_s26 + $0x8] sm:$0xff] %v2649_v14  }
 0x241   : > { %v1571_v0 = vpop.f32.mrf.mxu1  ;;  %v1843_v20 = vpop.f32.mrf.mxu0 }
 0x242   : > { %v1644_v10 = vadd.f32 %v1643_v7, %v1571_v0  ;;  %v1852_v22 = vadd.f32 %v1843_v20, %v1748_v49 }
 0x244   : > { %v1749_v25 = vadd.f32 %v1741_v12, %v1644_v10  ;;  %v1862_v33 = vadd.f32 %v2680_v19, %v1852_v22 }
 0x249   : > { %v1845_v28 = vpop.f32.mrf.mxu0 }
 0x24a   : > { %v1853_v43 = vadd.f32 %v1845_v28, %v1749_v25 }
 0x24c   : > { %v1863_v34 = vadd.f32 %v2680_v19, %v1853_v43 }
 0x24e   : > { %v2654_v9 = vpack.c.bf16 %v1863_v34, %v1862_v33 }
 0x250   : > { %2660 = vst [vmem:[%s3278_s26 + $0x10] sm:$0xff] %v2654_v9  }
 0x251 PF: > { %s18_s27 = sadd.s32 1, %s2687_s27  }
 0x252   : > { %p15_p4 = scmp.ge.s32.totalorder %s18_s27, 4  }
 0x254   :  { %17 = sbr.rel (!%p15_p4) target bundleno = 1 (0x1), region = 91 }

// kernel: decoder_forward.3
= control target key start
LH: loop header
LB: loop body
LE: loop exit
PB: predicated region body
PF: predicated region fallthrough
CT: control target
= control target key end

     0   :  { %s2588_s27 = smov 0   ;;  %s2963_s0 = inlined_call_operand.vmem [shape: bf16[2,144,32], index: 0, kind: input, shape index: {}]   ;;  %s2964_s1 = inlined_call_operand.vmem [shape: bf16[2,144,64], index: 1, kind: input, shape index: {}]   ;;  %s2965_s2 = inlined_call_operand.vmem [shape: bf16[32,64], index: 2, kind: input, shape index: {}]   ;;  %s2966_s3 = inlined_call_operand.vmem [shape: f32[1,64], index: 3, kind: input, shape index: {}]   ;;  %s2967_s4 = inlined_call_operand.vmem [shape: bf16[4,128,64], index: 4, kind: input, shape index: {}]   ;;  %s2968_s5 = inlined_call_operand.vmem [shape: f32[1,64], index: 5, kind: input, shape index: {}]   ;;  %s2969_s6 = inlined_call_operand.vmem [shape: bf16[4,64,128], index: 6, kind: input, shape index: {}]   ;;  %s2970_s7 = inlined_call_operand.vmem [shape: f32[1,128], index: 7, kind: input, shape index: {}]   ;;  %s2971_s8 = inlined_call_operand.vmem [shape: bf16[2,120,128], index: 8, kind: output, shape index: {}]  }
   0x1 LB: > { %s1964_s28 = sadd.s32 4294967295, %s2539_s27   ;;  %p1968_p0 = scmp.ge.s32.totalorder %s2539_s27, 1  ;;  %s2539_s27 = sphi %s2588_s27, %s18_s27  }
   0x2   : > { %p272_p1 = scmp.lt.s32.totalorder %s2539_s27, 3 }
   0x4   : > { %p273_p2 = pnand %p1968_p0, %p272_p1 }
   0x5   : > { %p311_p3 = scmp.lt.s32.totalorder (!%p273_p2), %s1964_s28, 1  ;;  %s2541_s18 = smov (!%p273_p2), 64  }
   0x6   : > { %276 = sbr.rel (%p273_p2) target bundleno = 611 (0x263), region = 52 }
   0xb   : > { %v2333_v0 = vld [vmem:[%s2965_s2 + $0x8] sm:$0xff]  ;;  %v2332_v1 = vld [vmem:[%s2965_s2] sm:$0xff]  ;;  %s2973_s28 = smov (!%p311_p3, %s1964_s28), 1  ;;  %vm416_vm0 = vcmask 261120   ;;  %v2341_v21 = vld [vmem:[%s2967_s4 + $0x38] sm:$0xff]  ;;  %vm329_vm1 = vcmask 523264  }
   0xc   : > { %450 = vmatpush.bf16.msra.mxu0 %v2333_v0  ;;  %2467 = vmatpush.bf16.msra.mxu1 %v2333_v0  ;;  %s2473_s11 = smul.u32 72, %s2973_s28  ;;  %v2349_v24 = vld [vmem:[%s2967_s4 + $0x78] sm:$0xff]  ;;  %v2340_v27 = vld [vmem:[%s2967_s4 + $0x30] sm:$0xff]  ;;  %v2339_v34 = vld [vmem:[%s2967_s4 + $0x28] sm:$0xff]  ;;  %vm624_vm2 = vcmask 1048064   ;;  %vm331_vm3 = vcmask 519168  }
   0xd   : > { %2468 = vmatpush.bf16.msra.mxu2 %v2333_v0  ;;  %2469 = vmatpush.bf16.msra.mxu3 %v2333_v0  ;;  %v2348_v47 = vld [vmem:[%s2967_s4 + $0x70] sm:$0xff]  ;;  %v2338_v48 = vld [vmem:[%s2967_s4 + $0x20] sm:$0xff]  ;;  %v2347_v49 = vld [vmem:[%s2967_s4 + $0x68] sm:$0xff] }
   0xe   : > { %s2608_s14 = scalar_lea.vmem %s2963_s0, %s2473_s11  ;;  %s2613_s17 = scalar_lea.vmem %s2964_s1, %s2473_s11  ;;  %v2337_v50 = vld [vmem:[%s2967_s4 + $0x18] sm:$0xff]  ;;  %v2346_v53 = vld [vmem:[%s2967_s4 + $0x60] sm:$0xff]  ;;  %v2336_v54 = vld [vmem:[%s2967_s4 + $0x10] sm:$0xff] }
   0xf   : > { %v2323_v2 = vld [vmem:[%s2608_s14] sm:$0xff]  ;;  %v2325_v3 = vld [vmem:[%s2608_s14 + $0x10] sm:$0xff]  ;;  %v2453_v8 = vld [vmem:[%s2613_s17 + $0x8] sm:$0xff]  }
  0x10   : > { %451 = vmatpush.bf16.msra.mxu0 %v2332_v1  ;;  %2470 = vmatpush.bf16.msra.mxu1 %v2332_v1  ;;  %v2383_v4 = vld [vmem:[%s2613_s17] sm:$0xff]   ;;  %v2454_v7 = vld [vmem:[%s2613_s17 + $0x10] sm:$0xff]   ;;  %v2328_v11 = vld [vmem:[%s2608_s14 + $0x28] sm:$0xff]  ;;  %v2388_v17 = vunpack.c.l.bf16 %v2453_v8  ;;  %v2389_v18 = vunpack.c.h.bf16 %v2453_v8 }
  0x11   : > { %2471 = vmatpush.bf16.msra.mxu2 %v2332_v1  ;;  %2472 = vmatpush.bf16.msra.mxu3 %v2332_v1  ;;  %v2384_v5 = vunpack.c.l.bf16 %v2383_v4  ;;  %v2385_v6 = vunpack.c.h.bf16 %v2383_v4  ;;  %v2392_v9 = vunpack.c.l.bf16 %v2454_v7  ;;  %v2393_v10 = vunpack.c.h.bf16 %v2454_v7  ;;  %v2455_v13 = vld [vmem:[%s2613_s17 + $0x18] sm:$0xff]   ;;  %v2456_v15 = vld [vmem:[%s2613_s17 + $0x20] sm:$0xff]   ;;  %v2457_v26 = vld [vmem:[%s2613_s17 + $0x28] sm:$0xff]  }
  0x12   : > { %v2331_v16 = vld [vmem:[%s2608_s14 + $0x40] sm:$0xff]  ;;  %v2400_v19 = vunpack.c.l.bf16 %v2456_v15  ;;  %v2401_v20 = vunpack.c.h.bf16 %v2456_v15  ;;  %v2396_v22 = vunpack.c.l.bf16 %v2455_v13  ;;  %v2397_v23 = vunpack.c.h.bf16 %v2455_v13  ;;  %v2458_v30 = vld [vmem:[%s2613_s17 + $0x30] sm:$0xff]   ;;  %v2459_v33 = vld [vmem:[%s2613_s17 + $0x38] sm:$0xff]  }
  0x13   : > { %2016 = vmatmul.msk.bf16.vlgmr.msra.gmra.mxu0 %vm416_vm0, %v2323_v2  ;;  %2018 = vmatmul.msk.bf16.vlgmr.msra.gmra.mxu1 %vm416_vm0, %v2325_v3  ;;  %v2485_v12 = vpack.i.bf16 %v2385_v6, %v2384_v5  ;;  %v2495_v14 = vpack.i.bf16 %v2393_v10, %v2392_v9  ;;  %v2490_v28 = vpack.i.bf16 %v2389_v18, %v2388_v17  ;;  %v2404_v31 = vunpack.c.l.bf16 %v2457_v26  ;;  %v2324_v35 = vld [vmem:[%s2608_s14 + $0x8] sm:$0xff]  ;;  %v2326_v36 = vld [vmem:[%s2608_s14 + $0x18] sm:$0xff]  ;;  %v2329_v42 = vld [vmem:[%s2608_s14 + $0x30] sm:$0xff] }
  0x14   : > { %2021 = vmatmul.msk.bf16.vlgmr.msra.gmra.mxu2 %vm416_vm0, %v2328_v11  ;;  %2024 = vmatmul.msk.bf16.vlgmr.msra.gmra.mxu3 %vm416_vm0, %v2331_v16  ;;  %v2505_v25 = vpack.i.bf16 %v2401_v20, %v2400_v19  ;;  %v2500_v29 = vpack.i.bf16 %v2397_v23, %v2396_v22  ;;  %v2405_v32 = vunpack.c.h.bf16 %v2457_v26  ;;  %v2408_v37 = vunpack.c.l.bf16 %v2458_v30  ;;  %v2327_v45 = vld [vmem:[%s2608_s14 + $0x20] sm:$0xff]  ;;  %v2330_v46 = vld [vmem:[%s2608_s14 + $0x38] sm:$0xff]  ;;  %v2356_v55 = vld [vmem:[%s2967_s4 + $0xb0] sm:$0xff] }
  0x15   : > { %2486 = vrot.lane.b32.xlu0 %v2485_v12, %s2541_s18  ;;  %2496 = vrot.lane.b32.xlu1 %v2495_v14, %s2541_s18  ;;  %v2409_v38 = vunpack.c.h.bf16 %v2458_v30  ;;  %v2412_v40 = vunpack.c.l.bf16 %v2459_v33  ;;  %v2413_v41 = vunpack.c.h.bf16 %v2459_v33  ;;  %v2357_v51 = vld [vmem:[%s2967_s4 + $0xb8] sm:$0xff]  ;;  %v2364_v56 = vld [vmem:[%s2967_s4 + $0xf0] sm:$0xff] }
  0x16   : > { %877 = vmatpush.bf16.msrb.mxu2 %v2341_v21  ;;  %776 = vmatpush.bf16.msrb.mxu1 %v2349_v24  ;;  %v2510_v39 = vpack.i.bf16 %v2405_v32, %v2404_v31  ;;  %v2365_v52 = vld [vmem:[%s2967_s4 + $0xf8] sm:$0xff]  ;;  %v2335_v58 = vld [vmem:[%s2967_s4 + $0x8] sm:$0xff]  ;;  %v2344_v61 = vld [vmem:[%s2967_s4 + $0x50] sm:$0xff] }
  0x17   : > { %2506 = vrot.lane.b32.xlu2 %v2505_v25, %s2541_s18  ;;  %v2515_v43 = vpack.i.bf16 %v2409_v38, %v2408_v37  ;;  %v2520_v44 = vpack.i.bf16 %v2413_v41, %v2412_v40  ;;  %1021 = vmatpush.bf16.msrb.mxu3 %v2357_v51  ;;  %v2345_v57 = vld [vmem:[%s2967_s4 + $0x58] sm:$0xff]  ;;  %v2355_v59 = vld [vmem:[%s2967_s4 + $0xa8] sm:$0xff]  ;;  %v2334_v62 = vld [vmem:[%s2967_s4] sm:$0xff] }
  0x18   : > { %1182 = vmatpush.bf16.msrb.mxu0 %v2365_v52  ;;  %v2363_v60 = vld [vmem:[%s2967_s4 + $0xe8] sm:$0xff]  ;;  %v2354_v63 = vld [vmem:[%s2967_s4 + $0xa0] sm:$0xff]  ;;  %v2353_v2 = vld [vmem:[%s2967_s4 + $0x98] sm:$0xff] }
  0x19   : > { %v2362_v0 = vld [vmem:[%s2967_s4 + $0xe0] sm:$0xff]  ;;  %v2343_v1 = vld [vmem:[%s2967_s4 + $0x48] sm:$0xff]  ;;  %v2361_v3 = vld [vmem:[%s2967_s4 + $0xd8] sm:$0xff] }
  0x1a   : > { %878 = vmatpush.bf16.msrb.mxu2 %v2340_v27  ;;  %777 = vmatpush.bf16.msrb.mxu1 %v2348_v47  ;;  %v2342_v4 = vld [vmem:[%s2967_s4 + $0x40] sm:$0xff]  ;;  %v2352_v5 = vld [vmem:[%s2967_s4 + $0x90] sm:$0xff]  ;;  %v2351_v12 = vld [vmem:[%s2967_s4 + $0x88] sm:$0xff] }
  0x1b   : > { %1022 = vmatpush.bf16.msrb.mxu3 %v2356_v55  ;;  %v2360_v6 = vld [vmem:[%s2967_s4 + $0xd0] sm:$0xff]  ;;  %v2460_v7 = vld [vmem:[%s2613_s17 + $0x40] sm:$0xff]   ;;  %v2359_v13 = vld [vmem:[%s2967_s4 + $0xc8] sm:$0xff]  ;;  %s2474_s17 = smul.u32 60, %s2973_s28 }
  0x1c   : > { %1183 = vmatpush.bf16.msrb.mxu0 %v2364_v56  ;;  %v2416_v8 = vunpack.c.l.bf16 %v2460_v7  ;;  %v2417_v9 = vunpack.c.h.bf16 %v2460_v7  ;;  %v2737_v10 = vld [vmem:[%s2966_s3] ss:$0 sm:$0xff]  ;;  %v2369_v52 = vld [vmem:[%s2969_s6 + $0x18] sm:$0xff] }
  0x1d   : > { %2491 = vrot.lane.b32.xlu0 %v2490_v28, %s2541_s18  ;;  %2501 = vrot.lane.b32.xlu1 %v2500_v29, %s2541_s18  ;;  %v2350_v19 = vld [vmem:[%s2967_s4 + $0x80] sm:$0xff]  ;;  %s2937_s9 = scalar_lea.vmem %s2971_s8, %s2474_s17 }
  0x1e   : > { %879 = vmatpush.bf16.msrb.mxu2 %v2339_v34  ;;  %778 = vmatpush.bf16.msrb.mxu1 %v2347_v49  ;;  %v2525_v14 = vpack.i.bf16 %v2417_v9, %v2416_v8  ;;  %v2358_v20 = vld [vmem:[%s2967_s4 + $0xc0] sm:$0xff] }
  0x1f   : > { %2511 = vrot.lane.b32.xlu2 %v2510_v39, %s2541_s18  ;;  %1023 = vmatpush.bf16.msrb.mxu3 %v2355_v59 }
  0x20   : > { %1184 = vmatpush.bf16.msrb.mxu0 %v2363_v60 }
  0x22   : > { %880 = vmatpush.bf16.msrb.mxu2 %v2338_v48  ;;  %779 = vmatpush.bf16.msrb.mxu1 %v2346_v53  ;;  %v2377_v53 = vld [vmem:[%s2969_s6 + $0x58] sm:$0xff] }
  0x23   : > { %2017 = vmatmul.msk.bf16.gmra.mxu0 %vm416_vm0, %v2324_v35  ;;  %2019 = vmatmul.msk.bf16.gmra.mxu1 %vm416_vm0, %v2326_v36 }
  0x24   : > { %2022 = vmatmul.msk.bf16.gmra.mxu2 %vm416_vm0, %v2329_v42  ;;  %1024 = vmatpush.bf16.msrb.mxu3 %v2354_v63 }
  0x25   : > { %2516 = vrot.lane.b32.xlu0 %v2515_v43, %s2541_s18  ;;  %2521 = vrot.lane.b32.xlu1 %v2520_v44, %s2541_s18 }
  0x26   : > { %881 = vmatpush.bf16.msrb.mxu2 %v2337_v50  ;;  %780 = vmatpush.bf16.msrb.mxu1 %v2345_v57 }
  0x27   : > { %1185 = vmatpush.bf16.msrb.mxu0 %v2362_v0  ;;  %2526 = vrot.lane.b32.xlu2 %v2525_v14, %s2541_s18 }
  0x28   : > { %1025 = vmatpush.bf16.msrb.mxu3 %v2353_v2 }
  0x2a   : > { %882 = vmatpush.bf16.msrb.mxu2 %v2336_v54  ;;  %781 = vmatpush.bf16.msrb.mxu1 %v2344_v61 }
  0x2b   : > { %1186 = vmatpush.bf16.msrb.mxu0 %v2361_v3 }
  0x2c   : > { %1026 = vmatpush.bf16.msrb.mxu3 %v2352_v5 }
  0x2e   : > { %883 = vmatpush.bf16.msrb.mxu2 %v2335_v58  ;;  %782 = vmatpush.bf16.msrb.mxu1 %v2343_v1 }
  0x2f   : > { %1187 = vmatpush.bf16.msrb.mxu0 %v2360_v6  ;;  %v2381_v6 = vld [vmem:[%s2969_s6 + $0x78] sm:$0xff] }
  0x30   : > { %1027 = vmatpush.bf16.msrb.mxu3 %v2351_v12 }
  0x32   : > { %884 = vmatpush.bf16.msrb.mxu2 %v2334_v62  ;;  %783 = vmatpush.bf16.msrb.mxu1 %v2342_v4  ;;  %v2373_v4 = vld [vmem:[%s2969_s6 + $0x38] sm:$0xff] }
  0x33   : > { %2020 = vmatmul.msk.bf16.gmra.mxu1 %vm416_vm0, %v2327_v45  ;;  %1188 = vmatpush.bf16.msrb.mxu0 %v2359_v13 }
  0x34   : > { %2023 = vmatmul.msk.bf16.gmra.mxu2 %vm416_vm0, %v2330_v46  ;;  %1028 = vmatpush.bf16.msrb.mxu3 %v2350_v19 }
  0x36   : > { %1518 = vmatpush.bf16.msra.mxu2 %v2369_v52  ;;  %1422 = vmatpush.bf16.msra.mxu1 %v2373_v4 }
  0x37   : > { %1189 = vmatpush.bf16.msrb.mxu0 %v2358_v20 }
  0x38   : > { %1646 = vmatpush.bf16.msra.mxu3 %v2377_v53 }
  0x3b   : > { %1789 = vmatpush.bf16.msra.mxu0 %v2381_v6 }
  0x71   : > { %v2507_v50 = vpop.permute.xlu2 %2506 }
  0x72   : > { %v2508_v56 = vunpack.i.l.bf16 %v2507_v50  ;;  %v2509_v8 = vunpack.i.h.bf16 %v2507_v50 }
  0x79   : > { %v2512_v5 = vpop.permute.xlu2 %2511 }
  0x7a   : > { %v2513_v14 = vunpack.i.l.bf16 %v2512_v5 }
  0x87   : > { %v2487_v11 = vpop.permute.xlu0 %2486  ;;  %v2497_v15 = vpop.permute.xlu1 %2496 }
  0x88   : > { %v2488_v17 = vunpack.i.l.bf16 %v2487_v11  ;;  %v2498_v23 = vunpack.i.l.bf16 %v2497_v15  ;;  %v2489_v25 = vunpack.i.h.bf16 %v2487_v11  ;;  %v2499_v29 = vunpack.i.h.bf16 %v2497_v15 }
  0x89   : > { %v2514_v15 = vunpack.i.h.bf16 %v2512_v5 }
  0x8f   : > { %v2492_v30 = vpop.permute.xlu0 %2491  ;;  %v2502_v31 = vpop.permute.xlu1 %2501 }
  0x90   : > { %v453_v16 = vpop.f32.mrf.mxu0  ;;  %v463_v18 = vpop.f32.mrf.mxu1  ;;  %v2493_v33 = vunpack.i.l.bf16 %v2492_v30  ;;  %v2503_v38 = vunpack.i.l.bf16 %v2502_v31  ;;  %v2494_v41 = vunpack.i.h.bf16 %v2492_v30  ;;  %v2504_v47 = vunpack.i.h.bf16 %v2502_v31 }
  0x91   : > { %v454_v21 = vadd.f32 %v2737_v10, %v453_v16  ;;  %v464_v22 = vadd.f32 %v2737_v10, %v463_v18 }
  0x93   : > { %498 = vst.msk [vmem:[#allocation2] sm:$0xff] %vm329_vm1, %v454_v21 }
  0x94   : > { %625 = vst.msk [vmem:[#allocation2] sm:$0xff] %vm624_vm2, %v2488_v17 }
  0x95   : > { %502 = vst.msk [vmem:[#allocation2 + $0x20] sm:$0xff] %vm329_vm1, %v464_v22 }
  0x96   : > { %629 = vst.msk [vmem:[#allocation2 + $0x20] sm:$0xff] %vm624_vm2, %v2498_v23 }
  0x97   : > { %v478_v51 = vpop.f32.mrf.mxu2  ;;  %v2522_v50 = vpop.permute.xlu1 %2521 }
  0x98   : > { %v455_v24 = vpop.f32.mrf.mxu0  ;;  %v465_v26 = vpop.f32.mrf.mxu1  ;;  %v479_v54 = vadd.f32 %v2737_v10, %v478_v51  ;;  %v2372_v51 = vld [vmem:[%s2969_s6 + $0x30] sm:$0xff]  ;;  %v2524_v53 = vunpack.i.h.bf16 %v2522_v50 }
  0x99   : > { %v456_v27 = vadd.f32 %v2737_v10, %v455_v24  ;;  %v466_v28 = vadd.f32 %v2737_v10, %v465_v26  ;;  %1423 = vmatpush.bf16.msra.mxu1 %v2372_v51 }
  0x9a   : > { %508 = vst.msk [vmem:[#allocation2 + $0x50] sm:$0xff] %vm329_vm1, %v479_v54  ;;  %v2523_v54 = vunpack.i.l.bf16 %v2522_v50 }
  0x9b   : > { %499 = vst.msk [vmem:[#allocation2 + $0x8] sm:$0xff] %vm329_vm1, %v456_v27  ;;  %v643_v36 = vld [vmem:[#allocation2] sm:$0xff] }
  0x9c   : > { %626 = vst.msk [vmem:[#allocation2 + $0x8] sm:$0xff] %vm624_vm2, %v2489_v25 }
  0x9d   : > { %503 = vst.msk [vmem:[#allocation2 + $0x28] sm:$0xff] %vm329_vm1, %v466_v28  ;;  %v647_v17 = vld [vmem:[#allocation2 + $0x20] sm:$0xff] }
  0x9e   : > { %630 = vst.msk [vmem:[#allocation2 + $0x28] sm:$0xff] %vm624_vm2, %v2499_v29  ;;  %v2517_v29 = vpop.permute.xlu0 %2516 }
  0x9f   : > { %v480_v3 = vpop.f32.mrf.mxu2  ;;  %635 = vst.msk [vmem:[#allocation2 + $0x50] sm:$0xff] %vm624_vm2, %v2513_v14  ;;  %v2519_v31 = vunpack.i.h.bf16 %v2517_v29 }
  0xa0   : > { %v458_v32 = vpop.f32.mrf.mxu0  ;;  %v468_v34 = vpop.f32.mrf.mxu1  ;;  %v481_v9 = vadd.f32 %v2737_v10, %v480_v3 }
  0xa1   : > { %v459_v35 = vadd.f32 %v2737_v10, %v458_v32  ;;  %v469_v37 = vadd.f32 %v2737_v10, %v468_v34  ;;  %v2518_v32 = vunpack.i.l.bf16 %v2517_v29  ;;  %v2379_v29 = vld [vmem:[%s2969_s6 + $0x68] sm:$0xff] }
  0xa2   : > { %509 = vst.msk [vmem:[#allocation2 + $0x58] sm:$0xff] %vm329_vm1, %v481_v9 }
  0xa3   : > { %500 = vst.msk [vmem:[#allocation2 + $0x10] sm:$0xff] %vm329_vm1, %v459_v35  ;;  %v644_v39 = vld [vmem:[#allocation2 + $0x8] sm:$0xff] }
  0xa4   : > { %627 = vst.msk [vmem:[#allocation2 + $0x10] sm:$0xff] %vm624_vm2, %v2493_v33  ;;  %v660_v40 = vpack.c.bf16 %v644_v39, %v643_v36  ;;  %v685_v45 = vld [vmem:[#allocation2 + $0x1] sm:$0xff] }
  0xa5   : > { %504 = vst.msk [vmem:[#allocation2 + $0x30] sm:$0xff] %vm329_vm1, %v469_v37  ;;  %v648_v18 = vld [vmem:[#allocation2 + $0x28] sm:$0xff] }
  0xa6   : > { %885 = vmatmul.bf16.vlgmr.msrb.gmra.mxu2 %v660_v40  ;;  %631 = vst.msk [vmem:[#allocation2 + $0x30] sm:$0xff] %vm624_vm2, %v2503_v38  ;;  %v933_v22 = vld [vmem:[#allocation2 + $0x24] sm:$0xff]  ;;  %v662_v23 = vpack.c.bf16 %v648_v18, %v647_v17 }
  0xa7   : > { %636 = vst.msk [vmem:[#allocation2 + $0x58] sm:$0xff] %vm624_vm2, %v2514_v15  ;;  %v483_v19 = vpop.f32.mrf.mxu2  ;;  %v1094_v25 = vld [vmem:[#allocation2 + $0x25] sm:$0xff]  ;;  %v653_v15 = vld [vmem:[#allocation2 + $0x50] sm:$0xff] }
  0xa8   : > { %v460_v42 = vpop.f32.mrf.mxu0  ;;  %v470_v43 = vpop.f32.mrf.mxu1  ;;  %v484_v20 = vadd.f32 %v2737_v10, %v483_v19  ;;  %v689_v33 = vld [vmem:[#allocation2 + $0x21] sm:$0xff] }
  0xa9   : > { %v461_v44 = vadd.f32 %v2737_v10, %v460_v42  ;;  %v471_v46 = vadd.f32 %v2737_v10, %v470_v43 }
  0xaa   : > { %510 = vst.msk [vmem:[#allocation2 + $0x60] sm:$0xff] %vm329_vm1, %v484_v20 }
  0xab   : > { %501 = vst.msk [vmem:[#allocation2 + $0x18] sm:$0xff] %vm329_vm1, %v461_v44  ;;  %v686_v48 = vld [vmem:[#allocation2 + $0x9] sm:$0xff] }
  0xac   : > { %628 = vst.msk [vmem:[#allocation2 + $0x18] sm:$0xff] %vm624_vm2, %v2494_v41  ;;  %v702_v49 = vpack.c.bf16 %v686_v48, %v685_v45  ;;  %v645_v57 = vld [vmem:[#allocation2 + $0x10] sm:$0xff] }
  0xad   : > { %505 = vst.msk [vmem:[#allocation2 + $0x38] sm:$0xff] %vm329_vm1, %v471_v46  ;;  %v930_v59 = vld [vmem:[#allocation2 + $0xc] sm:$0xff] }
  0xae   : > { %784 = vmatmul.bf16.vlgmr.msrb.gmra.mxu1 %v702_v49  ;;  %632 = vst.msk [vmem:[#allocation2 + $0x38] sm:$0xff] %vm624_vm2, %v2504_v47  ;;  %v1091_v60 = vld [vmem:[#allocation2 + $0xd] sm:$0xff] }
  0xaf   : > { %v485_v28 = vpop.f32.mrf.mxu2  ;;  %v690_v34 = vld [vmem:[#allocation2 + $0x29] sm:$0xff]  ;;  %637 = vst.msk [vmem:[#allocation2 + $0x60] sm:$0xff] %vm624_vm2, %v2518_v32  ;;  %v939_v18 = vld [vmem:[#allocation2 + $0x54] sm:$0xff] }
  0xb0   : > { %v473_v55 = vpop.f32.mrf.mxu1  ;;  %v486_v30 = vadd.f32 %v2737_v10, %v485_v28  ;;  %v704_v35 = vpack.c.bf16 %v690_v34, %v689_v33  ;;  %v649_v36 = vld [vmem:[#allocation2 + $0x30] sm:$0xff]  ;;  %v2371_v28 = vld [vmem:[%s2969_s6 + $0x28] sm:$0xff] }
  0xb1   : > { %v474_v58 = vadd.f32 %v2737_v10, %v473_v55  ;;  %v934_v40 = vld [vmem:[#allocation2 + $0x2c] sm:$0xff]  ;;  %1424 = vmatpush.bf16.msra.mxu1 %v2371_v28 }
  0xb2   : > { %511 = vst.msk [vmem:[#allocation2 + $0x68] sm:$0xff] %vm329_vm1, %v486_v30  ;;  %v1095_v43 = vld [vmem:[#allocation2 + $0x2d] sm:$0xff]  ;;  %v2542_v30 = vmov 0.0  }
  0xb3   : > { %v646_v61 = vld [vmem:[#allocation2 + $0x18] sm:$0xff]  ;;  %506 = vst.msk [vmem:[#allocation2 + $0x40] sm:$0xff] %vm329_vm1, %v474_v58  ;;  %v2368_v47 = vld [vmem:[%s2969_s6 + $0x10] sm:$0xff] }
  0xb4   : > { %v931_v62 = vld [vmem:[#allocation2 + $0x14] sm:$0xff]  ;;  %v661_v0 = vpack.c.bf16 %v646_v61, %v645_v57  ;;  %633 = vst.msk [vmem:[#allocation2 + $0x40] sm:$0xff] %vm624_vm2, %v2508_v56  ;;  %v932_v21 = vld [vmem:[#allocation2 + $0x1c] sm:$0xff]  ;;  %1519 = vmatpush.bf16.msra.mxu2 %v2368_v47 }
  0xb5   : > { %v1092_v63 = vld [vmem:[#allocation2 + $0x15] sm:$0xff]  ;;  %v947_v1 = vpack.c.bf16 %v931_v62, %v930_v59  ;;  %v1093_v24 = vld [vmem:[#allocation2 + $0x1d] sm:$0xff]  ;;  %v948_v26 = vpack.c.bf16 %v933_v22, %v932_v21  ;;  %638 = vst.msk [vmem:[#allocation2 + $0x68] sm:$0xff] %vm624_vm2, %v2519_v31  ;;  %v493_v59 = vpop.f32.mrf.mxu3 }
  0xb6   : > { %v1108_v2 = vpack.c.bf16 %v1092_v63, %v1091_v60  ;;  %890 = vmatmul.bf16.gmra.mxu2 %v661_v0  ;;  %v687_v11 = vld [vmem:[#allocation2 + $0x11] sm:$0xff]  ;;  %v688_v12 = vld [vmem:[#allocation2 + $0x19] sm:$0xff]  ;;  %v1109_v27 = vpack.c.bf16 %v1094_v25, %v1093_v24  ;;  %v494_v62 = vadd.f32 %v2737_v10, %v493_v59  ;;  %v2375_v24 = vld [vmem:[%s2969_s6 + $0x48] sm:$0xff]  ;;  %327 = vst [vmem:[#allocation2 + $0x90] sm:$0xff] %v2542_v30 }
  0xb7   : > { %1029 = vmatmul.bf16.vlgmr.msrb.gmra.mxu3 %v947_v1  ;;  %v703_v16 = vpack.c.bf16 %v688_v12, %v687_v11  ;;  %v650_v37 = vld [vmem:[#allocation2 + $0x38] sm:$0xff]  ;;  %v488_v38 = vpop.f32.mrf.mxu2  ;;  %v2376_v49 = vld [vmem:[%s2969_s6 + $0x50] sm:$0xff]  ;;  %v2527_v11 = vpop.permute.xlu2 %2526  ;;  %v655_v31 = vld [vmem:[#allocation2 + $0x60] sm:$0xff]  ;;  %330 = vst.msk [vmem:[#allocation3 + $0x84] sm:$0xff] %vm329_vm1, %v2542_v30 }
  0xb8   : > { %1190 = vmatmul.bf16.vlgmr.msrb.gmra.mxu0 %v1108_v2  ;;  %v475_v7 = vpop.f32.mrf.mxu1  ;;  %v489_v39 = vadd.f32 %v2737_v10, %v488_v38  ;;  %v935_v41 = vld [vmem:[#allocation2 + $0x34] sm:$0xff]  ;;  %v663_v42 = vpack.c.bf16 %v650_v37, %v649_v36  ;;  %1647 = vmatpush.bf16.msra.mxu3 %v2376_v49  ;;  %514 = vst.msk [vmem:[#allocation2 + $0x80] sm:$0xff] %vm329_vm1, %v494_v62  ;;  %v2529_v12 = vunpack.i.h.bf16 %v2527_v11  ;;  %v940_v33 = vld [vmem:[#allocation2 + $0x5c] sm:$0xff] }
  0xb9   : > { %v476_v13 = vadd.f32 %v2737_v10, %v475_v7  ;;  %v1096_v44 = vld [vmem:[#allocation2 + $0x35] sm:$0xff]  ;;  %v949_v45 = vpack.c.bf16 %v935_v41, %v934_v40  ;;  %v1101_v36 = vld [vmem:[#allocation2 + $0x5d] sm:$0xff] }
  0xba   : > { %512 = vst.msk [vmem:[#allocation2 + $0x70] sm:$0xff] %vm329_vm1, %v489_v39  ;;  %v1110_v46 = vpack.c.bf16 %v1096_v44, %v1095_v43  ;;  %v691_v55 = vld [vmem:[#allocation2 + $0x31] sm:$0xff]  ;;  %v2374_v62 = vld [vmem:[%s2969_s6 + $0x40] sm:$0xff] }
  0xbb   : > { %507 = vst.msk [vmem:[#allocation2 + $0x48] sm:$0xff] %vm329_vm1, %v476_v13  ;;  %v692_v56 = vld [vmem:[#allocation2 + $0x39] sm:$0xff]  ;;  %v2380_v58 = vld [vmem:[%s2969_s6 + $0x70] sm:$0xff]  ;;  %v2528_v13 = vunpack.i.l.bf16 %v2527_v11 }
  0xbc   : > { %634 = vst.msk [vmem:[#allocation2 + $0x48] sm:$0xff] %vm624_vm2, %v2509_v8  ;;  %v705_v57 = vpack.c.bf16 %v692_v56, %v691_v55  ;;  %v651_v60 = vld [vmem:[#allocation2 + $0x40] sm:$0xff]  ;;  %1790 = vmatpush.bf16.msra.mxu0 %v2380_v58  ;;  %v695_v25 = vld [vmem:[#allocation2 + $0x51] sm:$0xff]  ;;  %1648 = vmatpush.bf16.msra.mxu3 %v2375_v24  ;;  %v656_v32 = vld [vmem:[#allocation2 + $0x68] sm:$0xff] }
  0xbd   : > { %639 = vst.msk [vmem:[#allocation2 + $0x70] sm:$0xff] %vm624_vm2, %v2523_v54  ;;  %v936_v63 = vld [vmem:[#allocation2 + $0x3c] sm:$0xff]  ;;  %v495_v6 = vpop.f32.mrf.mxu3  ;;  %v941_v34 = vld [vmem:[#allocation2 + $0x64] sm:$0xff] }
  0xbe   : > { %789 = vmatmul.bf16.gmra.mxu1 %v703_v16  ;;  %v1097_v2 = vld [vmem:[#allocation2 + $0x3d] sm:$0xff]  ;;  %v496_v7 = vadd.f32 %v2737_v10, %v495_v6  ;;  %641 = vst.msk [vmem:[#allocation2 + $0x80] sm:$0xff] %vm624_vm2, %v2528_v13  ;;  %v1102_v37 = vld [vmem:[#allocation2 + $0x65] sm:$0xff]  ;;  %v952_v38 = vpack.c.bf16 %v941_v34, %v940_v33 }
  0xbf   : > { %v490_v48 = vpop.f32.mrf.mxu2  ;;  %v654_v16 = vld [vmem:[#allocation2 + $0x58] sm:$0xff]  ;;  %v1113_v39 = vpack.c.bf16 %v1102_v37, %v1101_v36  ;;  %v697_v40 = vld [vmem:[#allocation2 + $0x61] sm:$0xff] }
  0xc0   : > { %v491_v52 = vadd.f32 %v2737_v10, %v490_v48  ;;  %515 = vst.msk [vmem:[#allocation2 + $0x88] sm:$0xff] %vm329_vm1, %v496_v7  ;;  %v665_v19 = vpack.c.bf16 %v654_v16, %v653_v15  ;;  %v1100_v10 = vld [vmem:[#allocation2 + $0x55] sm:$0xff]  ;;  %1791 = vmatpush.bf16.msra.mxu0 %v2379_v29  ;;  %1649 = vmatpush.bf16.msra.mxu3 %v2374_v62 }
  0xc1   : > { %642 = vst.msk [vmem:[#allocation2 + $0x88] sm:$0xff] %vm624_vm2, %v2529_v12 }
  0xc2   : > { %513 = vst.msk [vmem:[#allocation2 + $0x78] sm:$0xff] %vm329_vm1, %v491_v52 }
  0xc3   : > { %640 = vst.msk [vmem:[#allocation2 + $0x78] sm:$0xff] %vm624_vm2, %v2524_v53  ;;  %v652_v61 = vld [vmem:[#allocation2 + $0x48] sm:$0xff] }
  0xc4   : > { %v937_v0 = vld [vmem:[#allocation2 + $0x44] sm:$0xff]  ;;  %v664_v1 = vpack.c.bf16 %v652_v61, %v651_v60  ;;  %v938_v17 = vld [vmem:[#allocation2 + $0x4c] sm:$0xff] }
  0xc5   : > { %v1098_v3 = vld [vmem:[#allocation2 + $0x45] sm:$0xff]  ;;  %v950_v4 = vpack.c.bf16 %v937_v0, %v936_v63  ;;  %v1099_v20 = vld [vmem:[#allocation2 + $0x4d] sm:$0xff]  ;;  %v951_v21 = vpack.c.bf16 %v939_v18, %v938_v17  ;;  %v659_v55 = vld [vmem:[#allocation2 + $0x80] sm:$0xf] }
  0xc6   : > { %895 = vmatmul.bf16.gmra.mxu2 %v662_v23  ;;  %v1111_v5 = vpack.c.bf16 %v1098_v3, %v1097_v2  ;;  %v693_v8 = vld [vmem:[#allocation2 + $0x41] sm:$0xff]  ;;  %v694_v9 = vld [vmem:[#allocation2 + $0x49] sm:$0xff]  ;;  %v1112_v22 = vpack.c.bf16 %v1100_v10, %v1099_v20  ;;  %v668_v59 = vpack.c.bf16 %v659_v55, %v659_v55 }
  0xc7   : > { %1034 = vmatmul.bf16.gmra.mxu3 %v948_v26  ;;  %v706_v14 = vpack.c.bf16 %v694_v9, %v693_v8  ;;  %v2367_v23 = vld [vmem:[%s2969_s6 + $0x8] sm:$0xff]  ;;  %v696_v26 = vld [vmem:[#allocation2 + $0x59] sm:$0xff]  ;;  %v657_v43 = vld [vmem:[#allocation2 + $0x70] sm:$0xff] }
  0xc8   : > { %1195 = vmatmul.bf16.gmra.mxu0 %v1109_v27  ;;  %1520 = vmatpush.bf16.msra.mxu2 %v2367_v23  ;;  %v707_v27 = vpack.c.bf16 %v696_v26, %v695_v25  ;;  %v698_v41 = vld [vmem:[#allocation2 + $0x69] sm:$0xff]  ;;  %v2366_v61 = vld [vmem:[%s2969_s6] sm:$0xff] }
  0xc9   : > { %v1103_v48 = vld [vmem:[#allocation2 + $0x6d] sm:$0xff]  ;;  %v1106_v60 = vld [vmem:[#allocation2 + $0x85] sm:$0xff]  ;;  %v701_v2 = vld [vmem:[#allocation2 + $0x81] sm:$0xf] }
  0xca   : > { %v658_v44 = vld [vmem:[#allocation2 + $0x78] sm:$0xff]  ;;  %v2370_v3 = vld [vmem:[%s2969_s6 + $0x20] sm:$0xff]  ;;  %v710_v6 = vpack.c.bf16 %v701_v2, %v701_v2  ;;  %v946_v8 = vld [vmem:[#allocation2 + $0x8c] sm:$0xf] }
  0xcb   : > { %v667_v47 = vpack.c.bf16 %v658_v44, %v657_v43  ;;  %v1104_v49 = vld [vmem:[#allocation2 + $0x75] sm:$0xff]  ;;  %v1105_v58 = vld [vmem:[#allocation2 + $0x7d] sm:$0xff]  ;;  %1425 = vmatpush.bf16.msra.mxu1 %v2370_v3  ;;  %v1107_v9 = vld [vmem:[#allocation2 + $0x8d] sm:$0xf]  ;;  %v955_v13 = vpack.c.bf16 %v946_v8, %v946_v8 }
  0xcc   : > { %v1114_v51 = vpack.c.bf16 %v1104_v49, %v1103_v48  ;;  %v699_v52 = vld [vmem:[#allocation2 + $0x71] sm:$0xff]  ;;  %v700_v53 = vld [vmem:[#allocation2 + $0x79] sm:$0xff]  ;;  %1521 = vmatpush.bf16.msra.mxu2 %v2366_v61  ;;  %v1115_v0 = vpack.c.bf16 %v1106_v60, %v1105_v58 }
  0xcd   : > { %v709_v54 = vpack.c.bf16 %v700_v53, %v699_v52  ;;  %v944_v56 = vld [vmem:[#allocation2 + $0x7c] sm:$0xff] }
  0xce   : > { %794 = vmatmul.bf16.gmra.mxu1 %v704_v35  ;;  %v666_v35 = vpack.c.bf16 %v656_v32, %v655_v31 }
  0xd6   : > { %900 = vmatmul.bf16.gmra.mxu2 %v663_v42  ;;  %v708_v42 = vpack.c.bf16 %v698_v41, %v697_v40 }
  0xd7   : > { %1039 = vmatmul.bf16.gmra.mxu3 %v949_v45  ;;  %v942_v45 = vld [vmem:[#allocation2 + $0x6c] sm:$0xff] }
  0xd8   : > { %1200 = vmatmul.bf16.gmra.mxu0 %v1110_v46  ;;  %v943_v46 = vld [vmem:[#allocation2 + $0x74] sm:$0xff] }
  0xd9   : > { %v953_v50 = vpack.c.bf16 %v943_v46, %v942_v45 }
  0xde   : > { %799 = vmatmul.bf16.gmra.mxu1 %v705_v57  ;;  %v945_v57 = vld [vmem:[#allocation2 + $0x84] sm:$0xff] }
  0xdf   : > { %v954_v63 = vpack.c.bf16 %v945_v57, %v944_v56 }
  0xe6   : > { %905 = vmatmul.bf16.gmra.mxu2 %v664_v1 }
  0xe7   : > { %1044 = vmatmul.bf16.gmra.mxu3 %v950_v4  ;;  %v2378_v4 = vld [vmem:[%s2969_s6 + $0x60] sm:$0xff] }
  0xe8   : > { %1205 = vmatmul.bf16.gmra.mxu0 %v1111_v5 }
  0xe9   : > { %1792 = vmatpush.bf16.msra.mxu0 %v2378_v4 }
  0xee   : > { %804 = vmatmul.bf16.gmra.mxu1 %v706_v14  ;;  %v1116_v14 = vpack.c.bf16 %v1107_v9, %v1107_v9 }
  0xf6   : > { %910 = vmatmul.bf16.gmra.mxu2 %v665_v19  ;;  %v2858_v19 = vld [vmem:[%s2968_s5] ss:$0 sm:$0xff] }
  0xf7   : > { %1049 = vmatmul.bf16.gmra.mxu3 %v951_v21 }
  0xf8   : > { %1210 = vmatmul.bf16.gmra.mxu0 %v1112_v22 }
  0xfe   : > { %809 = vmatmul.bf16.gmra.mxu1 %v707_v27 }
 0x106   : > { %915 = vmatmul.bf16.gmra.mxu2 %v666_v35 }
 0x107   : > { %1054 = vmatmul.bf16.gmra.mxu3 %v952_v38 }
 0x108   : > { %1215 = vmatmul.bf16.gmra.mxu0 %v1113_v39 }
 0x10e   : > { %814 = vmatmul.bf16.gmra.mxu1 %v708_v42 }
 0x116   : > { %920 = vmatmul.bf16.gmra.mxu2 %v667_v47 }
 0x117   : > { %1059 = vmatmul.bf16.gmra.mxu3 %v953_v50 }
 0x118   : > { %1220 = vmatmul.bf16.gmra.mxu0 %v1114_v51 }
 0x11e   : > { %819 = vmatmul.bf16.gmra.mxu1 %v709_v54 }
 0x126   : > { %925 = vmatmul.bf16.gmra.mxu2 %v668_v59 }
 0x127   : > { %1064 = vmatmul.bf16.gmra.mxu3 %v954_v63 }
 0x128   : > { %1225 = vmatmul.bf16.gmra.mxu0 %v1115_v0 }
 0x129   : > { %v886_v1 = vpop.f32.mrf.mxu2 }
 0x12b   : > { %v785_v5 = vpop.f32.mrf.mxu1 }
 0x12c   : > { %v887_v15 = vadd.f32 %v886_v1, %v785_v5 }
 0x12e   : > { %824 = vmatmul.bf16.gmra.mxu1 %v710_v6 }
 0x131   : > { %v888_v7 = vpop.f32.mrf.mxu2 }
 0x133   : > { %v787_v11 = vpop.f32.mrf.mxu1 }
 0x134   : > { %v889_v23 = vadd.f32 %v888_v7, %v787_v11 }
 0x135   : > { %v1191_v12 = vpop.f32.mrf.mxu0 }
 0x137   : > { %1069 = vmatmul.bf16.gmra.mxu3 %v955_v13 }
 0x138   : > { %1230 = vmatmul.bf16.gmra.mxu0 %v1116_v14 }
 0x139   : > { %v891_v16 = vpop.f32.mrf.mxu2 }
 0x13a   : > { %v1030_v17 = vpop.f32.mrf.mxu3 }
 0x13b   : > { %v1074_v18 = vadd.f32 %v1030_v17, %v887_v15  ;;  %v790_v20 = vpop.f32.mrf.mxu1 }
 0x13c   : > { %v892_v32 = vadd.f32 %v891_v16, %v790_v20 }
 0x13d   : > { %v1235_v10 = vadd.f32 %v1191_v12, %v1074_v18  ;;  %v1193_v21 = vpop.f32.mrf.mxu0 }
 0x13f   : > { %v1256_v22 = vadd.f32 %v2858_v19, %v1235_v10 }
 0x141   : > { %v1273_v24 = vmax.f32 %v1256_v22, 0.0  ;;  %v893_v25 = vpop.f32.mrf.mxu2 }
 0x142   : > { %v1032_v26 = vpop.f32.mrf.mxu3 }
 0x143   : > { %1290 = vst.msk [vmem:[#allocation3] sm:$0xff] %vm329_vm1, %v1273_v24  ;;  %v1075_v27 = vadd.f32 %v1032_v26, %v889_v23  ;;  %v792_v28 = vpop.f32.mrf.mxu1 }
 0x144   : > { %v894_v41 = vadd.f32 %v893_v25, %v792_v28 }
 0x145   : > { %v1236_v29 = vadd.f32 %v1193_v21, %v1075_v27  ;;  %v1196_v30 = vpop.f32.mrf.mxu0 }
 0x147   : > { %v1257_v31 = vadd.f32 %v2858_v19, %v1236_v29 }
 0x149   : > { %v1274_v33 = vmax.f32 %v1257_v31, 0.0  ;;  %v896_v34 = vpop.f32.mrf.mxu2 }
 0x14a   : > { %v1035_v35 = vpop.f32.mrf.mxu3  ;;  %v1307_v45 = vld [vmem:[#allocation3] sm:$0xff] }
 0x14b   : > { %1291 = vst.msk [vmem:[#allocation3 + $0x8] sm:$0xff] %vm329_vm1, %v1274_v33  ;;  %v1076_v36 = vadd.f32 %v1035_v35, %v892_v32  ;;  %v795_v37 = vpop.f32.mrf.mxu1 }
 0x14c   : > { %v897_v53 = vadd.f32 %v896_v34, %v795_v37 }
 0x14d   : > { %v1237_v38 = vadd.f32 %v1196_v30, %v1076_v36  ;;  %v1198_v39 = vpop.f32.mrf.mxu0 }
 0x14f   : > { %v1258_v40 = vadd.f32 %v2858_v19, %v1237_v38 }
 0x151   : > { %v1275_v42 = vmax.f32 %v1258_v40, 0.0  ;;  %v898_v43 = vpop.f32.mrf.mxu2 }
 0x152   : > { %v1037_v44 = vpop.f32.mrf.mxu3  ;;  %v1308_v46 = vld [vmem:[#allocation3 + $0x8] sm:$0xff] }
 0x153   : > { %1292 = vst.msk [vmem:[#allocation3 + $0x10] sm:$0xff] %vm329_vm1, %v1275_v42  ;;  %v1077_v47 = vadd.f32 %v1037_v44, %v894_v41  ;;  %v1322_v48 = vpack.c.bf16 %v1308_v46, %v1307_v45  ;;  %v797_v49 = vpop.f32.mrf.mxu1  ;;  %v1338_v57 = vld [vmem:[#allocation3 + $0x1] sm:$0xff] }
 0x154   : > { %v899_v1 = vadd.f32 %v898_v43, %v797_v49 }
 0x155   : > { %v1238_v50 = vadd.f32 %v1198_v39, %v1077_v47  ;;  %v1201_v51 = vpop.f32.mrf.mxu0  ;;  %2249 = vmatmul.msk.bf16.vlgmr.msra.gmra.mxu2 %vm329_vm1, %v1322_v48 }
 0x157   : > { %v1259_v52 = vadd.f32 %v2858_v19, %v1238_v50 }
 0x159   : > { %v1276_v54 = vmax.f32 %v1259_v52, 0.0  ;;  %v901_v55 = vpop.f32.mrf.mxu2 }
 0x15a   : > { %v1040_v56 = vpop.f32.mrf.mxu3  ;;  %v1339_v58 = vld [vmem:[#allocation3 + $0x9] sm:$0xff] }
 0x15b   : > { %1293 = vst.msk [vmem:[#allocation3 + $0x18] sm:$0xff] %vm329_vm1, %v1276_v54  ;;  %v1078_v59 = vadd.f32 %v1040_v56, %v897_v53  ;;  %v1353_v60 = vpack.c.bf16 %v1339_v58, %v1338_v57  ;;  %v800_v61 = vpop.f32.mrf.mxu1  ;;  %v1309_v3 = vld [vmem:[#allocation3 + $0x10] sm:$0xff] }
 0x15c   : > { %v1562_v4 = vld [vmem:[#allocation3 + $0xc] sm:$0xff]  ;;  %v902_v10 = vadd.f32 %v901_v55, %v800_v61 }
 0x15d   : > { %v1239_v62 = vadd.f32 %v1201_v51, %v1078_v59  ;;  %v1203_v63 = vpop.f32.mrf.mxu0  ;;  %2225 = vmatmul.msk.bf16.vlgmr.msra.gmra.mxu1 %vm329_vm1, %v1353_v60  ;;  %v1705_v5 = vld [vmem:[#allocation3 + $0xd] sm:$0xff] }
 0x15f   : > { %v1260_v0 = vadd.f32 %v2858_v19, %v1239_v62 }
 0x161   : > { %v1277_v2 = vmax.f32 %v1260_v0, 0.0  ;;  %v903_v6 = vpop.f32.mrf.mxu2 }
 0x162   : > { %v1042_v7 = vpop.f32.mrf.mxu3  ;;  %v1310_v8 = vld [vmem:[#allocation3 + $0x18] sm:$0xff] }
 0x163   : > { %v1563_v9 = vld [vmem:[#allocation3 + $0x14] sm:$0xff]  ;;  %1294 = vst.msk [vmem:[#allocation3 + $0x20] sm:$0xff] %vm329_vm1, %v1277_v2  ;;  %v1079_v12 = vadd.f32 %v1042_v7, %v899_v1  ;;  %v1323_v13 = vpack.c.bf16 %v1310_v8, %v1309_v3  ;;  %v802_v16 = vpop.f32.mrf.mxu1 }
 0x164   : > { %v1706_v11 = vld [vmem:[#allocation3 + $0x15] sm:$0xff]  ;;  %v1577_v14 = vpack.c.bf16 %v1563_v9, %v1562_v4  ;;  %v904_v32 = vadd.f32 %v903_v6, %v802_v16 }
 0x165   : > { %v1720_v15 = vpack.c.bf16 %v1706_v11, %v1705_v5  ;;  %v1240_v17 = vadd.f32 %v1203_v63, %v1079_v12  ;;  %v1206_v18 = vpop.f32.mrf.mxu0  ;;  %2250 = vmatmul.msk.bf16.gmra.mxu2 %vm329_vm1, %v1323_v13  ;;  %v1340_v24 = vld [vmem:[#allocation3 + $0x11] sm:$0xff] }
 0x166   : > { %2281 = vmatmul.msk.bf16.vlgmr.msra.gmra.mxu3 %vm329_vm1, %v1577_v14 }
 0x167   : > { %2313 = vmatmul.msk.bf16.vlgmr.msra.gmra.mxu0 %vm329_vm1, %v1720_v15  ;;  %v1261_v20 = vadd.f32 %v2858_v19, %v1240_v17 }
 0x169   : > { %v1278_v21 = vmax.f32 %v1261_v20, 0.0  ;;  %v906_v22 = vpop.f32.mrf.mxu2 }
 0x16a   : > { %v1045_v23 = vpop.f32.mrf.mxu3  ;;  %v1341_v25 = vld [vmem:[#allocation3 + $0x19] sm:$0xff] }
 0x16b   : > { %1295 = vst.msk [vmem:[#allocation3 + $0x28] sm:$0xff] %vm329_vm1, %v1278_v21  ;;  %v1080_v26 = vadd.f32 %v1045_v23, %v902_v10  ;;  %v1354_v27 = vpack.c.bf16 %v1341_v25, %v1340_v24  ;;  %v805_v28 = vpop.f32.mrf.mxu1  ;;  %v1311_v34 = vld [vmem:[#allocation3 + $0x20] sm:$0xff] }
 0x16c   : > { %v1564_v35 = vld [vmem:[#allocation3 + $0x1c] sm:$0xff]  ;;  %v907_v50 = vadd.f32 %v906_v22, %v805_v28 }
 0x16d   : > { %v1241_v29 = vadd.f32 %v1206_v18, %v1080_v26  ;;  %v1208_v30 = vpop.f32.mrf.mxu0  ;;  %2226 = vmatmul.msk.bf16.gmra.mxu1 %vm329_vm1, %v1354_v27  ;;  %v1707_v36 = vld [vmem:[#allocation3 + $0x1d] sm:$0xff] }
 0x16f   : > { %v1262_v31 = vadd.f32 %v2858_v19, %v1241_v29 }
 0x171   : > { %v1279_v33 = vmax.f32 %v1262_v31, 0.0  ;;  %v908_v37 = vpop.f32.mrf.mxu2 }
 0x172   : > { %v1047_v38 = vpop.f32.mrf.mxu3  ;;  %v1312_v39 = vld [vmem:[#allocation3 + $0x28] sm:$0xff] }
 0x173   : > { %v1565_v40 = vld [vmem:[#allocation3 + $0x24] sm:$0xff]  ;;  %1296 = vst.msk [vmem:[#allocation3 + $0x30] sm:$0xff] %vm329_vm1, %v1279_v33  ;;  %v1081_v42 = vadd.f32 %v1047_v38, %v904_v32  ;;  %v1324_v43 = vpack.c.bf16 %v1312_v39, %v1311_v34  ;;  %v807_v46 = vpop.f32.mrf.mxu1 }
 0x174   : > { %v1708_v41 = vld [vmem:[#allocation3 + $0x25] sm:$0xff]  ;;  %v1578_v44 = vpack.c.bf16 %v1565_v40, %v1564_v35  ;;  %v909_v62 = vadd.f32 %v908_v37, %v807_v46 }
 0x175   : > { %v1721_v45 = vpack.c.bf16 %v1708_v41, %v1707_v36  ;;  %v1242_v47 = vadd.f32 %v1208_v30, %v1081_v42  ;;  %v1211_v48 = vpop.f32.mrf.mxu0  ;;  %2251 = vmatmul.msk.bf16.gmra.mxu2 %vm329_vm1, %v1324_v43  ;;  %v1342_v54 = vld [vmem:[#allocation3 + $0x21] sm:$0xff] }
 0x176   : > { %2282 = vmatmul.msk.bf16.gmra.mxu3 %vm329_vm1, %v1578_v44 }
 0x177   : > { %2314 = vmatmul.msk.bf16.gmra.mxu0 %vm329_vm1, %v1721_v45  ;;  %v1263_v49 = vadd.f32 %v2858_v19, %v1242_v47 }
 0x179   : > { %v1280_v51 = vmax.f32 %v1263_v49, 0.0  ;;  %v911_v52 = vpop.f32.mrf.mxu2 }
 0x17a   : > { %v1050_v53 = vpop.f32.mrf.mxu3  ;;  %v1343_v55 = vld [vmem:[#allocation3 + $0x29] sm:$0xff] }
 0x17b   : > { %1297 = vst.msk [vmem:[#allocation3 + $0x38] sm:$0xff] %vm329_vm1, %v1280_v51  ;;  %v1082_v56 = vadd.f32 %v1050_v53, %v907_v50  ;;  %v1355_v57 = vpack.c.bf16 %v1343_v55, %v1342_v54  ;;  %v810_v58 = vpop.f32.mrf.mxu1  ;;  %v1313_v0 = vld [vmem:[#allocation3 + $0x30] sm:$0xff] }
 0x17c   : > { %v1566_v1 = vld [vmem:[#allocation3 + $0x2c] sm:$0xff]  ;;  %v912_v17 = vadd.f32 %v911_v52, %v810_v58 }
 0x17d   : > { %v1243_v59 = vadd.f32 %v1211_v48, %v1082_v56  ;;  %v1213_v60 = vpop.f32.mrf.mxu0  ;;  %2227 = vmatmul.msk.bf16.gmra.mxu1 %vm329_vm1, %v1355_v57  ;;  %v1709_v2 = vld [vmem:[#allocation3 + $0x2d] sm:$0xff] }
 0x17f   : > { %v1264_v61 = vadd.f32 %v2858_v19, %v1243_v59 }
 0x181   : > { %v1281_v63 = vmax.f32 %v1264_v61, 0.0  ;;  %v913_v3 = vpop.f32.mrf.mxu2 }
 0x182   : > { %v1052_v4 = vpop.f32.mrf.mxu3  ;;  %v1314_v5 = vld [vmem:[#allocation3 + $0x38] sm:$0xff] }
 0x183   : > { %v1567_v6 = vld [vmem:[#allocation3 + $0x34] sm:$0xff]  ;;  %1298 = vst.msk [vmem:[#allocation3 + $0x40] sm:$0xff] %vm329_vm1, %v1281_v63  ;;  %v1083_v8 = vadd.f32 %v1052_v4, %v909_v62  ;;  %v1325_v9 = vpack.c.bf16 %v1314_v5, %v1313_v0  ;;  %v812_v13 = vpop.f32.mrf.mxu1 }
 0x184   : > { %v1710_v7 = vld [vmem:[#allocation3 + $0x35] sm:$0xff]  ;;  %v1579_v11 = vpack.c.bf16 %v1567_v6, %v1566_v1  ;;  %v914_v29 = vadd.f32 %v913_v3, %v812_v13 }
 0x185   : > { %v1722_v12 = vpack.c.bf16 %v1710_v7, %v1709_v2  ;;  %v1244_v14 = vadd.f32 %v1213_v60, %v1083_v8  ;;  %v1216_v15 = vpop.f32.mrf.mxu0  ;;  %2252 = vmatmul.msk.bf16.gmra.mxu2 %vm329_vm1, %v1325_v9  ;;  %v1344_v21 = vld [vmem:[#allocation3 + $0x31] sm:$0xff] }
 0x186   : > { %2283 = vmatmul.msk.bf16.gmra.mxu3 %vm329_vm1, %v1579_v11 }
 0x187   : > { %2315 = vmatmul.msk.bf16.gmra.mxu0 %vm329_vm1, %v1722_v12  ;;  %v1265_v16 = vadd.f32 %v2858_v19, %v1244_v14 }
 0x189   : > { %v1282_v18 = vmax.f32 %v1265_v16, 0.0  ;;  %v916_v20 = vpop.f32.mrf.mxu2 }
 0x18a   : > { %v1055_v10 = vpop.f32.mrf.mxu3  ;;  %v1345_v22 = vld [vmem:[#allocation3 + $0x39] sm:$0xff] }
 0x18b   : > { %1299 = vst.msk [vmem:[#allocation3 + $0x48] sm:$0xff] %vm329_vm1, %v1282_v18  ;;  %v1084_v23 = vadd.f32 %v1055_v10, %v912_v17  ;;  %v1356_v24 = vpack.c.bf16 %v1345_v22, %v1344_v21  ;;  %v815_v25 = vpop.f32.mrf.mxu1  ;;  %v1315_v31 = vld [vmem:[#allocation3 + $0x40] sm:$0xff] }
 0x18c   : > { %v1568_v32 = vld [vmem:[#allocation3 + $0x3c] sm:$0xff]  ;;  %v917_v47 = vadd.f32 %v916_v20, %v815_v25 }
 0x18d   : > { %v1245_v26 = vadd.f32 %v1216_v15, %v1084_v23  ;;  %v1218_v27 = vpop.f32.mrf.mxu0  ;;  %2228 = vmatmul.msk.bf16.gmra.mxu1 %vm329_vm1, %v1356_v24  ;;  %v1711_v33 = vld [vmem:[#allocation3 + $0x3d] sm:$0xff] }
 0x18f   : > { %v1266_v28 = vadd.f32 %v2858_v19, %v1245_v26 }
 0x191   : > { %v1283_v30 = vmax.f32 %v1266_v28, 0.0  ;;  %v918_v34 = vpop.f32.mrf.mxu2 }
 0x192   : > { %v1057_v35 = vpop.f32.mrf.mxu3  ;;  %v1316_v36 = vld [vmem:[#allocation3 + $0x48] sm:$0xff] }
 0x193   : > { %v1569_v37 = vld [vmem:[#allocation3 + $0x44] sm:$0xff]  ;;  %1300 = vst.msk [vmem:[#allocation3 + $0x50] sm:$0xff] %vm329_vm1, %v1283_v30  ;;  %v1085_v39 = vadd.f32 %v1057_v35, %v914_v29  ;;  %v1326_v40 = vpack.c.bf16 %v1316_v36, %v1315_v31  ;;  %v817_v43 = vpop.f32.mrf.mxu1 }
 0x194   : > { %v1712_v38 = vld [vmem:[#allocation3 + $0x45] sm:$0xff]  ;;  %v1580_v41 = vpack.c.bf16 %v1569_v37, %v1568_v32  ;;  %v919_v59 = vadd.f32 %v918_v34, %v817_v43 }
 0x195   : > { %v1723_v42 = vpack.c.bf16 %v1712_v38, %v1711_v33  ;;  %v1246_v44 = vadd.f32 %v1218_v27, %v1085_v39  ;;  %v1221_v45 = vpop.f32.mrf.mxu0  ;;  %2253 = vmatmul.msk.bf16.gmra.mxu2 %vm329_vm1, %v1326_v40  ;;  %v1346_v51 = vld [vmem:[#allocation3 + $0x41] sm:$0xff] }
 0x196   : > { %2284 = vmatmul.msk.bf16.gmra.mxu3 %vm329_vm1, %v1580_v41 }
 0x197   : > { %2316 = vmatmul.msk.bf16.gmra.mxu0 %vm329_vm1, %v1723_v42  ;;  %v1267_v46 = vadd.f32 %v2858_v19, %v1246_v44 }
 0x199   : > { %v1284_v48 = vmax.f32 %v1267_v46, 0.0  ;;  %v921_v49 = vpop.f32.mrf.mxu2 }
 0x19a   : > { %v1060_v50 = vpop.f32.mrf.mxu3  ;;  %v1347_v52 = vld [vmem:[#allocation3 + $0x49] sm:$0xff] }
 0x19b   : > { %1301 = vst.msk [vmem:[#allocation3 + $0x58] sm:$0xff] %vm329_vm1, %v1284_v48  ;;  %v1086_v53 = vadd.f32 %v1060_v50, %v917_v47  ;;  %v1357_v54 = vpack.c.bf16 %v1347_v52, %v1346_v51  ;;  %v820_v55 = vpop.f32.mrf.mxu1  ;;  %v1317_v61 = vld [vmem:[#allocation3 + $0x50] sm:$0xff] }
 0x19c   : > { %v1570_v62 = vld [vmem:[#allocation3 + $0x4c] sm:$0xff]  ;;  %v922_v14 = vadd.f32 %v921_v49, %v820_v55 }
 0x19d   : > { %v1247_v56 = vadd.f32 %v1221_v45, %v1086_v53  ;;  %v1223_v57 = vpop.f32.mrf.mxu0  ;;  %2229 = vmatmul.msk.bf16.gmra.mxu1 %vm329_vm1, %v1357_v54  ;;  %v1713_v63 = vld [vmem:[#allocation3 + $0x4d] sm:$0xff] }
 0x19f   : > { %v1268_v58 = vadd.f32 %v2858_v19, %v1247_v56 }
 0x1a1   : > { %v1285_v60 = vmax.f32 %v1268_v58, 0.0  ;;  %v923_v0 = vpop.f32.mrf.mxu2 }
 0x1a2   : > { %v1062_v1 = vpop.f32.mrf.mxu3  ;;  %v1318_v2 = vld [vmem:[#allocation3 + $0x58] sm:$0xff] }
 0x1a3   : > { %v1571_v3 = vld [vmem:[#allocation3 + $0x54] sm:$0xff]  ;;  %1302 = vst.msk [vmem:[#allocation3 + $0x60] sm:$0xff] %vm329_vm1, %v1285_v60  ;;  %v1087_v5 = vadd.f32 %v1062_v1, %v919_v59  ;;  %v1327_v6 = vpack.c.bf16 %v1318_v2, %v1317_v61  ;;  %v822_v9 = vpop.f32.mrf.mxu1 }
 0x1a4   : > { %v1714_v4 = vld [vmem:[#allocation3 + $0x55] sm:$0xff]  ;;  %v1581_v7 = vpack.c.bf16 %v1571_v3, %v1570_v62  ;;  %v924_v26 = vadd.f32 %v923_v0, %v822_v9 }
 0x1a5   : > { %v1724_v8 = vpack.c.bf16 %v1714_v4, %v1713_v63  ;;  %v1248_v11 = vadd.f32 %v1223_v57, %v1087_v5  ;;  %v1226_v12 = vpop.f32.mrf.mxu0  ;;  %2254 = vmatmul.msk.bf16.gmra.mxu2 %vm329_vm1, %v1327_v6  ;;  %v1348_v18 = vld [vmem:[#allocation3 + $0x51] sm:$0xff] }
 0x1a6   : > { %2285 = vmatmul.msk.bf16.gmra.mxu3 %vm329_vm1, %v1581_v7 }
 0x1a7   : > { %2317 = vmatmul.msk.bf16.gmra.mxu0 %vm329_vm1, %v1724_v8  ;;  %v1269_v13 = vadd.f32 %v2858_v19, %v1248_v11 }
 0x1a9   : > { %v1286_v15 = vmax.f32 %v1269_v13, 0.0  ;;  %v926_v16 = vpop.f32.mrf.mxu2 }
 0x1aa   : > { %v1065_v17 = vpop.f32.mrf.mxu3  ;;  %v1349_v20 = vld [vmem:[#allocation3 + $0x59] sm:$0xff] }
 0x1ab   : > { %1303 = vst.msk [vmem:[#allocation3 + $0x68] sm:$0xff] %vm329_vm1, %v1286_v15  ;;  %v1088_v10 = vadd.f32 %v1065_v17, %v922_v14  ;;  %v1358_v21 = vpack.c.bf16 %v1349_v20, %v1348_v18  ;;  %v825_v22 = vpop.f32.mrf.mxu1  ;;  %v1319_v28 = vld [vmem:[#allocation3 + $0x60] sm:$0xff] }
 0x1ac   : > { %v1572_v29 = vld [vmem:[#allocation3 + $0x5c] sm:$0xff]  ;;  %v927_v44 = vadd.f32 %v926_v16, %v825_v22 }
 0x1ad   : > { %v1249_v23 = vadd.f32 %v1226_v12, %v1088_v10  ;;  %v1228_v24 = vpop.f32.mrf.mxu0  ;;  %2230 = vmatmul.msk.bf16.gmra.mxu1 %vm329_vm1, %v1358_v21  ;;  %v1715_v30 = vld [vmem:[#allocation3 + $0x5d] sm:$0xff] }
 0x1ae   : > { %v2929_v21 = vld [vmem:[%s2970_s7] ss:$0 sm:$0xff] }
 0x1af   : > { %v1270_v25 = vadd.f32 %v2858_v19, %v1249_v23 }
 0x1b1   : > { %v1287_v27 = vmax.f32 %v1270_v25, 0.0  ;;  %v928_v31 = vpop.f32.mrf.mxu2 }
 0x1b2   : > { %v1067_v32 = vpop.f32.mrf.mxu3  ;;  %v1320_v33 = vld [vmem:[#allocation3 + $0x68] sm:$0xff] }
 0x1b3   : > { %v1573_v34 = vld [vmem:[#allocation3 + $0x64] sm:$0xff]  ;;  %1304 = vst.msk [vmem:[#allocation3 + $0x70] sm:$0xff] %vm329_vm1, %v1287_v27  ;;  %v1089_v36 = vadd.f32 %v1067_v32, %v924_v26  ;;  %v1328_v37 = vpack.c.bf16 %v1320_v33, %v1319_v28  ;;  %v827_v40 = vpop.f32.mrf.mxu1 }
 0x1b4   : > { %v1716_v35 = vld [vmem:[#allocation3 + $0x65] sm:$0xff]  ;;  %v1582_v38 = vpack.c.bf16 %v1573_v34, %v1572_v29 }
 0x1b5   : > { %v1725_v39 = vpack.c.bf16 %v1716_v35, %v1715_v30  ;;  %v1250_v41 = vadd.f32 %v1228_v24, %v1089_v36  ;;  %v1231_v42 = vpop.f32.mrf.mxu0  ;;  %2255 = vmatmul.msk.bf16.gmra.mxu2 %vm329_vm1, %v1328_v37  ;;  %v1350_v47 = vld [vmem:[#allocation3 + $0x61] sm:$0xff] }
 0x1b6   : > { %2286 = vmatmul.msk.bf16.gmra.mxu3 %vm329_vm1, %v1582_v38 }
 0x1b7   : > { %2318 = vmatmul.msk.bf16.gmra.mxu0 %vm329_vm1, %v1725_v39  ;;  %v1271_v43 = vadd.f32 %v2858_v19, %v1250_v41 }
 0x1b9   : > { %v1288_v45 = vmax.f32 %v1271_v43, 0.0 }
 0x1ba   : > { %v1070_v46 = vpop.f32.mrf.mxu3  ;;  %v1351_v48 = vld [vmem:[#allocation3 + $0x69] sm:$0xff] }
 0x1bb   : > { %1305 = vst.msk [vmem:[#allocation3 + $0x78] sm:$0xff] %vm329_vm1, %v1288_v45  ;;  %v1090_v49 = vadd.f32 %v1070_v46, %v927_v44  ;;  %v1359_v50 = vpack.c.bf16 %v1351_v48, %v1350_v47  ;;  %v1321_v54 = vld [vmem:[#allocation3 + $0x70] sm:$0xff] }
 0x1bc   : > { %v1574_v56 = vld [vmem:[#allocation3 + $0x6c] sm:$0xff]  ;;  %v1329_v61 = vpack.c.bf16 %v1321_v54, %v1321_v54 }
 0x1bd   : > { %v1251_v51 = vadd.f32 %v1231_v42, %v1090_v49  ;;  %v1233_v52 = vpop.f32.mrf.mxu0  ;;  %2231 = vmatmul.msk.bf16.gmra.mxu1 %vm329_vm1, %v1359_v50  ;;  %v1717_v59 = vld [vmem:[#allocation3 + $0x6d] sm:$0xff] }
 0x1bf   : > { %v1272_v53 = vadd.f32 %v2858_v19, %v1251_v51 }
 0x1c1   : > { %v1289_v55 = vmax.f32 %v1272_v53, 0.0 }
 0x1c2   : > { %v1072_v57 = vpop.f32.mrf.mxu3  ;;  %v1575_v58 = vld [vmem:[#allocation3 + $0x74] sm:$0xff] }
 0x1c3   : > { %v1718_v60 = vld [vmem:[#allocation3 + $0x75] sm:$0xff]  ;;  %1306 = vst.msk [vmem:[#allocation3 + $0x80] sm:$0xf] %vm331_vm3, %v1289_v55  ;;  %v1583_v62 = vpack.c.bf16 %v1575_v58, %v1574_v56 }
 0x1c4   : > { %v1726_v63 = vpack.c.bf16 %v1718_v60, %v1717_v59  ;;  %v1352_v0 = vld [vmem:[#allocation3 + $0x71] sm:$0xff] }
 0x1c5   : > { %2256 = vmatmul.msk.bf16.gmra.mxu2 %vm329_vm1, %v1329_v61  ;;  %v1360_v19 = vpack.c.bf16 %v1352_v0, %v1352_v0 }
 0x1c6   : > { %2287 = vmatmul.msk.bf16.gmra.mxu3 %vm329_vm1, %v1583_v62 }
 0x1c7   : > { %2319 = vmatmul.msk.bf16.gmra.mxu0 %vm329_vm1, %v1726_v63 }
 0x1ca   : > { %v1576_v1 = vld [vmem:[#allocation3 + $0x7c] sm:$0xff] }
 0x1cb   : > { %v1719_v2 = vld [vmem:[#allocation3 + $0x7d] sm:$0xff]  ;;  %v1584_v3 = vpack.c.bf16 %v1576_v1, %v1576_v1 }
 0x1cc   : > { %v1727_v4 = vpack.c.bf16 %v1719_v2, %v1719_v2 }
 0x1cd   : > { %2232 = vmatmul.msk.bf16.gmra.mxu1 %vm329_vm1, %v1360_v19 }
 0x1d6   : > { %2288 = vmatmul.msk.bf16.gmra.mxu3 %vm329_vm1, %v1584_v3 }
 0x1d7   : > { %2320 = vmatmul.msk.bf16.gmra.mxu0 %vm329_vm1, %v1727_v4 }
 0x1d8   : > { %v1523_v5 = vpop.f32.mrf.mxu2 }
 0x1da   : > { %v1427_v6 = vpop.f32.mrf.mxu1 }
 0x1db   : > { %v1524_v14 = vadd.f32 %v1523_v5, %v1427_v6 }
 0x1e0   : > { %v1525_v7 = vpop.f32.mrf.mxu2 }
 0x1e2   : > { %v1429_v8 = vpop.f32.mrf.mxu1 }
 0x1e3   : > { %v1526_v17 = vadd.f32 %v1525_v7, %v1429_v8 }
 0x1e4   : > { %v1794_v9 = vpop.f32.mrf.mxu0 }
 0x1e8   : > { %v1528_v11 = vpop.f32.mrf.mxu2 }
 0x1e9   : > { %v1651_v12 = vpop.f32.mrf.mxu3 }
 0x1ea   : > { %v1432_v13 = vpop.f32.mrf.mxu1  ;;  %v1690_v16 = vadd.f32 %v1651_v12, %v1524_v14 }
 0x1eb   : > { %v1529_v32 = vadd.f32 %v1528_v11, %v1432_v13 }
 0x1ec   : > { %v1796_v15 = vpop.f32.mrf.mxu0  ;;  %v1833_v10 = vadd.f32 %v1794_v9, %v1690_v16 }
 0x1ee   : > { %v1852_v26 = vadd.f32 %v2929_v21, %v1833_v10 }
 0x1f0   : > { %v1530_v18 = vpop.f32.mrf.mxu2 }
 0x1f1   : > { %v1653_v20 = vpop.f32.mrf.mxu3 }
 0x1f2   : > { %v1691_v22 = vadd.f32 %v1653_v20, %v1526_v17  ;;  %v1434_v23 = vpop.f32.mrf.mxu1 }
 0x1f3   : > { %v1531_v35 = vadd.f32 %v1530_v18, %v1434_v23 }
 0x1f4   : > { %v1834_v24 = vadd.f32 %v1796_v15, %v1691_v22  ;;  %v1799_v25 = vpop.f32.mrf.mxu0 }
 0x1f6   : > { %v1853_v27 = vadd.f32 %v2929_v21, %v1834_v24 }
 0x1f8   : > { %v2421_v28 = vpack.c.bf16 %v1853_v27, %v1852_v26  ;;  %v1533_v29 = vpop.f32.mrf.mxu2 }
 0x1f9   : > { %v1656_v30 = vpop.f32.mrf.mxu3 }
 0x1fa   : > { %2422 = vst [vmem:[%s2937_s9] sm:$0xff] %v2421_v28   ;;  %v1437_v31 = vpop.f32.mrf.mxu1  ;;  %v1692_v34 = vadd.f32 %v1656_v30, %v1529_v32 }
 0x1fb   : > { %v1534_v49 = vadd.f32 %v1533_v29, %v1437_v31 }
 0x1fc   : > { %v1801_v33 = vpop.f32.mrf.mxu0  ;;  %v1835_v38 = vadd.f32 %v1799_v25, %v1692_v34 }
 0x1fe   : > { %v1854_v43 = vadd.f32 %v2929_v21, %v1835_v38 }
 0x200   : > { %v1535_v36 = vpop.f32.mrf.mxu2 }
 0x201   : > { %v1658_v37 = vpop.f32.mrf.mxu3 }
 0x202   : > { %v1693_v39 = vadd.f32 %v1658_v37, %v1531_v35  ;;  %v1439_v40 = vpop.f32.mrf.mxu1 }
 0x203   : > { %v1536_v52 = vadd.f32 %v1535_v36, %v1439_v40 }
 0x204   : > { %v1836_v41 = vadd.f32 %v1801_v33, %v1693_v39  ;;  %v1804_v42 = vpop.f32.mrf.mxu0 }
 0x206   : > { %v1855_v44 = vadd.f32 %v2929_v21, %v1836_v41 }
 0x208   : > { %v2426_v45 = vpack.c.bf16 %v1855_v44, %v1854_v43  ;;  %v1538_v46 = vpop.f32.mrf.mxu2 }
 0x209   : > { %v1661_v47 = vpop.f32.mrf.mxu3 }
 0x20a   : > { %2461 = vst [vmem:[%s2937_s9 + $0x8] sm:$0xff] %v2426_v45   ;;  %v1442_v48 = vpop.f32.mrf.mxu1  ;;  %v1694_v51 = vadd.f32 %v1661_v47, %v1534_v49 }
 0x20b   : > { %v1539_v1 = vadd.f32 %v1538_v46, %v1442_v48 }
 0x20c   : > { %v1806_v50 = vpop.f32.mrf.mxu0  ;;  %v1837_v55 = vadd.f32 %v1804_v42, %v1694_v51 }
 0x20e   : > { %v1856_v60 = vadd.f32 %v2929_v21, %v1837_v55 }
 0x210   : > { %v1540_v53 = vpop.f32.mrf.mxu2 }
 0x211   : > { %v1663_v54 = vpop.f32.mrf.mxu3 }
 0x212   : > { %v1695_v56 = vadd.f32 %v1663_v54, %v1536_v52  ;;  %v1444_v57 = vpop.f32.mrf.mxu1 }
 0x213   : > { %v1541_v4 = vadd.f32 %v1540_v53, %v1444_v57 }
 0x214   : > { %v1838_v58 = vadd.f32 %v1806_v50, %v1695_v56  ;;  %v1809_v59 = vpop.f32.mrf.mxu0 }
 0x216   : > { %v1857_v61 = vadd.f32 %v2929_v21, %v1838_v58 }
 0x218   : > { %v2431_v62 = vpack.c.bf16 %v1857_v61, %v1856_v60  ;;  %v1543_v63 = vpop.f32.mrf.mxu2 }
 0x219   : > { %v1666_v0 = vpop.f32.mrf.mxu3 }
 0x21a   : > { %2462 = vst [vmem:[%s2937_s9 + $0x10] sm:$0xff] %v2431_v62   ;;  %v1447_v19 = vpop.f32.mrf.mxu1  ;;  %v1696_v3 = vadd.f32 %v1666_v0, %v1539_v1 }
 0x21b   : > { %v1544_v20 = vadd.f32 %v1543_v63, %v1447_v19 }
 0x21c   : > { %v1811_v2 = vpop.f32.mrf.mxu0  ;;  %v1839_v7 = vadd.f32 %v1809_v59, %v1696_v3 }
 0x21e   : > { %v1858_v13 = vadd.f32 %v2929_v21, %v1839_v7 }
 0x220   : > { %v1545_v5 = vpop.f32.mrf.mxu2 }
 0x221   : > { %v1668_v6 = vpop.f32.mrf.mxu3 }
 0x222   : > { %v1697_v8 = vadd.f32 %v1668_v6, %v1541_v4  ;;  %v1449_v9 = vpop.f32.mrf.mxu1 }
 0x223   : > { %v1546_v23 = vadd.f32 %v1545_v5, %v1449_v9 }
 0x224   : > { %v1840_v11 = vadd.f32 %v1811_v2, %v1697_v8  ;;  %v1814_v12 = vpop.f32.mrf.mxu0 }
 0x226   : > { %v1859_v14 = vadd.f32 %v2929_v21, %v1840_v11 }
 0x228   : > { %v2436_v15 = vpack.c.bf16 %v1859_v14, %v1858_v13  ;;  %v1548_v16 = vpop.f32.mrf.mxu2 }
 0x229   : > { %v1671_v17 = vpop.f32.mrf.mxu3 }
 0x22a   : > { %2463 = vst [vmem:[%s2937_s9 + $0x18] sm:$0xff] %v2436_v15   ;;  %v1452_v18 = vpop.f32.mrf.mxu1  ;;  %v1698_v22 = vadd.f32 %v1671_v17, %v1544_v20 }
 0x22b   : > { %v1549_v37 = vadd.f32 %v1548_v16, %v1452_v18 }
 0x22c   : > { %v1816_v10 = vpop.f32.mrf.mxu0  ;;  %v1841_v26 = vadd.f32 %v1814_v12, %v1698_v22 }
 0x22e   : > { %v1860_v31 = vadd.f32 %v2929_v21, %v1841_v26 }
 0x230   : > { %v1550_v24 = vpop.f32.mrf.mxu2 }
 0x231   : > { %v1673_v25 = vpop.f32.mrf.mxu3 }
 0x232   : > { %v1699_v27 = vadd.f32 %v1673_v25, %v1546_v23  ;;  %v1454_v28 = vpop.f32.mrf.mxu1 }
 0x233   : > { %v1551_v40 = vadd.f32 %v1550_v24, %v1454_v28 }
 0x234   : > { %v1842_v29 = vadd.f32 %v1816_v10, %v1699_v27  ;;  %v1819_v30 = vpop.f32.mrf.mxu0 }
 0x236   : > { %v1861_v32 = vadd.f32 %v2929_v21, %v1842_v29 }
 0x238   : > { %v2441_v33 = vpack.c.bf16 %v1861_v32, %v1860_v31  ;;  %v1553_v34 = vpop.f32.mrf.mxu2 }
 0x239   : > { %v1676_v35 = vpop.f32.mrf.mxu3 }
 0x23a   : > { %2464 = vst [vmem:[%s2937_s9 + $0x20] sm:$0xff] %v2441_v33   ;;  %v1457_v36 = vpop.f32.mrf.mxu1  ;;  %v1700_v39 = vadd.f32 %v1676_v35, %v1549_v37 }
 0x23b   : > { %v1554_v54 = vadd.f32 %v1553_v34, %v1457_v36 }
 0x23c   : > { %v1821_v38 = vpop.f32.mrf.mxu0  ;;  %v1843_v43 = vadd.f32 %v1819_v30, %v1700_v39 }
 0x23e   : > { %v1862_v48 = vadd.f32 %v2929_v21, %v1843_v43 }
 0x240   : > { %v1555_v41 = vpop.f32.mrf.mxu2 }
 0x241   : > { %v1678_v42 = vpop.f32.mrf.mxu3 }
 0x242   : > { %v1701_v44 = vadd.f32 %v1678_v42, %v1551_v40  ;;  %v1459_v45 = vpop.f32.mrf.mxu1 }
 0x243   : > { %v1556_v57 = vadd.f32 %v1555_v41, %v1459_v45 }
 0x244   : > { %v1844_v46 = vadd.f32 %v1821_v38, %v1701_v44  ;;  %v1824_v47 = vpop.f32.mrf.mxu0 }
 0x246   : > { %v1863_v49 = vadd.f32 %v2929_v21, %v1844_v46 }
 0x248   : > { %v2446_v50 = vpack.c.bf16 %v1863_v49, %v1862_v48  ;;  %v1558_v51 = vpop.f32.mrf.mxu2 }
 0x249   : > { %v1681_v52 = vpop.f32.mrf.mxu3 }
 0x24a   : > { %2465 = vst [vmem:[%s2937_s9 + $0x28] sm:$0xff] %v2446_v50   ;;  %v1462_v53 = vpop.f32.mrf.mxu1  ;;  %v1702_v56 = vadd.f32 %v1681_v52, %v1554_v54 }
 0x24b   : > { %v1559_v2 = vadd.f32 %v1558_v51, %v1462_v53 }
 0x24c   : > { %v1826_v55 = vpop.f32.mrf.mxu0  ;;  %v1845_v60 = vadd.f32 %v1824_v47, %v1702_v56 }
 0x24e   : > { %v1864_v19 = vadd.f32 %v2929_v21, %v1845_v60 }
 0x250   : > { %v1560_v58 = vpop.f32.mrf.mxu2 }
 0x251   : > { %v1683_v59 = vpop.f32.mrf.mxu3 }
 0x252   : > { %v1703_v61 = vadd.f32 %v1683_v59, %v1556_v57  ;;  %v1464_v62 = vpop.f32.mrf.mxu1 }
 0x254   : > { %v1846_v63 = vadd.f32 %v1826_v55, %v1703_v61  ;;  %v1829_v0 = vpop.f32.mrf.mxu0 }
 0x256   : > { %v1865_v1 = vadd.f32 %v2929_v21, %v1846_v63 }
 0x258   : > { %v2451_v3 = vpack.c.bf16 %v1865_v1, %v1864_v19 }
 0x259   : > { %v1686_v4 = vpop.f32.mrf.mxu3 }
 0x25a   : > { %2466 = vst [vmem:[%s2937_s9 + $0x30] sm:$0xff] %v2451_v3   ;;  %v1704_v5 = vadd.f32 %v1686_v4, %v1559_v2 }
 0x25c   : > { %v1847_v6 = vadd.f32 %v1829_v0, %v1704_v5  ;;  %v1831_v7 = vpop.f32.mrf.mxu0 }
 0x25e   : > { %v1866_v8 = vadd.f32 %v2929_v21, %v1847_v6 }
 0x260   : > { %v1881_v9 = vpack.c.bf16 %v1866_v8, %v1866_v8 }
 0x261   : > { %v1688_v11 = vpop.f32.mrf.mxu3 }
 0x262   : > { %1896 = vst [vmem:[%s2937_s9 + $0x38] sm:$0xf] %v1881_v9 }
 0x263 PF: > { %s18_s27 = sadd.s32 1, %s2539_s27  }
 0x264   : > { %p15_p4 = scmp.ge.s32.totalorder %s18_s27, 4  }
 0x266   :  { %17 = sbr.rel (!%p15_p4) target bundleno = 1 (0x1), region = 91 }

</bundles_post_ra>
